<compile_context>
chip_gen: v7x
topology: tpu7x:2x2x1
jax: 0.10.0
libtpu: 0.0.40
codegen_flags: <defaults>
</compile_context>

<pallas_src>
import jax
import jax.numpy as jnp
from jax import lax
from jax.experimental import pallas as pl
from jax.experimental.pallas import tpu as pltpu

_PREC = lax.Precision.HIGHEST


def _make_attn_kernel(num_heads, head_dim, seq_len, group):
    """Fused NesT attention kernel for one group of `group` image blocks."""
    C = num_heads * head_dim
    scale = head_dim ** (-0.5)
    G, N = group, seq_len

    def kernel(x_ref, wqkv_ref, bqkv_ref, wproj_ref, bproj_ref, o_ref):
        # x_ref:     (G, N, C)    group of image blocks
        # wqkv_ref:  (C, 3C)      qkv weight, already transposed to (in, out)
        # bqkv_ref:  (1, 3C)
        # wproj_ref: (C, C)       proj weight, transposed + head-permuted
        # bproj_ref: (1, C)
        # o_ref:     (G, N, C)

        # ---- qkv projection: one big MXU matmul over all G*N tokens ----
        x2 = x_ref[...].reshape(G * N, C)
        qkv = jnp.dot(x2, wqkv_ref[...],
                      preferred_element_type=jnp.float32,
                      precision=_PREC) + bqkv_ref[...]
        qkv = qkv.reshape(G, N, 3 * C)

        # ---- per-head localized attention (softmax over the N tokens of each block) ----
        head_outs = []
        for h in range(num_heads):          # static unroll
            lo = h * head_dim
            q = qkv[:, :, lo:lo + head_dim] * scale                 # (G, N, hd)
            k = qkv[:, :, C + lo:C + lo + head_dim]                 # (G, N, hd)
            v = qkv[:, :, 2 * C + lo:2 * C + lo + head_dim]         # (G, N, hd)

            s = jnp.einsum('gnd,gmd->gnm', q, k,
                           preferred_element_type=jnp.float32,
                           precision=_PREC)                         # (G, N, N)
            s = s - jnp.max(s, axis=-1, keepdims=True)
            p = jnp.exp(s)
            p = p / jnp.sum(p, axis=-1, keepdims=True)

            head_outs.append(
                jnp.einsum('gnm,gmd->gnd', p, v,
                           preferred_element_type=jnp.float32,
                           precision=_PREC))                        # (G, N, hd)

        # heads in (h, d) order; the (d, h) reinterleave of the PyTorch permute
        # is already folded into wproj_ref's rows.
        ao = jnp.concatenate(head_outs, axis=-1).reshape(G * N, C)

        # ---- output projection: one big MXU matmul ----
        y = jnp.dot(ao, wproj_ref[...],
                    preferred_element_type=jnp.float32,
                    precision=_PREC) + bproj_ref[...]
        o_ref[...] = y.reshape(G, N, C).astype(o_ref.dtype)

    return kernel


def _pick_group(num_blocks, seq_len, dim, dtype_bytes=4,
                max_rows=2048, max_block_bytes=8 << 20):
    """Largest divisor G of num_blocks s.t. the (G, N, C) tile stays small and
    at least two grid steps remain (keeps both v7x TensorCores busy)."""
    best = 1
    for g in range(1, num_blocks + 1):
        if num_blocks % g:
            continue
        if g * seq_len > max_rows:
            continue
        if g * seq_len * dim * dtype_bytes > max_block_bytes:
            continue
        if num_blocks >= 2 and num_blocks // g < 2:
            continue
        best = g
    return best


def nest_attention(x, qkv_weight, qkv_bias, proj_weight, proj_bias, num_heads):
    """NesT localized attention forward.

    x:           (B, T, N, C)
    qkv_weight:  (3C, C)   torch nn.Linear weight layout (out, in)
    qkv_bias:    (3C,) or None
    proj_weight: (C, C)
    proj_bias:   (C,)
    """
    B, T, N, C = x.shape
    assert C % num_heads == 0
    hd = C // num_heads
    BT = B * T
    G = _pick_group(BT, N, C)
    grid = (BT // G,)

    # ---- glue: layout only (weight transpose / head permutation), no FLOPs ----
    xf = x.reshape(BT, N, C).astype(jnp.float32)
    wqkv_t = jnp.transpose(qkv_weight).astype(jnp.float32)            # (C, 3C)
    if qkv_bias is None:
        bqkv2 = jnp.zeros((1, 3 * C), jnp.float32)
    else:
        bqkv2 = qkv_bias.reshape(1, 3 * C).astype(jnp.float32)
    # Fold the NesT permute(0,2,3,4,1) feature order (c = d*nh + h) into the
    # proj weight so the kernel can use the natural (h, d) head-concat order.
    wproj_t = jnp.transpose(
        proj_weight.reshape(C, hd, num_heads), (2, 1, 0)).reshape(C, C).astype(jnp.float32)
    bproj2 = proj_bias.reshape(1, C).astype(jnp.float32)

    kernel = _make_attn_kernel(num_heads, hd, N, G)

    out = pl.pallas_call(
        kernel,
        out_shape=jax.ShapeDtypeStruct((BT, N, C), jnp.float32),
        grid_spec=pltpu.PrefetchScalarGridSpec(
            num_scalar_prefetch=0,
            grid=grid,
            in_specs=[
                pl.BlockSpec((G, N, C), lambda i: (i, 0, 0)),        # x tile (per step)
                pl.BlockSpec((C, 3 * C), lambda i: (0, 0)),          # weights: VMEM-resident
                pl.BlockSpec((1, 3 * C), lambda i: (0, 0)),
                pl.BlockSpec((C, C), lambda i: (0, 0)),
                pl.BlockSpec((1, C), lambda i: (0, 0)),
            ],
            out_specs=pl.BlockSpec((G, N, C), lambda i: (i, 0, 0)),
        ),
        compiler_params=pltpu.CompilerParams(dimension_semantics=("parallel",)),
    )(xf, wqkv_t, bqkv2, wproj_t, bproj2)

    return out.reshape(B, T, N, C)


def ref_attention(x, qkv_weight, qkv_bias, proj_weight, proj_bias, num_heads):
    """Pure-JAX reference matching the PyTorch NesT Attention semantics."""
    B, T, N, C = x.shape
    hd = C // num_heads
    scale = hd ** (-0.5)
    qkv = jnp.einsum('btnc,oc->btno', x.astype(jnp.float32),
                     qkv_weight.astype(jnp.float32), precision=_PREC)
    if qkv_bias is not None:
        qkv = qkv + qkv_bias.astype(jnp.float32)
    qkv = qkv.reshape(B, T, N, 3, num_heads, hd)
    qkv = jnp.transpose(qkv, (3, 0, 4, 1, 2, 5))      # (3, B, nh, T, N, hd)
    q, k, v = qkv[0], qkv[1], qkv[2]
    attn = jnp.einsum('bhtnd,bhtmd->bhtnm', q * scale, k, precision=_PREC)
    attn = jax.nn.softmax(attn, axis=-1)
    o = jnp.einsum('bhtnm,bhtmd->bhtnd', attn, v, precision=_PREC)
    o = jnp.transpose(o, (0, 2, 3, 4, 1)).reshape(B, T, N, C)   # (B,T,N,hd,nh) -> (B,T,N,C)
    y = jnp.einsum('btnc,oc->btno', o, proj_weight.astype(jnp.float32),
                   precision=_PREC) + proj_bias.astype(jnp.float32)
    return y


if __name__ == "__main__":
    B, T, N, num_heads, head_dim = 2, 4, 8, 4, 8
    C = num_heads * head_dim  # 32

    key = jax.random.PRNGKey(0)
    k1, k2, k3, k4 = jax.random.split(key, 4)
    x = jax.random.normal(k1, (B, T, N, C), jnp.float32)
    qkv_w = 0.1 * jax.random.normal(k2, (3 * C, C), jnp.float32)   # torch Linear (out, in)
    proj_w = 0.1 * jax.random.normal(k3, (C, C), jnp.float32)
    proj_b = 0.05 * jax.random.normal(k4, (C,), jnp.float32)
    qkv_b = None                                                   # qkv_bias=False (default)

    out = jax.block_until_ready(
        nest_attention(x, qkv_w, qkv_b, proj_w, proj_b, num_heads))
    ref = jax.block_until_ready(
        ref_attention(x, qkv_w, qkv_b, proj_w, proj_b, num_heads))

    assert out.shape == (B, T, N, C), out.shape
    max_err = float(jnp.max(jnp.abs(out - ref)))
    assert jnp.allclose(out, ref, atol=1e-4, rtol=1e-4), f"max_err={max_err}"
    print("KERNEL_OK")
</pallas_src>

<mosaic_0001>
module attributes {stable_mosaic.version = 11 : i64} {
  func.func @kernel(%arg0: i32, %arg1: memref<4x8x32xf32, #tpu.memory_space<vmem>>, %arg2: memref<32x96xf32, #tpu.memory_space<vmem>>, %arg3: memref<1x96xf32, #tpu.memory_space<vmem>>, %arg4: memref<32x32xf32, #tpu.memory_space<vmem>>, %arg5: memref<1x32xf32, #tpu.memory_space<vmem>>, %arg6: memref<4x8x32xf32, #tpu.memory_space<vmem>>) attributes {dimension_semantics = [#tpu.dimension_semantics<parallel>], iteration_bounds = array<i64: 2>, scalar_prefetch = 0 : i64, scratch_operands = 0 : i64, tpu.core_type = #tpu.core_type<tc>, window_params = [{transform_indices = @transform_0, window_bounds = array<i64: 4, 8, 32>}, {pipeline_mode = #tpu.pipeline_mode<synchronous>, transform_indices = @transform_1, window_bounds = array<i64: 32, 96>}, {pipeline_mode = #tpu.pipeline_mode<synchronous>, transform_indices = @transform_2, window_bounds = array<i64: 1, 96>}, {pipeline_mode = #tpu.pipeline_mode<synchronous>, transform_indices = @transform_3, window_bounds = array<i64: 32, 32>}, {pipeline_mode = #tpu.pipeline_mode<synchronous>, transform_indices = @transform_4, window_bounds = array<i64: 1, 32>}, {transform_indices = @transform_5, window_bounds = array<i64: 4, 8, 32>}]} {
    %c0 = arith.constant 0 : index
    %c0_0 = arith.constant 0 : index
    %c0_1 = arith.constant 0 : index
    %0 = vector.load %arg1[%c0, %c0_0, %c0_1] : memref<4x8x32xf32, #tpu.memory_space<vmem>>, vector<4x8x32xf32>
    %1 = vector.shape_cast %0 : vector<4x8x32xf32> to vector<32x32xf32>
    %c0_2 = arith.constant 0 : index
    %c0_3 = arith.constant 0 : index
    %2 = vector.load %arg2[%c0_2, %c0_3] : memref<32x96xf32, #tpu.memory_space<vmem>>, vector<32x96xf32>
    %cst = arith.constant dense<0.000000e+00> : vector<32x96xf32>
    %3 = tpu.matmul %1, %2, %cst {dimension_numbers = #tpu.dot_dimension_numbers<[1], [0], [0], [1], [0, 0, 1, 1], [], []>, precision = #tpu.contract_precision<fp32>} : vector<32x32xf32>, vector<32x96xf32>, vector<32x96xf32> -> vector<32x96xf32>
    %c0_4 = arith.constant 0 : index
    %c0_5 = arith.constant 0 : index
    %4 = vector.load %arg3[%c0_4, %c0_5] : memref<1x96xf32, #tpu.memory_space<vmem>>, vector<1x96xf32>
    %5 = vector.broadcast %4 : vector<1x96xf32> to vector<32x96xf32>
    %6 = arith.addf %3, %5 : vector<32x96xf32>
    %7 = vector.shape_cast %6 : vector<32x96xf32> to vector<4x8x96xf32>
    %8 = vector.extract_strided_slice %7 {offsets = [0, 0, 0], sizes = [4, 8, 8], strides = [1, 1, 1]} : vector<4x8x96xf32> to vector<4x8x8xf32>
    %cst_6 = arith.constant 0.353553385 : f32
    %9 = vector.broadcast %cst_6 : f32 to vector<4x8x8xf32>
    %10 = arith.mulf %8, %9 : vector<4x8x8xf32>
    %11 = vector.extract_strided_slice %7 {offsets = [0, 0, 32], sizes = [4, 8, 8], strides = [1, 1, 1]} : vector<4x8x96xf32> to vector<4x8x8xf32>
    %12 = vector.extract_strided_slice %7 {offsets = [0, 0, 64], sizes = [4, 8, 8], strides = [1, 1, 1]} : vector<4x8x96xf32> to vector<4x8x8xf32>
    "tpu.trace_start"() <{level = 10 : i32, message = "gnd,gmd->gnm"}> : () -> ()
    %cst_7 = arith.constant dense<0.000000e+00> : vector<4x8x8xf32>
    %13 = tpu.matmul %10, %11, %cst_7 {dimension_numbers = #tpu.dot_dimension_numbers<[2], [2], [1], [1], [0, 0, 0, 1, 1, 1], [0], [0]>, precision = #tpu.contract_precision<fp32>} : vector<4x8x8xf32>, vector<4x8x8xf32>, vector<4x8x8xf32> -> vector<4x8x8xf32>
    "tpu.trace_stop"() : () -> ()
    %cst_8 = arith.constant dense<0xFF800000> : vector<4x8xf32>
    %14 = vector.multi_reduction <maximumf>, %13, %cst_8 [2] : vector<4x8x8xf32> to vector<4x8xf32>
    %15 = vector.shape_cast %14 : vector<4x8xf32> to vector<4x8x1xf32>
    %16 = vector.broadcast %15 : vector<4x8x1xf32> to vector<4x8x8xf32>
    %17 = arith.subf %13, %16 : vector<4x8x8xf32>
    %18 = math.exp %17 : vector<4x8x8xf32>
    %cst_9 = arith.constant dense<0.000000e+00> : vector<4x8xf32>
    %19 = vector.multi_reduction <add>, %18, %cst_9 [2] : vector<4x8x8xf32> to vector<4x8xf32>
    %20 = vector.shape_cast %19 : vector<4x8xf32> to vector<4x8x1xf32>
    %21 = vector.broadcast %20 : vector<4x8x1xf32> to vector<4x8x8xf32>
    %22 = arith.divf %18, %21 : vector<4x8x8xf32>
    "tpu.trace_start"() <{level = 10 : i32, message = "gnm,gmd->gnd"}> : () -> ()
    %cst_10 = arith.constant dense<0.000000e+00> : vector<4x8x8xf32>
    %23 = tpu.matmul %22, %12, %cst_10 {dimension_numbers = #tpu.dot_dimension_numbers<[2], [1], [1], [2], [0, 0, 0, 1, 1, 2], [0], [0]>, precision = #tpu.contract_precision<fp32>} : vector<4x8x8xf32>, vector<4x8x8xf32>, vector<4x8x8xf32> -> vector<4x8x8xf32>
    "tpu.trace_stop"() : () -> ()
    %24 = vector.extract_strided_slice %7 {offsets = [0, 0, 8], sizes = [4, 8, 8], strides = [1, 1, 1]} : vector<4x8x96xf32> to vector<4x8x8xf32>
    %cst_11 = arith.constant 0.353553385 : f32
    %25 = vector.broadcast %cst_11 : f32 to vector<4x8x8xf32>
    %26 = arith.mulf %24, %25 : vector<4x8x8xf32>
    %27 = vector.extract_strided_slice %7 {offsets = [0, 0, 40], sizes = [4, 8, 8], strides = [1, 1, 1]} : vector<4x8x96xf32> to vector<4x8x8xf32>
    %28 = vector.extract_strided_slice %7 {offsets = [0, 0, 72], sizes = [4, 8, 8], strides = [1, 1, 1]} : vector<4x8x96xf32> to vector<4x8x8xf32>
    "tpu.trace_start"() <{level = 10 : i32, message = "gnd,gmd->gnm"}> : () -> ()
    %cst_12 = arith.constant dense<0.000000e+00> : vector<4x8x8xf32>
    %29 = tpu.matmul %26, %27, %cst_12 {dimension_numbers = #tpu.dot_dimension_numbers<[2], [2], [1], [1], [0, 0, 0, 1, 1, 1], [0], [0]>, precision = #tpu.contract_precision<fp32>} : vector<4x8x8xf32>, vector<4x8x8xf32>, vector<4x8x8xf32> -> vector<4x8x8xf32>
    "tpu.trace_stop"() : () -> ()
    %cst_13 = arith.constant dense<0xFF800000> : vector<4x8xf32>
    %30 = vector.multi_reduction <maximumf>, %29, %cst_13 [2] : vector<4x8x8xf32> to vector<4x8xf32>
    %31 = vector.shape_cast %30 : vector<4x8xf32> to vector<4x8x1xf32>
    %32 = vector.broadcast %31 : vector<4x8x1xf32> to vector<4x8x8xf32>
    %33 = arith.subf %29, %32 : vector<4x8x8xf32>
    %34 = math.exp %33 : vector<4x8x8xf32>
    %cst_14 = arith.constant dense<0.000000e+00> : vector<4x8xf32>
    %35 = vector.multi_reduction <add>, %34, %cst_14 [2] : vector<4x8x8xf32> to vector<4x8xf32>
    %36 = vector.shape_cast %35 : vector<4x8xf32> to vector<4x8x1xf32>
    %37 = vector.broadcast %36 : vector<4x8x1xf32> to vector<4x8x8xf32>
    %38 = arith.divf %34, %37 : vector<4x8x8xf32>
    "tpu.trace_start"() <{level = 10 : i32, message = "gnm,gmd->gnd"}> : () -> ()
    %cst_15 = arith.constant dense<0.000000e+00> : vector<4x8x8xf32>
    %39 = tpu.matmul %38, %28, %cst_15 {dimension_numbers = #tpu.dot_dimension_numbers<[2], [1], [1], [2], [0, 0, 0, 1, 1, 2], [0], [0]>, precision = #tpu.contract_precision<fp32>} : vector<4x8x8xf32>, vector<4x8x8xf32>, vector<4x8x8xf32> -> vector<4x8x8xf32>
    "tpu.trace_stop"() : () -> ()
    %40 = vector.extract_strided_slice %7 {offsets = [0, 0, 16], sizes = [4, 8, 8], strides = [1, 1, 1]} : vector<4x8x96xf32> to vector<4x8x8xf32>
    %cst_16 = arith.constant 0.353553385 : f32
    %41 = vector.broadcast %cst_16 : f32 to vector<4x8x8xf32>
    %42 = arith.mulf %40, %41 : vector<4x8x8xf32>
    %43 = vector.extract_strided_slice %7 {offsets = [0, 0, 48], sizes = [4, 8, 8], strides = [1, 1, 1]} : vector<4x8x96xf32> to vector<4x8x8xf32>
    %44 = vector.extract_strided_slice %7 {offsets = [0, 0, 80], sizes = [4, 8, 8], strides = [1, 1, 1]} : vector<4x8x96xf32> to vector<4x8x8xf32>
    "tpu.trace_start"() <{level = 10 : i32, message = "gnd,gmd->gnm"}> : () -> ()
    %cst_17 = arith.constant dense<0.000000e+00> : vector<4x8x8xf32>
    %45 = tpu.matmul %42, %43, %cst_17 {dimension_numbers = #tpu.dot_dimension_numbers<[2], [2], [1], [1], [0, 0, 0, 1, 1, 1], [0], [0]>, precision = #tpu.contract_precision<fp32>} : vector<4x8x8xf32>, vector<4x8x8xf32>, vector<4x8x8xf32> -> vector<4x8x8xf32>
    "tpu.trace_stop"() : () -> ()
    %cst_18 = arith.constant dense<0xFF800000> : vector<4x8xf32>
    %46 = vector.multi_reduction <maximumf>, %45, %cst_18 [2] : vector<4x8x8xf32> to vector<4x8xf32>
    %47 = vector.shape_cast %46 : vector<4x8xf32> to vector<4x8x1xf32>
    %48 = vector.broadcast %47 : vector<4x8x1xf32> to vector<4x8x8xf32>
    %49 = arith.subf %45, %48 : vector<4x8x8xf32>
    %50 = math.exp %49 : vector<4x8x8xf32>
    %cst_19 = arith.constant dense<0.000000e+00> : vector<4x8xf32>
    %51 = vector.multi_reduction <add>, %50, %cst_19 [2] : vector<4x8x8xf32> to vector<4x8xf32>
    %52 = vector.shape_cast %51 : vector<4x8xf32> to vector<4x8x1xf32>
    %53 = vector.broadcast %52 : vector<4x8x1xf32> to vector<4x8x8xf32>
    %54 = arith.divf %50, %53 : vector<4x8x8xf32>
    "tpu.trace_start"() <{level = 10 : i32, message = "gnm,gmd->gnd"}> : () -> ()
    %cst_20 = arith.constant dense<0.000000e+00> : vector<4x8x8xf32>
    %55 = tpu.matmul %54, %44, %cst_20 {dimension_numbers = #tpu.dot_dimension_numbers<[2], [1], [1], [2], [0, 0, 0, 1, 1, 2], [0], [0]>, precision = #tpu.contract_precision<fp32>} : vector<4x8x8xf32>, vector<4x8x8xf32>, vector<4x8x8xf32> -> vector<4x8x8xf32>
    "tpu.trace_stop"() : () -> ()
    %56 = vector.extract_strided_slice %7 {offsets = [0, 0, 24], sizes = [4, 8, 8], strides = [1, 1, 1]} : vector<4x8x96xf32> to vector<4x8x8xf32>
    %cst_21 = arith.constant 0.353553385 : f32
    %57 = vector.broadcast %cst_21 : f32 to vector<4x8x8xf32>
    %58 = arith.mulf %56, %57 : vector<4x8x8xf32>
    %59 = vector.extract_strided_slice %7 {offsets = [0, 0, 56], sizes = [4, 8, 8], strides = [1, 1, 1]} : vector<4x8x96xf32> to vector<4x8x8xf32>
    %60 = vector.extract_strided_slice %7 {offsets = [0, 0, 88], sizes = [4, 8, 8], strides = [1, 1, 1]} : vector<4x8x96xf32> to vector<4x8x8xf32>
    "tpu.trace_start"() <{level = 10 : i32, message = "gnd,gmd->gnm"}> : () -> ()
    %cst_22 = arith.constant dense<0.000000e+00> : vector<4x8x8xf32>
    %61 = tpu.matmul %58, %59, %cst_22 {dimension_numbers = #tpu.dot_dimension_numbers<[2], [2], [1], [1], [0, 0, 0, 1, 1, 1], [0], [0]>, precision = #tpu.contract_precision<fp32>} : vector<4x8x8xf32>, vector<4x8x8xf32>, vector<4x8x8xf32> -> vector<4x8x8xf32>
    "tpu.trace_stop"() : () -> ()
    %cst_23 = arith.constant dense<0xFF800000> : vector<4x8xf32>
    %62 = vector.multi_reduction <maximumf>, %61, %cst_23 [2] : vector<4x8x8xf32> to vector<4x8xf32>
    %63 = vector.shape_cast %62 : vector<4x8xf32> to vector<4x8x1xf32>
    %64 = vector.broadcast %63 : vector<4x8x1xf32> to vector<4x8x8xf32>
    %65 = arith.subf %61, %64 : vector<4x8x8xf32>
    %66 = math.exp %65 : vector<4x8x8xf32>
    %cst_24 = arith.constant dense<0.000000e+00> : vector<4x8xf32>
    %67 = vector.multi_reduction <add>, %66, %cst_24 [2] : vector<4x8x8xf32> to vector<4x8xf32>
    %68 = vector.shape_cast %67 : vector<4x8xf32> to vector<4x8x1xf32>
    %69 = vector.broadcast %68 : vector<4x8x1xf32> to vector<4x8x8xf32>
    %70 = arith.divf %66, %69 : vector<4x8x8xf32>
    "tpu.trace_start"() <{level = 10 : i32, message = "gnm,gmd->gnd"}> : () -> ()
    %cst_25 = arith.constant dense<0.000000e+00> : vector<4x8x8xf32>
    %71 = tpu.matmul %70, %60, %cst_25 {dimension_numbers = #tpu.dot_dimension_numbers<[2], [1], [1], [2], [0, 0, 0, 1, 1, 2], [0], [0]>, precision = #tpu.contract_precision<fp32>} : vector<4x8x8xf32>, vector<4x8x8xf32>, vector<4x8x8xf32> -> vector<4x8x8xf32>
    "tpu.trace_stop"() : () -> ()
    %72 = tpu.concatenate %23, %39, %55, %71 in 2 : vector<4x8x8xf32>, vector<4x8x8xf32>, vector<4x8x8xf32>, vector<4x8x8xf32> -> vector<4x8x32xf32>
    %73 = vector.shape_cast %72 : vector<4x8x32xf32> to vector<32x32xf32>
    %c0_26 = arith.constant 0 : index
    %c0_27 = arith.constant 0 : index
    %74 = vector.load %arg4[%c0_26, %c0_27] : memref<32x32xf32, #tpu.memory_space<vmem>>, vector<32x32xf32>
    %cst_28 = arith.constant dense<0.000000e+00> : vector<32x32xf32>
    %75 = tpu.matmul %73, %74, %cst_28 {dimension_numbers = #tpu.dot_dimension_numbers<[1], [0], [0], [1], [0, 0, 1, 1], [], []>, precision = #tpu.contract_precision<fp32>} : vector<32x32xf32>, vector<32x32xf32>, vector<32x32xf32> -> vector<32x32xf32>
    %c0_29 = arith.constant 0 : index
    %c0_30 = arith.constant 0 : index
    %76 = vector.load %arg5[%c0_29, %c0_30] : memref<1x32xf32, #tpu.memory_space<vmem>>, vector<1x32xf32>
    %77 = vector.broadcast %76 : vector<1x32xf32> to vector<32x32xf32>
    %78 = arith.addf %75, %77 : vector<32x32xf32>
    %79 = vector.shape_cast %78 : vector<32x32xf32> to vector<4x8x32xf32>
    %c0_31 = arith.constant 0 : index
    %c0_32 = arith.constant 0 : index
    %c0_33 = arith.constant 0 : index
    %80 = vector.load %arg6[%c0_31, %c0_32, %c0_33] : memref<4x8x32xf32, #tpu.memory_space<vmem>>, vector<4x8x32xf32>
    tpu.vector_store %arg6[%c0_31, %c0_32, %c0_33], %79 {strides = array<i32>} : memref<4x8x32xf32, #tpu.memory_space<vmem>>, vector<4x8x32xf32>,
    return
  }
  func.func @transform_0(%arg0: i32) -> (i32, i32, i32) {
    %c0_i32 = arith.constant 0 : i32
    %c0_i32_0 = arith.constant 0 : i32
    %c0_i32_1 = arith.constant 0 : i32
    return %arg0, %c0_i32, %c0_i32_0 : i32, i32, i32
  }
  func.func @transform_1(%arg0: i32) -> (i32, i32) {
    %c0_i32 = arith.constant 0 : i32
    %c0_i32_0 = arith.constant 0 : i32
    %c0_i32_1 = arith.constant 0 : i32
    return %c0_i32, %c0_i32_0 : i32, i32
  }
  func.func @transform_2(%arg0: i32) -> (i32, i32) {
    %c0_i32 = arith.constant 0 : i32
    %c0_i32_0 = arith.constant 0 : i32
    %c0_i32_1 = arith.constant 0 : i32
    return %c0_i32, %c0_i32_0 : i32, i32
  }
  func.func @transform_3(%arg0: i32) -> (i32, i32) {
    %c0_i32 = arith.constant 0 : i32
    %c0_i32_0 = arith.constant 0 : i32
    %c0_i32_1 = arith.constant 0 : i32
    return %c0_i32, %c0_i32_0 : i32, i32
  }
  func.func @transform_4(%arg0: i32) -> (i32, i32) {
    %c0_i32 = arith.constant 0 : i32
    %c0_i32_0 = arith.constant 0 : i32
    %c0_i32_1 = arith.constant 0 : i32
    return %c0_i32, %c0_i32_0 : i32, i32
  }
  func.func @transform_5(%arg0: i32) -> (i32, i32, i32) {
    %c0_i32 = arith.constant 0 : i32
    %c0_i32_0 = arith.constant 0 : i32
    %c0_i32_1 = arith.constant 0 : i32
    return %arg0, %c0_i32, %c0_i32_0 : i32, i32, i32
  }
}

</mosaic_0001>

<bundles_post_ra>
// kernel: tpu_custom_call.1
= control target key start
LH: loop header
LB: loop body
LE: loop exit
PB: predicated region body
PF: predicated region fallthrough
CT: control target
= control target key end

     0   :  { %10 = vsyncpa [#allocation3], 0  ;;  %s20399_s0 = inlined_call_operand.hbm [shape: f32[8,8,32], index: 0, kind: input, shape index: {}]   ;;  %s20400_s1 = inlined_call_operand.hbm [shape: f32[32,96], index: 1, kind: input, shape index: {}]   ;;  %s20401_s2 = inlined_call_operand.vmem [shape: f32[1,96], index: 2, kind: input, shape index: {}]   ;;  %s20402_s3 = inlined_call_operand.hbm [shape: f32[32,32], index: 3, kind: input, shape index: {}]   ;;  %s20403_s4 = inlined_call_operand.vmem [shape: f32[1,32], index: 4, kind: input, shape index: {}]   ;;  %s20404_s5 = inlined_call_operand.hbm [shape: f32[8,8,32], index: 5, kind: output, shape index: {}]  }
   0x1   :  { %12 = vsyncpa [#allocation3 + $0x1], 0 }
   0x2   :  { %13 = vsyncpa [#allocation6], 0 }
   0x3   :  { %14 = vsyncpa [#allocation4], 0 }
   0x4   :  { %16 = vsyncpa [#allocation4 + $0x1], 0  ;;  %s18856_s18 = smov 0   ;;  %s18858_s19 = smov 0  }
   0x5   :  { %s18860_s20 = smov 0   ;;  %s18862_s21 = smov 0  }
   0x6 LB: > { %s18877_s22 = sadd.s32 4294967295, %s18801_s21   ;;  %s16402_s23 = sadd.s32 4294967294, %s18801_s21   ;;  %s18801_s21 = sphi %s18862_s21, %s20424_s21   ;;  %s18797_s20 = sphi %s18860_s20, %s20423_s20   ;;  %s18793_s19 = sphi %s18858_s19, %s20422_s19   ;;  %s18789_s18 = sphi %s18856_s18, %s20421_s18  }
   0x7   : > { %p42_p0 = scmp.ne.s32.totalorder %s18793_s19, %s18789_s18  ;;  %p20405_p1 = scmp.eq.s32.totalorder %s18877_s22, 0 }
   0x8   : > { %p156_p3 = scmp.eq.s32.totalorder %s16402_s23, 1  ;;  %p16403_p5 = scmp.ge.s32.totalorder %s18801_s21, 1 }
   0x9   : > { %p18886_p4 = por %p20405_p1, %p42_p0  ;;  %p163_p7 = scmp.lt.s32.totalorder %s18801_s21, 3 }
   0xa   : > { %p18891_p6 = por %p156_p3, %p42_p0  ;;  %s18803_s27 = smov [#allocation5]  }
   0xb   : > { %s20408_s24 = scalar_select %p18886_p4, 1, 0 }
   0xc   : > { %s20409_s25 = scalar_select %p18891_p6, 1, 0 }
   0xd   : > { %p18896_p8 = pnand %p16403_p5, %p163_p7  ;;  %s175_s28 = sshll.u32 %s18803_s27, 4  ;;  %s18900_s28 = int_to_ptr.vmem [resolvable:$true] %s175_s28 }
   0xe   : > { %s18804_s30 = smov [#allocation7]   ;;  %s18645_s9 = scalar_lea.hbm %s20400_s1, 512 }
   0xf   : > { %p18507_p9 = pneg %p18896_p8  ;;  %s191_s6 = sshll.u32 %s18804_s30, 4  ;;  %s18911_s6 = int_to_ptr.vmem [resolvable:$true] %s191_s6 }
  0x10   : > { %p18646_p12 = scmp.ne.s32.totalorder %s20400_s1, %s18645_s9  ;;  %p18652_p5 = scmp.lt.u32.totalorder %s18645_s9, %s20400_s1 }
  0x11   : > { %p18907_p11 = pnand %p18507_p9, %p20405_p1 }
  0x13   : > { %p18647_p13 = pneg %p18907_p11 }
  0x15   : > { %p18648_p0 = pnand %p18647_p13, %p18646_p12 }
  0x17   : > { %p18649_p3 = pneg %p18648_p0 }
  0x19   : > { %p18654_p7 = pnand %p18652_p5, %p18649_p3 }
  0x1b   : > { %18657 = shalt.err (!%p18654_p7)
}
  0x1c   : > { %s18658_s14 = scalar_lea.vmem %s18900_s28, 512  ;;  %p18666_p2 = scmp.lt.s32.totalorder %s18900_s28, %s18900_s28 }
  0x1d   : > { %p18659_p9 = scmp.ne.s32.totalorder %s18900_s28, %s18658_s14  ;;  %p18667_p12 = scmp.lt.s32.totalorder %s18658_s14, %s18658_s14 }
  0x1f   : > { %p18661_p10 = pnand %p18659_p9, %p18647_p13  ;;  %p18668_p0 = por %p18667_p12, %p18666_p2 }
  0x21   : > { %p18662_p1 = pneg %p18661_p10 }
  0x23   : > { %p18669_p6 = pnand %p18668_p0, %p18662_p1 }
  0x25   : > { %18672 = shalt.err (!%p18669_p6)
}
  0x26   : > { %s18805_s15 = smov 128   ;;  %s18806_s16 = smov 8  }
  0x27   : > { %18510 = dma.hbm_to_vmem [thread:$0]  (!%p18907_p11), %s20400_s1, 512, %s18900_s28, [#allocation6], %s18805_s15, %s18805_s15, %s18806_s16  }
  0x28   : > { %s18673_s7 = scalar_lea.hbm %s20402_s3, 512 }
  0x29   : > { %p18674_p1 = scmp.ne.s32.totalorder %s20402_s3, %s18673_s7  ;;  %p18680_p10 = scmp.lt.u32.totalorder %s18673_s7, %s20402_s3 }
  0x2b   : > { %p18676_p2 = pnand %p18674_p1, %p18647_p13 }
  0x2d   : > { %p18677_p6 = pneg %p18676_p2 }
  0x2f   : > { %p18682_p3 = pnand %p18680_p10, %p18677_p6 }
  0x31   : > { %18685 = shalt.err (!%p18682_p3)
}
  0x32   : > { %s18686_s28 = scalar_lea.vmem %s18911_s6, 512  ;;  %p18694_p12 = scmp.lt.s32.totalorder %s18911_s6, %s18911_s6 }
  0x33   : > { %p18687_p5 = scmp.ne.s32.totalorder %s18911_s6, %s18686_s28  ;;  %p18695_p0 = scmp.lt.s32.totalorder %s18686_s28, %s18686_s28 }
  0x35   : > { %p18689_p7 = pnand %p18687_p5, %p18647_p13  ;;  %p18696_p1 = por %p18695_p0, %p18694_p12 }
  0x37   : > { %p18690_p9 = pneg %p18689_p7 }
  0x39   : > { %p18697_p2 = pnand %p18696_p1, %p18690_p9 }
  0x3b   : > { %18700 = shalt.err (!%p18697_p2)
}
  0x3c   : > { %18513 = dma.hbm_to_vmem [thread:$0]  (!%p18907_p11), %s20402_s3, 512, %s18911_s6, [#allocation6], %s18805_s15, %s18805_s15, %s18806_s16  }
  0x3d   : > { %s18972_s29 = sadd.s32 1, %s18801_s21   ;;  %s29_s14 = sadd.s32 1, %s18797_s20 }
  0x3e   : > { %s26_s17 = ssub.s32 %s18801_s21, %s18972_s29  ;;  %p36_p13 = scmp.ne.s32.totalorder %s18797_s20, %s18793_s19 }
  0x3f   : > { %p27_p6 = scmp.eq.s32.totalorder %s26_s17, 0  ;;  %p37_p10 = scmp.eq.s32.totalorder %s18801_s21, 0 }
  0x40   : > { %p20412_p3 = scmp.eq.s32.totalorder %s18877_s22, 1  ;;  %p18524_p7 = scmp.lt.s32.totalorder %s18801_s21, 2 }
  0x41   : > { %s18988_s27 = scalar_select %p27_p6, %s18797_s20, %s29_s14  }
  0x42   : > { %p18982_p5 = por %p20412_p3, %p36_p13  ;;  %p38_p9 = por %p37_p10, %p36_p13 }
  0x43   : > { %s208_s30 = sand.u32 1, %s18797_s20   ;;  %s16422_s6 = sshll.u32 %s18801_s21, 9 }
  0x44   : > { %s20413_s23 = scalar_select %p18982_p5, 1, 0 }
  0x45   : > { %s16407_s7 = sshll.u32 %s208_s30, 5  ;;  %s18995_s10 = scalar_lea.hbm %s20399_s0, %s16422_s6 }
  0x46   : > { %s212_s11 = scalar_lea.vmem [#allocation2], %s16407_s7  ;;  %p18999_p11 = pnand %p18524_p7, %p38_p9 }
  0x47   : > { %s219_s28 = sshll.u32 %s212_s11, 4  ;;  %s19003_s13 = scalar_lea.sflag [#allocation3], %s208_s30  ;;  %s18997_s28 = int_to_ptr.vmem [resolvable:$true] %s219_s28 }
  0x48   : > { %s18701_s14 = scalar_lea.hbm %s18995_s10, 512  ;;  %p18703_p0 = pneg %p18999_p11 }
  0x49   : > { %p18702_p12 = scmp.ne.s32.totalorder %s18995_s10, %s18701_s14  ;;  %s18706_s6 = scalar_lea.hbm %s20399_s0, 1024 }
  0x4a   : > { %p18707_p13 = scmp.lt.u32.totalorder %s18995_s10, %s20399_s0  ;;  %p18708_p6 = scmp.lt.u32.totalorder %s18706_s6, %s18701_s14 }
  0x4b   : > { %p18704_p1 = pnand %p18703_p0, %p18702_p12  ;;  %p18710_p3 = scmp.lt.u32.totalorder %s18701_s14, %s18995_s10 }
  0x4c   : > { %p18709_p10 = por %p18708_p6, %p18707_p13 }
  0x4d   : > { %p18705_p2 = pneg %p18704_p1 }
  0x4e   : > { %p18711_p7 = por %p18710_p3, %p18709_p10 }
  0x50   : > { %p18712_p9 = pnand %p18711_p7, %p18705_p2 }
  0x52   : > { %18715 = shalt.err (!%p18712_p9)
}
  0x53   : > { %s18716_s30 = scalar_lea.vmem %s18997_s28, 512  ;;  %s18807_s11 = smov [#allocation2]  }
  0x54   : > { %p18717_p12 = scmp.ne.s32.totalorder %s18997_s28, %s18716_s30  ;;  %s18721_s17 = sshll.u32 %s18807_s11, 4  ;;  %s18722_s17 = int_to_ptr.vmem [resolvable:$false] %s18721_s17 }
  0x55   : > { %s18723_s7 = scalar_lea.vmem %s18722_s17, 1024  ;;  %p18724_p4 = scmp.lt.s32.totalorder %s18997_s28, %s18722_s17 }
  0x56   : > { %p18719_p1 = pnand %p18717_p12, %p18703_p0  ;;  %p18725_p13 = scmp.lt.s32.totalorder %s18723_s7, %s18716_s30 }
  0x58   : > { %p18720_p5 = pneg %p18719_p1  ;;  %p18726_p6 = por %p18725_p13, %p18724_p4 }
  0x5a   : > { %p18727_p10 = pnand %p18726_p6, %p18720_p5 }
  0x5c   : > { %18730 = shalt.err (!%p18727_p10)
}
  0x5d   : > { %18517 = dma.hbm_to_vmem [thread:$0]  (!%p18999_p11), %s18995_s10, 512, %s18997_s28, %s19003_s13, %s18805_s15, %s18805_s15, %s18806_s16  }
  0x5e   : > { %231 = sbr.rel (%p18896_p8) target bundleno = 3820 (0xeec), region = 40  ;;  %s19037_s14 = sand.u32 (!%p18896_p8), 1, %s18793_s19  }
  0x5f   : > { %s16411_s6 = sshll.u32 (!%p18896_p8), %s19037_s14, 5  ;;  %s234_s8 = scalar_lea.sflag (!%p18896_p8), [#allocation3], %s19037_s14 }
  0x60   : > { %s237_s12 = scalar_lea.vmem (!%p18896_p8), [#allocation2], %s16411_s6  ;;  %p20415_p4 = scmp.ne.s32.totalorder (!%p18896_p8), %s20408_s24, 0 }
  0x65   : > { %18776 = dma.done.wait (%p20415_p4), %s234_s8, 512  }
  0x66   : > { %18778 = vsyncadd (%p20415_p4), %s234_s8, 4294966784  ;;  %p20416_p5 = scmp.eq.s32.totalorder %s18877_s22, 0 }
  0x68   : > { %18780 = dma.done.wait (%p20416_p5), [#allocation6], 1024   ;;  %p20417_p8 = pmov %p20416_p5 }
  0x69   : > { %vm289_vm0 = vcmask 261120   ;;  %v278_v0 = vld [vmem:[#allocation5] sm:$0xff]  ;;  %v279_v1 = vld [vmem:[#allocation5 + $0x8] sm:$0xff]  ;;  %v280_v2 = vld [vmem:[#allocation5 + $0x10] sm:$0xff]  ;;  %v18808_v60 = vmov 0.0   ;;  %vm18809_vm1 = vmmov 0  }
  0x6a   : > { %18782 = vsyncadd (%p20417_p8), [#allocation6], 4294966272  ;;  %v303_v3 = vand.u32 4294901760, %v278_v0  ;;  %v306_v4 = vand.u32 4294901760, %v279_v1  ;;  %v281_v5 = vld [vmem:[#allocation5 + $0x18] sm:$0xff]  ;;  %v309_v6 = vand.u32 4294901760, %v280_v2  ;;  %16993 = vmatprep.subr.mxu1 %v18808_v60  ;;  %16995 = vmatprep.mubr.msk.f32.mxu1 %vm18809_vm1, %v18808_v60 }
  0x6b   : > { %v274_v7 = vld [vmem:[%s237_s12] sm:$0xff]  ;;  %v275_v8 = vld [vmem:[%s237_s12 + $0x8] sm:$0xff]  ;;  %v312_v9 = vand.u32 4294901760, %v281_v5  ;;  %v276_v12 = vld [vmem:[%s237_s12 + $0x10] sm:$0xff]  ;;  %s18810_s15 = smov 96   ;;  %vm923_vm2 = vcmask 64512  }
  0x6c   : > { %v291_v10 = vsel %vm289_vm0, %v274_v7, 0  ;;  %v294_v11 = vsel %vm289_vm0, %v275_v8, 0  ;;  %v277_v13 = vld [vmem:[%s237_s12 + $0x18] sm:$0xff]  ;;  %v19053_v14 = vpack.c.bf16 %v306_v4, %v303_v3  ;;  %v19059_v17 = vsub.f32 %v278_v0, %v303_v3  ;;  %v16415_v61 = vld [vmem:[%s20401_s2] ss:$0 sm:$0xff]  ;;  %s18811_s16 = smov 64  }
  0x6d   : > { %v19055_v15 = vand.u32 4294901760, %v291_v10  ;;  %v19057_v16 = vand.u32 4294901760, %v294_v11  ;;  %v19061_v18 = vpack.c.bf16 %v312_v9, %v309_v6  ;;  %v19063_v19 = vsub.f32 %v279_v1, %v306_v4  ;;  %s18812_s10 = smov 120   ;;  %s18813_s28 = smov 88  }
  0x6e   : > { %v297_v20 = vsel %vm289_vm0, %v276_v12, 0  ;;  %v300_v21 = vsel %vm289_vm0, %v277_v13, 0  ;;  %18033 = vmatprep.subr.bf16.mxu0 %v19053_v14  ;;  %v414_v24 = vand.u32 4294901760, %v19059_v17  ;;  %v427_v28 = vsub.f32 %v280_v2, %v309_v6  ;;  %s18814_s13 = smov 56   ;;  %s18815_s9 = smov 112  }
  0x6f   : > { %v19069_v22 = vsub.f32 %v291_v10, %v19055_v15  ;;  %v19072_v23 = vsub.f32 %v294_v11, %v19057_v16  ;;  %v19075_v25 = vand.u32 4294901760, %v297_v20  ;;  %18035 = vmatpush3.bf16.msra.mxu0 %v19053_v14  ;;  %v421_v26 = vand.u32 4294901760, %v19063_v19  ;;  %s18816_s30 = smov 80   ;;  %s18817_s11 = smov 48  }
  0x70   : > { %v19079_v27 = vand.u32 4294901760, %v300_v21  ;;  %v434_v29 = vsub.f32 %v281_v5, %v312_v9  ;;  %18037 = vmatprep.subr.bf16.mxu0 %v19061_v18  ;;  %v415_v32 = vsub.f32 %v19059_v17, %v414_v24  ;;  %v428_v36 = vand.u32 4294901760, %v427_v28  ;;  %s18818_s17 = smov 104   ;;  %s18819_s7 = smov 72  }
  0x71   : > { %v373_v30 = vand.u32 4294901760, %v19069_v22  ;;  %v383_v31 = vand.u32 4294901760, %v19072_v23  ;;  %v392_v33 = vsub.f32 %v297_v20, %v19075_v25  ;;  %v422_v34 = vsub.f32 %v19063_v19, %v421_v26  ;;  %s18820_s8 = smov 40   ;;  %s18821_s12 = smov 8  }
  0x72   : > { %v402_v35 = vsub.f32 %v300_v21, %v19079_v27  ;;  %v435_v37 = vand.u32 4294901760, %v434_v29  ;;  %v416_v40 = vand.u32 4294901760, %v415_v32  ;;  %v429_v44 = vsub.f32 %v427_v28, %v428_v36  ;;  %s18822_s24 = smov 16   ;;  %s18823_s26 = smov 24  }
  0x73   : > { %v374_v38 = vsub.f32 %v19069_v22, %v373_v30  ;;  %v384_v39 = vsub.f32 %v19072_v23, %v383_v31  ;;  %v393_v41 = vand.u32 4294901760, %v392_v33  ;;  %18039 = vmatpush3.bf16.msra.mxu0 %v19061_v18  ;;  %v423_v42 = vand.u32 4294901760, %v422_v34  ;;  %p20418_p0 = scmp.ne.s32.totalorder %s20413_s23, 0 }
  0x74   : > { %v403_v43 = vand.u32 4294901760, %v402_v35  ;;  %v436_v45 = vsub.f32 %v434_v29, %v435_v37  ;;  %v430_v51 = vand.u32 4294901760, %v429_v44  ;;  %v18048_v56 = vpack.c.bf16 %v19063_v19, %v19059_v17 }
  0x75   : > { %v375_v46 = vand.u32 4294901760, %v374_v38  ;;  %v385_v47 = vand.u32 4294901760, %v384_v39  ;;  %v394_v48 = vsub.f32 %v392_v33, %v393_v41  ;;  %v18040_v49 = vpack.c.bf16 %v423_v42, %v416_v40 }
  0x76   : > { %v404_v50 = vsub.f32 %v402_v35, %v403_v43  ;;  %v437_v52 = vand.u32 4294901760, %v436_v45  ;;  %v18052_v57 = vpack.c.bf16 %v434_v29, %v427_v28  ;;  %v18064_v58 = vpack.c.bf16 %v421_v26, %v414_v24 }
  0x77   : > { %16912 = vmatprep.mubr.f32.mxu0 %v375_v46  ;;  %v395_v53 = vand.u32 4294901760, %v394_v48  ;;  %18041 = vmatprep.subr.bf16.mxu0 %v18040_v49  ;;  %v18068_v59 = vpack.c.bf16 %v435_v37, %v428_v36  ;;  %vm15645_vm3 = vcmask 130048   ;;  %vm15650_vm4 = vcmask 195584  }
  0x78   : > { %16913 = vmatmul.mubr.f32.vlgmr.msra.gmra.mrb[0].mxu0 %v385_v47  ;;  %v405_v54 = vand.u32 4294901760, %v404_v50  ;;  %v18044_v55 = vpack.c.bf16 %v437_v52, %v430_v51 }
  0x79   : > { %18043 = vmatpush3.bf16.msra.mxu0 %v18040_v49  ;;  %16915 = vmatprep.mubr.f32.mxu0 %v395_v53 }
  0x7a   : > { %18045 = vmatprep.subr.bf16.mxu0 %v18044_v55 }
  0x7c   : > { %16916 = vmatmul.mubr.f32.gmra.mrb[2].mxu0 %v405_v54 }
  0x7d   : > { %18047 = vmatpush3.bf16.msra.mxu0 %v18044_v55  ;;  %16926 = vmatprep.mubr.f32.mxu0 %v19055_v15 }
  0x7e   : > { %18049 = vmatprep.subr.bf16.mxu0 %v18048_v56 }
  0x80   : > { %16927 = vmatmul.mubr.f32.vlgmr.msra.gmra.mrb[0].mxu0 %v19057_v16 }
  0x81   : > { %18051 = vmatpush3.bf16.msra.mxu0 %v18048_v56  ;;  %16929 = vmatprep.mubr.f32.mxu0 %v19075_v25 }
  0x82   : > { %18053 = vmatprep.subr.bf16.mxu0 %v18052_v57 }
  0x84   : > { %16930 = vmatmul.mubr.f32.gmra.mrb[2].mxu0 %v19079_v27 }
  0x85   : > { %18055 = vmatpush3.bf16.msra.mxu0 %v18052_v57  ;;  %16940 = vmatprep.mubr.f32.mxu0 %v19069_v22 }
  0x86   : > { %18057 = vmatprep.subr.bf16.mxu0 %v19053_v14 }
  0x88   : > { %16941 = vmatmul.mubr.f32.vlgmr.msra.gmra.mrb[0].mxu0 %v19072_v23 }
  0x89   : > { %18059 = vmatpush3.bf16.msra.mxu0 %v19053_v14  ;;  %16943 = vmatprep.mubr.f32.mxu0 %v392_v33 }
  0x8a   : > { %18061 = vmatprep.subr.bf16.mxu0 %v19061_v18 }
  0x8c   : > { %16944 = vmatmul.mubr.f32.gmra.mrb[2].mxu0 %v402_v35 }
  0x8d   : > { %18063 = vmatpush3.bf16.msra.mxu0 %v19061_v18  ;;  %16954 = vmatprep.mubr.f32.mxu0 %v373_v30 }
  0x8e   : > { %18065 = vmatprep.subr.bf16.mxu0 %v18064_v58 }
  0x90   : > { %16955 = vmatmul.mubr.f32.vlgmr.msra.gmra.mrb[0].mxu0 %v383_v31 }
  0x91   : > { %18067 = vmatpush3.bf16.msra.mxu0 %v18064_v58  ;;  %16957 = vmatprep.mubr.f32.mxu0 %v393_v41 }
  0x92   : > { %18069 = vmatprep.subr.bf16.mxu0 %v18068_v59 }
  0x94   : > { %16958 = vmatmul.mubr.f32.gmra.mrb[2].mxu0 %v403_v43 }
  0x95   : > { %18071 = vmatpush3.bf16.msra.mxu0 %v18068_v59  ;;  %16968 = vmatprep.mubr.f32.mxu0 %v19055_v15 }
  0x96   : > { %18073 = vmatprep.subr.bf16.mxu0 %v19053_v14 }
  0x98   : > { %16969 = vmatmul.mubr.f32.vlgmr.msra.gmra.mrb[0].mxu0 %v19057_v16 }
  0x99   : > { %18075 = vmatpush3.bf16.msra.mxu0 %v19053_v14  ;;  %16971 = vmatprep.mubr.f32.mxu0 %v19075_v25 }
  0x9a   : > { %18077 = vmatprep.subr.bf16.mxu0 %v19061_v18 }
  0x9c   : > { %16972 = vmatmul.mubr.f32.gmra.mrb[2].mxu0 %v19079_v27 }
  0x9d   : > { %18079 = vmatpush3.bf16.msra.mxu0 %v19061_v18  ;;  %16982 = vmatprep.mubr.f32.mxu0 %v19055_v15 }
  0x9e   : > { %16988 = vmatprep.subr.mxu0 %v18808_v60 }
  0xa0   : > { %16983 = vmatmul.mubr.f32.vlgmr.msra.gmra.mrb[0].mxu0 %v19057_v16 }
  0xa1   : > { %16985 = vmatprep.mubr.f32.mxu0 %v19075_v25 }
  0xa4   : > { %16986 = vmatmul.mubr.f32.gmra.mrb[2].mxu0 %v19079_v27 }
  0xa5   : > { %16990 = vmatprep.mubr.msk.f32.mxu0 %vm18809_vm1, %v18808_v60 }
 0x173   : > { %v16984_v62 = vpop.f32.mrb[0].mxu0 }
 0x174   : > { %v894_v63 = vpop.f32.mrb[1].mxu0  ;;  %v19127_v3 = vadd.f32 %v16984_v62, %v16415_v61 }
 0x175   : > { %v19124_v0 = vadd.f32 %v16415_v61, %v894_v63 }
 0x176   : > { %v19176_v35 = vmul.f32 0.35355338, %v19127_v3 }
 0x177   : > { %v16987_v1 = vpop.f32.mrb[2].mxu0  ;;  %921 = vrot.lane.b32.xlu0 %v19124_v0, %s18810_s15  ;;  %v19137_v6 = vmul.f32 0.35355338, %v19124_v0 }
 0x178   : > { %v906_v2 = vpop.f32.mrb[3].mxu0  ;;  %v19133_v5 = vadd.f32 %v16987_v1, %v16415_v61  ;;  %v1379_v37 = vsel %vm923_vm2, %v19176_v35, 0 }
 0x179   : > { %v19129_v4 = vadd.f32 %v16415_v61, %v906_v2  ;;  %v925_v7 = vsel %vm923_vm2, %v19137_v6, 0  ;;  %v1449_v39 = vand.u32 4294901760, %v1379_v37 }
 0x17a   : > { %v19141_v8 = vand.u32 4294901760, %v925_v7  ;;  %v19144_v9 = vmul.f32 0.35355338, %v19133_v5 }
 0x17b   : > { %1830 = vrot.lane.b32.xlu1 %v19129_v4, %s18810_s15  ;;  %1376 = vrot.lane.b32.xlu0 %v19127_v3, %s18810_s15  ;;  %v1450_v41 = vsub.f32 %v1379_v37, %v1449_v39  ;;  %v19215_v49 = vmul.f32 0.35355338, %v19129_v4 }
 0x17c   : > { %v996_v10 = vsub.f32 %v925_v7, %v19141_v8  ;;  %v2287_v11 = vsel %vm923_vm2, %v19144_v9, 0 }
 0x17d   : > { %v19149_v13 = vand.u32 4294901760, %v2287_v11  ;;  %v1451_v43 = vand.u32 4294901760, %v1450_v41  ;;  %v1833_v50 = vsel %vm923_vm2, %v19215_v49, 0 }
 0x17e   : > { %v997_v12 = vand.u32 4294901760, %v996_v10  ;;  %v1903_v52 = vand.u32 4294901760, %v1833_v50 }
 0x17f   : > { %2284 = vrot.lane.b32.xlu1 %v19133_v5, %s18810_s15  ;;  %v2358_v17 = vsub.f32 %v2287_v11, %v19149_v13  ;;  %v1452_v45 = vsub.f32 %v1450_v41, %v1451_v43 }
 0x180   : > { %v998_v16 = vsub.f32 %v996_v10, %v997_v12  ;;  %v1904_v54 = vsub.f32 %v1833_v50, %v1903_v52 }
 0x181   : > { %v2359_v22 = vand.u32 4294901760, %v2358_v17  ;;  %v1453_v47 = vand.u32 4294901760, %v1452_v45 }
 0x182   : > { %v999_v21 = vand.u32 4294901760, %v998_v16  ;;  %v1905_v56 = vand.u32 4294901760, %v1904_v54 }
 0x183   : > { %v2360_v27 = vsub.f32 %v2358_v17, %v2359_v22 }
 0x184   : > { %v1906_v58 = vsub.f32 %v1904_v54, %v1905_v56 }
 0x185   : > { %v2361_v31 = vand.u32 4294901760, %v2360_v27 }
 0x186   : > { %v1907_v61 = vand.u32 4294901760, %v1906_v58 }
 0x1e9   : > { %v922_v14 = vpop.permute.xlu0 %921 }
 0x1ea   : > { %v927_v15 = vsel %vm923_vm2, %v922_v14, 0 }
 0x1eb   : > { %v930_v18 = vand.u32 4294901760, %v927_v15 }
 0x1ed   : > { %v1007_v19 = vsub.f32 %v927_v15, %v930_v18  ;;  %v19153_v20 = vpop.permute.xlu1 %1830  ;;  %16989 = vmatpush3.xpose.msra.mxu0 %v930_v18  ;;  %v1377_v36 = vpop.permute.xlu0 %1376 }
 0x1ee   : > { %17078 = vmatprep.subr.mxu0 %v18808_v60  ;;  %v1381_v38 = vsel %vm923_vm2, %v1377_v36, 0  ;;  %v1835_v51 = vsel %vm923_vm2, %v19153_v20, 0 }
 0x1ef   : > { %v1008_v23 = vand.u32 4294901760, %v1007_v19  ;;  %v1384_v40 = vand.u32 4294901760, %v1381_v38  ;;  %v1838_v53 = vand.u32 4294901760, %v1835_v51 }
 0x1f0   : > { %16991 = vmatmul.mubr.f32.vlgmr.msra.gmra.mrb[4].mxu0 %v999_v21 }
 0x1f1   : > { %v2285_v24 = vpop.permute.xlu1 %2284  ;;  %v1009_v25 = vsub.f32 %v1007_v19, %v1008_v23  ;;  %17080 = vmatprep.mubr.msk.f32.mxu0 %vm18809_vm1, %v18808_v60  ;;  %v1461_v42 = vsub.f32 %v1381_v38, %v1384_v40  ;;  %v1915_v55 = vsub.f32 %v1835_v51, %v1838_v53 }
 0x1f2   : > { %v2289_v26 = vsel %vm923_vm2, %v2285_v24, 0 }
 0x1f3   : > { %v2292_v28 = vand.u32 4294901760, %v2289_v26  ;;  %v1010_v29 = vand.u32 4294901760, %v1009_v25  ;;  %v1462_v44 = vand.u32 4294901760, %v1461_v42  ;;  %v1916_v57 = vand.u32 4294901760, %v1915_v55 }
 0x1f5   : > { %v2369_v30 = vsub.f32 %v2289_v26, %v2292_v28  ;;  %16994 = vmatpush3.xpose.msra.mxu1 %v1010_v29  ;;  %17079 = vmatpush3.xpose.msra.mxu0 %v2292_v28  ;;  %v1463_v46 = vsub.f32 %v1461_v42, %v1462_v44  ;;  %v1917_v59 = vsub.f32 %v1915_v55, %v1916_v57 }
 0x1f6   : > { %16998 = vmatprep.subr.mxu1 %v18808_v60  ;;  %17083 = vmatprep.subr.mxu0 %v18808_v60 }
 0x1f7   : > { %v2370_v32 = vand.u32 4294901760, %v2369_v30  ;;  %v1464_v48 = vand.u32 4294901760, %v1463_v46  ;;  %v1918_v62 = vand.u32 4294901760, %v1917_v59 }
 0x1f8   : > { %16996 = vmatmul.mubr.f32.vlgmr.msra.gmra.mrb[0].mxu1 %v19141_v8  ;;  %17081 = vmatmul.mubr.f32.vlgmr.msra.gmra.mrb[6].mxu0 %v2361_v31 }
 0x1f9   : > { %v2371_v33 = vsub.f32 %v2369_v30, %v2370_v32  ;;  %16999 = vmatpush3.xpose.msra.mxu1 %v1007_v19  ;;  %17000 = vmatprep.mubr.msk.f32.mxu1 %vm18809_vm1, %v18808_v60 }
 0x1fa   : > { %17003 = vmatprep.subr.mxu1 %v18808_v60  ;;  %17085 = vmatprep.mubr.msk.f32.mxu0 %vm18809_vm1, %v18808_v60 }
 0x1fb   : > { %v2372_v34 = vand.u32 4294901760, %v2371_v33 }
 0x1fd   : > { %17084 = vmatpush3.xpose.msra.mxu0 %v2372_v34 }
 0x1fe   : > { %17088 = vmatprep.subr.mxu0 %v18808_v60 }
 0x200   : > { %17001 = vmatmul.mubr.f32.vlgmr.msra.gmra.mrb[0].mxu1 %v996_v10  ;;  %17086 = vmatmul.mubr.f32.vlgmr.msra.gmra.mrb[6].mxu0 %v19149_v13 }
 0x201   : > { %17004 = vmatpush3.xpose.msra.mxu1 %v930_v18  ;;  %17089 = vmatpush3.xpose.msra.mxu0 %v2369_v30 }
 0x202   : > { %17005 = vmatprep.mubr.msk.f32.mxu1 %vm18809_vm1, %v18808_v60  ;;  %17008 = vmatprep.subr.mxu1 %v18808_v60 }
 0x203   : > { %17090 = vmatprep.mubr.msk.f32.mxu0 %vm18809_vm1, %v18808_v60  ;;  %17093 = vmatprep.subr.mxu0 %v18808_v60 }
 0x208   : > { %17006 = vmatmul.mubr.f32.vlgmr.msra.gmra.mrb[0].mxu1 %v997_v12  ;;  %17091 = vmatmul.mubr.f32.vlgmr.msra.gmra.mrb[6].mxu0 %v2358_v17 }
 0x209   : > { %17009 = vmatpush3.xpose.msra.mxu1 %v1008_v23  ;;  %17094 = vmatpush3.xpose.msra.mxu0 %v2292_v28 }
 0x20a   : > { %17010 = vmatprep.mubr.msk.f32.mxu1 %vm18809_vm1, %v18808_v60  ;;  %17013 = vmatprep.subr.mxu1 %v18808_v60 }
 0x20b   : > { %17095 = vmatprep.mubr.msk.f32.mxu0 %vm18809_vm1, %v18808_v60  ;;  %17098 = vmatprep.subr.mxu0 %v18808_v60 }
 0x210   : > { %17011 = vmatmul.mubr.f32.vlgmr.msra.gmra.mrb[0].mxu1 %v19141_v8  ;;  %17096 = vmatmul.mubr.f32.vlgmr.msra.gmra.mrb[6].mxu0 %v2359_v22 }
 0x211   : > { %17014 = vmatpush3.xpose.msra.mxu1 %v930_v18  ;;  %17099 = vmatpush3.xpose.msra.mxu0 %v2370_v32 }
 0x212   : > { %17015 = vmatprep.mubr.msk.f32.mxu1 %vm18809_vm1, %v18808_v60  ;;  %17018 = vmatprep.subr.mxu1 %v18808_v60 }
 0x213   : > { %17100 = vmatprep.mubr.msk.f32.mxu0 %vm18809_vm1, %v18808_v60  ;;  %17103 = vmatprep.subr.mxu0 %v18808_v60 }
 0x218   : > { %17016 = vmatmul.mubr.f32.vlgmr.msra.gmra.mrb[0].mxu1 %v19141_v8  ;;  %17101 = vmatmul.mubr.f32.vlgmr.msra.gmra.mrb[6].mxu0 %v19149_v13 }
 0x219   : > { %17019 = vmatpush3.xpose.msra.mxu1 %v1384_v40  ;;  %17104 = vmatpush3.xpose.msra.mxu0 %v2292_v28 }
 0x21a   : > { %17020 = vmatprep.mubr.msk.f32.mxu1 %vm18809_vm1, %v18808_v60  ;;  %17023 = vmatprep.subr.mxu1 %v18808_v60 }
 0x21b   : > { %17105 = vmatprep.mubr.msk.f32.mxu0 %vm18809_vm1, %v18808_v60  ;;  %17138 = vmatprep.subr.mxu0 %v18808_v60 }
 0x21c   : > { %17021 = vmatmul.mubr.f32.vlgmr.msra.gmra.mrb[2].mxu1 %v1453_v47 }
 0x21d   : > { %17024 = vmatpush3.xpose.msra.mxu1 %v1464_v48  ;;  %17025 = vmatprep.mubr.msk.f32.mxu1 %vm18809_vm1, %v18808_v60 }
 0x21e   : > { %17028 = vmatprep.subr.mxu1 %v18808_v60 }
 0x220   : > { %17106 = vmatmul.mubr.f32.vlgmr.msra.gmra.mrb[6].mxu0 %v19149_v13 }
 0x221   : > { %17140 = vmatprep.mubr.msk.f32.mxu0 %vm18809_vm1, %v18808_v60 }
 0x224   : > { %17026 = vmatmul.mubr.f32.vlgmr.msra.gmra.mrb[2].mxu1 %v1449_v39 }
 0x225   : > { %17029 = vmatpush3.xpose.msra.mxu1 %v1461_v42  ;;  %17030 = vmatprep.mubr.msk.f32.mxu1 %vm18809_vm1, %v18808_v60 }
 0x226   : > { %17033 = vmatprep.subr.mxu1 %v18808_v60 }
 0x22c   : > { %17031 = vmatmul.mubr.f32.vlgmr.msra.gmra.mrb[2].mxu1 %v1450_v41 }
 0x22d   : > { %17034 = vmatpush3.xpose.msra.mxu1 %v1384_v40  ;;  %17035 = vmatprep.mubr.msk.f32.mxu1 %vm18809_vm1, %v18808_v60 }
 0x22e   : > { %17038 = vmatprep.subr.mxu1 %v18808_v60 }
 0x234   : > { %17036 = vmatmul.mubr.f32.vlgmr.msra.gmra.mrb[2].mxu1 %v1451_v43 }
 0x235   : > { %17039 = vmatpush3.xpose.msra.mxu1 %v1462_v44  ;;  %17040 = vmatprep.mubr.msk.f32.mxu1 %vm18809_vm1, %v18808_v60 }
 0x236   : > { %17043 = vmatprep.subr.mxu1 %v18808_v60 }
 0x23c   : > { %17041 = vmatmul.mubr.f32.vlgmr.msra.gmra.mrb[2].mxu1 %v1449_v39 }
 0x23d   : > { %17044 = vmatpush3.xpose.msra.mxu1 %v1384_v40  ;;  %17045 = vmatprep.mubr.msk.f32.mxu1 %vm18809_vm1, %v18808_v60 }
 0x23e   : > { %17048 = vmatprep.subr.mxu1 %v18808_v60 }
 0x244   : > { %17046 = vmatmul.mubr.f32.vlgmr.msra.gmra.mrb[2].mxu1 %v1449_v39 }
 0x245   : > { %17049 = vmatpush3.xpose.msra.mxu1 %v1838_v53  ;;  %17050 = vmatprep.mubr.msk.f32.mxu1 %vm18809_vm1, %v18808_v60 }
 0x246   : > { %17053 = vmatprep.subr.mxu1 %v18808_v60 }
 0x248   : > { %17051 = vmatmul.mubr.f32.vlgmr.msra.gmra.mrb[4].mxu1 %v1907_v61 }
 0x249   : > { %17054 = vmatpush3.xpose.msra.mxu1 %v1918_v62  ;;  %17055 = vmatprep.mubr.msk.f32.mxu1 %vm18809_vm1, %v18808_v60 }
 0x24a   : > { %17058 = vmatprep.subr.mxu1 %v18808_v60 }
 0x250   : > { %17056 = vmatmul.mubr.f32.vlgmr.msra.gmra.mrb[4].mxu1 %v1903_v52 }
 0x251   : > { %17059 = vmatpush3.xpose.msra.mxu1 %v1915_v55  ;;  %17060 = vmatprep.mubr.msk.f32.mxu1 %vm18809_vm1, %v18808_v60 }
 0x252   : > { %17063 = vmatprep.subr.mxu1 %v18808_v60 }
 0x258   : > { %17061 = vmatmul.mubr.f32.vlgmr.msra.gmra.mrb[4].mxu1 %v1904_v54 }
 0x259   : > { %17064 = vmatpush3.xpose.msra.mxu1 %v1838_v53  ;;  %17065 = vmatprep.mubr.msk.f32.mxu1 %vm18809_vm1, %v18808_v60 }
 0x25a   : > { %17068 = vmatprep.subr.mxu1 %v18808_v60 }
 0x260   : > { %17066 = vmatmul.mubr.f32.vlgmr.msra.gmra.mrb[4].mxu1 %v1905_v56 }
 0x261   : > { %17069 = vmatpush3.xpose.msra.mxu1 %v1916_v57  ;;  %17070 = vmatprep.mubr.msk.f32.mxu1 %vm18809_vm1, %v18808_v60 }
 0x262   : > { %17073 = vmatprep.subr.mxu1 %v18808_v60 }
 0x268   : > { %17071 = vmatmul.mubr.f32.vlgmr.msra.gmra.mrb[4].mxu1 %v1903_v52 }
 0x269   : > { %17074 = vmatpush3.xpose.msra.mxu1 %v1838_v53  ;;  %17075 = vmatprep.mubr.msk.f32.mxu1 %vm18809_vm1, %v18808_v60 }
 0x26a   : > { %17108 = vmatprep.subr.mxu1 %v18808_v60 }
 0x270   : > { %17076 = vmatmul.mubr.f32.vlgmr.msra.gmra.mrb[4].mxu1 %v1903_v52 }
 0x271   : > { %17110 = vmatprep.mubr.msk.f32.mxu1 %vm18809_vm1, %v18808_v60 }
 0x2c3   : > { %v1001_v63 = vpop.f32.mrb[4].mxu0 }
 0x2c4   : > { %v16992_v1 = vpop.f32.mrb[5].mxu0 }
 0x2eb   : > { %v1371_v2 = vpop.f32.mrb[0].mxu1 }
 0x2ec   : > { %v18132_v7 = vadd.f32 %v1371_v2, %v1001_v63  ;;  %v17017_v8 = vpop.f32.mrb[1].mxu1 }
 0x2ee   : > { %v2737_v10 = vsel %vm923_vm2, %v18132_v7, -inf }
 0x2ef   : > { %2738 = vmax.xlane.f32.xlu0 %v2737_v10 }
 0x2f3   : > { %v2733_v11 = vpop.f32.mrb[6].mxu0 }
 0x2f4   : > { %v17107_v12 = vpop.f32.mrb[7].mxu0  ;;  %v2746_v19 = vsel %vm923_vm2, %v2733_v11, -inf }
 0x317   : > { %v1825_v13 = vpop.f32.mrb[2].mxu1 }
 0x318   : > { %v17047_v14 = vpop.f32.mrb[3].mxu1  ;;  %v2740_v15 = vsel %vm923_vm2, %v1825_v13, -inf }
 0x319   : > { %2741 = vmax.xlane.f32.xlu1 %v2740_v15 }
 0x343   : > { %v2279_v16 = vpop.f32.mrb[4].mxu1 }
 0x344   : > { %v17077_v17 = vpop.f32.mrb[5].mxu1  ;;  %v2743_v18 = vsel %vm923_vm2, %v2279_v16, -inf }
 0x345   : > { %2744 = vmax.xlane.f32.xlu0 %v2743_v18 }
 0x349   : > { %2747 = vmax.xlane.f32.xlu0 %v2746_v19 }
 0x37c   : > { %v2739_v20 = vpop.xlane.xlu0 %2738 }
 0x37d   : > { %v2749_v21 = vsub.f32 %v18132_v7, %v2739_v20 }
 0x37f   : > { %v2753_v22 = vmul.f32 1.442695, %v2749_v21 }
 0x381   : > { %18581 = vpow2.f32 %v2753_v22 }
 0x38b   : > { %v18582_v23 = vpop.eup %18581 }
 0x38c   : > { %v2761_v24 = vsel %vm923_vm2, %v18582_v23, 0.0 }
 0x38d   : > { %2762 = vadd.xlane.f32.xlu1 %v2761_v24 }
 0x39e   : > { %2781 = vrot.lane.b32.xlu1 %v19124_v0, %s18811_s16 }
 0x3a6   : > { %v2742_v25 = vpop.xlane.xlu1 %2741 }
 0x3a7   : > { %v2750_v26 = vsub.f32 %v1825_v13, %v2742_v25 }
 0x3a9   : > { %v2755_v27 = vmul.f32 1.442695, %v2750_v26 }
 0x3ab   : > { %18583 = vpow2.f32 %v2755_v27 }
 0x3b5   : > { %v19254_v28 = vpop.eup %18583 }
 0x3b6   : > { %v2764_v29 = vsel %vm923_vm2, %v19254_v28, 0.0 }
 0x3b7   : > { %2765 = vadd.xlane.f32.xlu0 %v2764_v29 }
 0x3cd   : > { %3233 = vrot.lane.b32.xlu0 %v19127_v3, %s18811_s16 }
 0x3d2   : > { %v2745_v30 = vpop.xlane.xlu0 %2744 }
 0x3d3   : > { %v2751_v31 = vsub.f32 %v2279_v16, %v2745_v30 }
 0x3d5   : > { %v2757_v32 = vmul.f32 1.442695, %v2751_v31 }
 0x3d6   : > { %v2748_v33 = vpop.xlane.xlu0 %2747 }
 0x3d7   : > { %18585 = vpow2.f32 %v2757_v32  ;;  %v2752_v34 = vsub.f32 %v2733_v11, %v2748_v33 }
 0x3d9   : > { %v2759_v36 = vmul.f32 1.442695, %v2752_v34 }
 0x3db   : > { %18587 = vpow2.f32 %v2759_v36 }
 0x3e1   : > { %v19260_v37 = vpop.eup %18585 }
 0x3e2   : > { %v2767_v38 = vsel %vm923_vm2, %v19260_v37, 0.0 }
 0x3e3   : > { %2768 = vadd.xlane.f32.xlu1 %v2767_v38 }
 0x3e5   : > { %v19264_v39 = vpop.eup %18587 }
 0x3e6   : > { %v2770_v40 = vsel %vm923_vm2, %v19264_v39, 0.0 }
 0x3ec   : > { %2771 = vadd.xlane.f32.xlu0 %v2770_v40 }
 0x3f4   : > { %3685 = vrot.lane.b32.xlu1 %v19129_v4, %s18811_s16 }
 0x3f8   : > { %4589 = vrot.lane.b32.xlu1 %v19137_v6, %s18812_s10 }
 0x3fc   : > { %5043 = vrot.lane.b32.xlu1 %v19176_v35, %s18812_s10 }
 0x400   : > { %5045 = vrot.lane.b32.xlu1 %v19127_v3, %s18813_s28 }
 0x402   : > { %4137 = vrot.lane.b32.xlu0 %v19133_v5, %s18811_s16 }
 0x404   : > { %5951 = vrot.lane.b32.xlu1 %v19144_v9, %s18812_s10 }
 0x406   : > { %4591 = vrot.lane.b32.xlu0 %v19124_v0, %s18813_s28 }
 0x408   : > { %5953 = vrot.lane.b32.xlu1 %v19133_v5, %s18813_s28 }
 0x40a   : > { %5497 = vrot.lane.b32.xlu0 %v19215_v49, %s18812_s10  ;;  %s271_s10 = scalar_lea.vmem [#allocation8], %s16411_s6 }
 0x40e   : > { %5499 = vrot.lane.b32.xlu0 %v19129_v4, %s18813_s28  ;;  %s16310_s28 = sshll.u32 %s271_s10, 4  ;;  %s20347_s28 = int_to_ptr.vmem [resolvable:$true] %s16310_s28 }
 0x41a   : > { %v2763_v41 = vpop.xlane.xlu1 %2762 }
 0x41b   : > { %18589 = vrcp.f32 %v2763_v41 }
 0x41e   : > { %v2782_v42 = vpop.permute.xlu1 %2781 }
 0x41f   : > { %v2788_v43 = vand.u32 4294901760, %v2782_v42 }
 0x421   : > { %17109 = vmatpush3.msra.mxu1 %v2788_v43  ;;  %v2865_v46 = vsub.f32 %v2782_v42, %v2788_v43 }
 0x422   : > { %17113 = vmatprep.subr.mxu1 %v18808_v60 }
 0x423   : > { %v2866_v50 = vand.u32 4294901760, %v2865_v46 }
 0x425   : > { %v18590_v44 = vpop.eup %18589  ;;  %v2867_v53 = vsub.f32 %v2865_v46, %v2866_v50 }
 0x426   : > { %v2774_v45 = vmul.f32 %v18590_v44, %v18582_v23 }
 0x427   : > { %v2868_v56 = vand.u32 4294901760, %v2867_v53 }
 0x428   : > { %v2785_v47 = vsel %vm923_vm2, %v2774_v45, 0 }
 0x429   : > { %v2853_v48 = vand.u32 4294901760, %v2785_v47 }
 0x42b   : > { %v2854_v51 = vsub.f32 %v2785_v47, %v2853_v48 }
 0x42d   : > { %v2855_v52 = vand.u32 4294901760, %v2854_v51 }
 0x42f   : > { %v2856_v54 = vsub.f32 %v2854_v51, %v2855_v52 }
 0x431   : > { %v2857_v55 = vand.u32 4294901760, %v2856_v54 }
 0x433   : > { %17111 = vmatmul.mubr.f32.vlgmr.msra.gmra.mrb[6].mxu1 %v2857_v55 }
 0x434   : > { %17114 = vmatpush3.msra.mxu1 %v2868_v56  ;;  %17115 = vmatprep.mubr.msk.f32.mxu1 %vm18809_vm1, %v18808_v60 }
 0x435   : > { %17118 = vmatprep.subr.mxu1 %v18808_v60 }
 0x43b   : > { %17116 = vmatmul.mubr.f32.vlgmr.msra.gmra.mrb[6].mxu1 %v2853_v48 }
 0x43c   : > { %17119 = vmatpush3.msra.mxu1 %v2865_v46  ;;  %17120 = vmatprep.mubr.msk.f32.mxu1 %vm18809_vm1, %v18808_v60 }
 0x43d   : > { %17123 = vmatprep.subr.mxu1 %v18808_v60 }
 0x443   : > { %17121 = vmatmul.mubr.f32.vlgmr.msra.gmra.mrb[6].mxu1 %v2854_v51 }
 0x444   : > { %17124 = vmatpush3.msra.mxu1 %v2788_v43  ;;  %v2766_v57 = vpop.xlane.xlu0 %2765  ;;  %17125 = vmatprep.mubr.msk.f32.mxu1 %vm18809_vm1, %v18808_v60 }
 0x445   : > { %18591 = vrcp.f32 %v2766_v57  ;;  %17128 = vmatprep.subr.mxu1 %v18808_v60 }
 0x448   : > { %v3234_v58 = vpop.permute.xlu0 %3233 }
 0x449   : > { %v3240_v59 = vand.u32 4294901760, %v3234_v58 }
 0x44b   : > { %17126 = vmatmul.mubr.f32.vlgmr.msra.gmra.mrb[6].mxu1 %v2855_v52  ;;  %17139 = vmatpush3.msra.mxu0 %v3240_v59  ;;  %v3317_v63 = vsub.f32 %v3234_v58, %v3240_v59 }
 0x44c   : > { %17129 = vmatpush3.msra.mxu1 %v2866_v50  ;;  %17130 = vmatprep.mubr.msk.f32.mxu1 %vm18809_vm1, %v18808_v60 }
 0x44d   : > { %17133 = vmatprep.subr.mxu1 %v18808_v60  ;;  %17143 = vmatprep.subr.mxu0 %v18808_v60  ;;  %v3318_v7 = vand.u32 4294901760, %v3317_v63 }
 0x44f   : > { %v18592_v61 = vpop.eup %18591  ;;  %v3319_v11 = vsub.f32 %v3317_v63, %v3318_v7 }
 0x450   : > { %v2776_v62 = vmul.f32 %v18592_v61, %v19254_v28 }
 0x451   : > { %v3320_v14 = vand.u32 4294901760, %v3319_v11 }
 0x452   : > { %v3237_v1 = vsel %vm923_vm2, %v2776_v62, 0 }
 0x453   : > { %17131 = vmatmul.mubr.f32.vlgmr.msra.gmra.mrb[6].mxu1 %v2853_v48  ;;  %v3305_v2 = vand.u32 4294901760, %v3237_v1 }
 0x454   : > { %17134 = vmatpush3.msra.mxu1 %v2788_v43  ;;  %17135 = vmatprep.mubr.msk.f32.mxu1 %vm18809_vm1, %v18808_v60 }
 0x455   : > { %v3306_v8 = vsub.f32 %v3237_v1, %v3305_v2  ;;  %17168 = vmatprep.subr.mxu1 %v18808_v60 }
 0x457   : > { %v3307_v10 = vand.u32 4294901760, %v3306_v8 }
 0x459   : > { %v3308_v12 = vsub.f32 %v3306_v8, %v3307_v10 }
 0x45b   : > { %17136 = vmatmul.mubr.f32.vlgmr.msra.gmra.mrb[6].mxu1 %v2853_v48  ;;  %v3309_v13 = vand.u32 4294901760, %v3308_v12 }
 0x45c   : > { %17170 = vmatprep.mubr.msk.f32.mxu1 %vm18809_vm1, %v18808_v60 }
 0x45d   : > { %17141 = vmatmul.mubr.f32.vlgmr.msra.gmra.mrb[8].mxu0 %v3309_v13 }
 0x45e   : > { %17144 = vmatpush3.msra.mxu0 %v3320_v14  ;;  %17145 = vmatprep.mubr.msk.f32.mxu0 %vm18809_vm1, %v18808_v60 }
 0x45f   : > { %17148 = vmatprep.subr.mxu0 %v18808_v60 }
 0x465   : > { %17146 = vmatmul.mubr.f32.vlgmr.msra.gmra.mrb[8].mxu0 %v3305_v2 }
 0x466   : > { %17149 = vmatpush3.msra.mxu0 %v3317_v63  ;;  %17150 = vmatprep.mubr.msk.f32.mxu0 %vm18809_vm1, %v18808_v60 }
 0x467   : > { %17153 = vmatprep.subr.mxu0 %v18808_v60 }
 0x46d   : > { %17151 = vmatmul.mubr.f32.vlgmr.msra.gmra.mrb[8].mxu0 %v3306_v8 }
 0x46e   : > { %17154 = vmatpush3.msra.mxu0 %v3240_v59  ;;  %17155 = vmatprep.mubr.msk.f32.mxu0 %vm18809_vm1, %v18808_v60 }
 0x46f   : > { %17158 = vmatprep.subr.mxu0 %v18808_v60 }
 0x470   : > { %v2769_v15 = vpop.xlane.xlu1 %2768 }
 0x471   : > { %18593 = vrcp.f32 %v2769_v15 }
 0x474   : > { %v3686_v16 = vpop.permute.xlu1 %3685 }
 0x475   : > { %v19311_v17 = vand.u32 4294901760, %v3686_v16  ;;  %17156 = vmatmul.mubr.f32.vlgmr.msra.gmra.mrb[8].mxu0 %v3307_v10 }
 0x476   : > { %17159 = vmatpush3.msra.mxu0 %v3318_v7  ;;  %17160 = vmatprep.mubr.msk.f32.mxu0 %vm18809_vm1, %v18808_v60 }
 0x477   : > { %17169 = vmatpush3.msra.mxu1 %v19311_v17  ;;  %17163 = vmatprep.subr.mxu0 %v18808_v60  ;;  %v3769_v21 = vsub.f32 %v3686_v16, %v19311_v17 }
 0x478   : > { %17173 = vmatprep.subr.mxu1 %v18808_v60  ;;  %v4590_v46 = vpop.permute.xlu1 %4589 }
 0x479   : > { %v2772_v18 = vpop.xlane.xlu0 %2771  ;;  %v3770_v25 = vand.u32 4294901760, %v3769_v21  ;;  %v4593_v48 = vsel %vm923_vm2, %v4590_v46, 0 }
 0x47a   : > { %18595 = vrcp.f32 %v2772_v18  ;;  %v19361_v52 = vand.u32 4294901760, %v4593_v48 }
 0x47b   : > { %v18594_v19 = vpop.eup %18593  ;;  %v3771_v30 = vsub.f32 %v3769_v21, %v3770_v25 }
 0x47c   : > { %v2778_v20 = vmul.f32 %v18594_v19, %v19260_v37  ;;  %v5044_v51 = vpop.permute.xlu1 %5043  ;;  %v19371_v54 = vsub.f32 %v4593_v48, %v19361_v52 }
 0x47d   : > { %17161 = vmatmul.mubr.f32.vlgmr.msra.gmra.mrb[8].mxu0 %v3305_v2  ;;  %v4138_v23 = vpop.permute.xlu0 %4137  ;;  %v3772_v37 = vand.u32 4294901760, %v3771_v30  ;;  %v5047_v57 = vsel %vm923_vm2, %v5044_v51, 0 }
 0x47e   : > { %17164 = vmatpush3.msra.mxu0 %v3240_v59  ;;  %17165 = vmatprep.mubr.msk.f32.mxu0 %vm18809_vm1, %v18808_v60  ;;  %v3689_v22 = vsel %vm923_vm2, %v2778_v20, 0  ;;  %v19327_v27 = vand.u32 4294901760, %v4138_v23  ;;  %v4665_v58 = vand.u32 4294901760, %v19371_v54  ;;  %v19387_v62 = vand.u32 4294901760, %v5047_v57 }
 0x47f   : > { %17198 = vmatprep.subr.mxu0 %v18808_v60  ;;  %v19324_v24 = vand.u32 4294901760, %v3689_v22 }
 0x480   : > { %v4221_v33 = vsub.f32 %v4138_v23, %v19327_v27  ;;  %v5046_v55 = vpop.permute.xlu1 %5045  ;;  %v4666_v1 = vsub.f32 %v19371_v54, %v4665_v58  ;;  %v19395_v7 = vsub.f32 %v5047_v57, %v19387_v62 }
 0x481   : > { %v3758_v26 = vsub.f32 %v3689_v22, %v19324_v24  ;;  %v4592_v47 = vpop.permute.xlu0 %4591  ;;  %v5049_v59 = vsel %vm923_vm2, %v5046_v55, 0 }
 0x482   : > { %v4222_v40 = vand.u32 4294901760, %v4221_v33  ;;  %v4595_v50 = vsel %vm923_vm2, %v4592_v47, 0  ;;  %v19390_v63 = vand.u32 4294901760, %v5049_v59  ;;  %v4667_v10 = vand.u32 4294901760, %v4666_v1 }
 0x483   : > { %v3759_v28 = vand.u32 4294901760, %v3758_v26  ;;  %v19364_v53 = vand.u32 4294901760, %v4595_v50  ;;  %v5119_v12 = vand.u32 4294901760, %v19395_v7 }
 0x484   : > { %v18596_v29 = vpop.eup %18595  ;;  %v4223_v42 = vsub.f32 %v4221_v33, %v4222_v40  ;;  %v19399_v8 = vsub.f32 %v5049_v59, %v19390_v63  ;;  %v5952_v22 = vpop.permute.xlu1 %5951 }
 0x485   : > { %v2780_v31 = vmul.f32 %v18596_v29, %v19264_v39  ;;  %17166 = vmatmul.mubr.f32.vlgmr.msra.gmra.mrb[8].mxu0 %v3305_v2  ;;  %v3760_v32 = vsub.f32 %v3758_v26, %v3759_v28  ;;  %v19374_v56 = vsub.f32 %v4595_v50, %v19364_v53  ;;  %v5120_v14 = vsub.f32 %v19395_v7, %v5119_v12  ;;  %v5498_v18 = vpop.permute.xlu0 %5497 }
 0x486   : > { %17199 = vmatpush3.msra.mxu0 %v19327_v27  ;;  %17200 = vmatprep.mubr.msk.f32.mxu0 %vm18809_vm1, %v18808_v60  ;;  %v4224_v45 = vand.u32 4294901760, %v4223_v42  ;;  %v5130_v13 = vand.u32 4294901760, %v19399_v8  ;;  %v5501_v20 = vsel %vm923_vm2, %v5498_v18, 0 }
 0x487   : > { %v3761_v34 = vand.u32 4294901760, %v3760_v32  ;;  %17203 = vmatprep.subr.mxu0 %v18808_v60  ;;  %v4141_v36 = vsel %vm923_vm2, %v2780_v31, 0  ;;  %v4676_v61 = vand.u32 4294901760, %v19374_v56  ;;  %v5121_v16 = vand.u32 4294901760, %v5120_v14 }
 0x488   : > { %v19336_v38 = vand.u32 4294901760, %v4141_v36  ;;  %v5131_v15 = vsub.f32 %v19399_v8, %v5130_v13  ;;  %v19444_v23 = vand.u32 4294901760, %v5501_v20 }
 0x489   : > { %17171 = vmatmul.mubr.f32.vlgmr.msra.gmra.mrb[8].mxu1 %v3761_v34  ;;  %v4677_v2 = vsub.f32 %v19374_v56, %v4676_v61  ;;  %v5500_v19 = vpop.permute.xlu0 %5499 }
 0x48a   : > { %17174 = vmatpush3.msra.mxu1 %v3772_v37  ;;  %17175 = vmatprep.mubr.msk.f32.mxu1 %vm18809_vm1, %v18808_v60  ;;  %v4210_v39 = vsub.f32 %v4141_v36, %v19336_v38 }
 0x48b   : > { %17178 = vmatprep.subr.mxu1 %v18808_v60  ;;  %v4678_v11 = vand.u32 4294901760, %v4677_v2 }
 0x48c   : > { %v4211_v41 = vand.u32 4294901760, %v4210_v39 }
 0x48e   : > { %v4212_v43 = vsub.f32 %v4210_v39, %v4211_v41 }
 0x490   : > { %v4213_v44 = vand.u32 4294901760, %v4212_v43 }
 0x491   : > { %17176 = vmatmul.mubr.f32.vlgmr.msra.gmra.mrb[8].mxu1 %v19324_v24 }
 0x492   : > { %17179 = vmatpush3.msra.mxu1 %v3769_v21  ;;  %17180 = vmatprep.mubr.msk.f32.mxu1 %vm18809_vm1, %v18808_v60  ;;  %v5503_v21 = vsel %vm923_vm2, %v5500_v19, 0 }
 0x493   : > { %17201 = vmatmul.mubr.f32.vlgmr.msra.gmra.mrb[10].mxu0 %v4213_v44  ;;  %17183 = vmatprep.subr.mxu1 %v18808_v60 }
 0x494   : > { %17204 = vmatpush3.msra.mxu0 %v4224_v45  ;;  %17205 = vmatprep.mubr.msk.f32.mxu0 %vm18809_vm1, %v18808_v60 }
 0x495   : > { %17208 = vmatprep.subr.mxu0 %v18808_v60 }
 0x499   : > { %17181 = vmatmul.mubr.f32.vlgmr.msra.gmra.mrb[8].mxu1 %v3758_v26  ;;  %v5954_v26 = vpop.permute.xlu1 %5953 }
 0x49a   : > { %17184 = vmatpush3.msra.mxu1 %v19311_v17  ;;  %17185 = vmatprep.mubr.msk.f32.mxu1 %vm18809_vm1, %v18808_v60  ;;  %v5957_v30 = vsel %vm923_vm2, %v5954_v26, 0 }
 0x49b   : > { %17206 = vmatmul.mubr.f32.vlgmr.msra.gmra.mrb[10].mxu0 %v19336_v38  ;;  %17188 = vmatprep.subr.mxu1 %v18808_v60 }
 0x49c   : > { %17209 = vmatpush3.msra.mxu0 %v4221_v33  ;;  %17210 = vmatprep.mubr.msk.f32.mxu0 %vm18809_vm1, %v18808_v60  ;;  %v19468_v33 = vand.u32 4294901760, %v5957_v30 }
 0x49d   : > { %17213 = vmatprep.subr.mxu0 %v18808_v60 }
 0x4a1   : > { %17186 = vmatmul.mubr.f32.vlgmr.msra.gmra.mrb[8].mxu1 %v3759_v28  ;;  %v5955_v28 = vsel %vm923_vm2, %v5952_v22, 0 }
 0x4a2   : > { %17189 = vmatpush3.msra.mxu1 %v3770_v25  ;;  %17190 = vmatprep.mubr.msk.f32.mxu1 %vm18809_vm1, %v18808_v60  ;;  %v5572_v25 = vsub.f32 %v5501_v20, %v19444_v23  ;;  %v19465_v32 = vand.u32 4294901760, %v5955_v28 }
 0x4a3   : > { %17211 = vmatmul.mubr.f32.vlgmr.msra.gmra.mrb[10].mxu0 %v4210_v39  ;;  %17193 = vmatprep.subr.mxu1 %v18808_v60 }
 0x4a4   : > { %17214 = vmatpush3.msra.mxu0 %v19327_v27  ;;  %17215 = vmatprep.mubr.msk.f32.mxu0 %vm18809_vm1, %v18808_v60  ;;  %v5573_v29 = vand.u32 4294901760, %v5572_v25  ;;  %v6026_v37 = vsub.f32 %v5955_v28, %v19465_v32 }
 0x4a5   : > { %17218 = vmatprep.subr.mxu0 %v18808_v60 }
 0x4a6   : > { %v5574_v34 = vsub.f32 %v5572_v25, %v5573_v29 }
 0x4a9   : > { %17191 = vmatmul.mubr.f32.vlgmr.msra.gmra.mrb[8].mxu1 %v19324_v24 }
 0x4aa   : > { %17194 = vmatpush3.msra.mxu1 %v19311_v17  ;;  %17195 = vmatprep.mubr.msk.f32.mxu1 %vm18809_vm1, %v18808_v60  ;;  %v5132_v17 = vand.u32 4294901760, %v5131_v15 }
 0x4ab   : > { %17216 = vmatmul.mubr.f32.vlgmr.msra.gmra.mrb[10].mxu0 %v4211_v41  ;;  %17228 = vmatprep.subr.mxu1 %v18808_v60  ;;  %v6027_v41 = vand.u32 4294901760, %v6026_v37 }
 0x4ac   : > { %17219 = vmatpush3.msra.mxu0 %v4222_v40  ;;  %17220 = vmatprep.mubr.msk.f32.mxu0 %vm18809_vm1, %v18808_v60  ;;  %v5575_v40 = vand.u32 4294901760, %v5574_v34 }
 0x4ad   : > { %17223 = vmatprep.subr.mxu0 %v18808_v60  ;;  %v6028_v43 = vsub.f32 %v6026_v37, %v6027_v41 }
 0x4af   : > { %v6029_v45 = vand.u32 4294901760, %v6028_v43 }
 0x4b1   : > { %17196 = vmatmul.mubr.f32.vlgmr.msra.gmra.mrb[8].mxu1 %v19324_v24  ;;  %v19448_v24 = vand.u32 4294901760, %v5503_v21 }
 0x4b2   : > { %17229 = vmatpush3.xpose.msra.mxu1 %v19364_v53  ;;  %17230 = vmatprep.mubr.msk.f32.mxu1 %vm18809_vm1, %v18808_v60 }
 0x4b3   : > { %17221 = vmatmul.mubr.f32.vlgmr.msra.gmra.mrb[10].mxu0 %v19336_v38  ;;  %17233 = vmatprep.subr.mxu1 %v18808_v60 }
 0x4b4   : > { %17224 = vmatpush3.msra.mxu0 %v19327_v27  ;;  %17225 = vmatprep.mubr.msk.f32.mxu0 %vm18809_vm1, %v18808_v60  ;;  %v5583_v27 = vsub.f32 %v5503_v21, %v19448_v24 }
 0x4b5   : > { %17231 = vmatmul.mubr.f32.vlgmr.msra.gmra.mrb[10].mxu1 %v4667_v10  ;;  %17258 = vmatprep.subr.mxu0 %v18808_v60 }
 0x4b6   : > { %17234 = vmatpush3.xpose.msra.mxu1 %v4678_v11  ;;  %17235 = vmatprep.mubr.msk.f32.mxu1 %vm18809_vm1, %v18808_v60  ;;  %v5584_v31 = vand.u32 4294901760, %v5583_v27 }
 0x4b7   : > { %17238 = vmatprep.subr.mxu1 %v18808_v60 }
 0x4b8   : > { %v5585_v36 = vsub.f32 %v5583_v27, %v5584_v31 }
 0x4ba   : > { %v5586_v39 = vand.u32 4294901760, %v5585_v36 }
 0x4bb   : > { %17226 = vmatmul.mubr.f32.vlgmr.msra.gmra.mrb[10].mxu0 %v19336_v38  ;;  %v6037_v38 = vsub.f32 %v5957_v30, %v19468_v33 }
 0x4bc   : > { %17259 = vmatpush3.xpose.msra.mxu0 %v19390_v63  ;;  %17260 = vmatprep.mubr.msk.f32.mxu0 %vm18809_vm1, %v18808_v60 }
 0x4bd   : > { %17236 = vmatmul.mubr.f32.vlgmr.msra.gmra.mrb[10].mxu1 %v19361_v52  ;;  %17263 = vmatprep.subr.mxu0 %v18808_v60  ;;  %v6038_v42 = vand.u32 4294901760, %v6037_v38 }
 0x4be   : > { %17239 = vmatpush3.xpose.msra.mxu1 %v19374_v56  ;;  %17240 = vmatprep.mubr.msk.f32.mxu1 %vm18809_vm1, %v18808_v60 }
 0x4bf   : > { %17261 = vmatmul.mubr.f32.vlgmr.msra.gmra.mrb[12].mxu0 %v5121_v16  ;;  %17243 = vmatprep.subr.mxu1 %v18808_v60  ;;  %v6039_v44 = vsub.f32 %v6037_v38, %v6038_v42 }
 0x4c0   : > { %17264 = vmatpush3.xpose.msra.mxu0 %v5132_v17  ;;  %17265 = vmatprep.mubr.msk.f32.mxu0 %vm18809_vm1, %v18808_v60 }
 0x4c1   : > { %17268 = vmatprep.subr.mxu0 %v18808_v60  ;;  %v6040_v46 = vand.u32 4294901760, %v6039_v44 }
 0x4c5   : > { %17241 = vmatmul.mubr.f32.vlgmr.msra.gmra.mrb[10].mxu1 %v19371_v54 }
 0x4c6   : > { %17244 = vmatpush3.xpose.msra.mxu1 %v19364_v53  ;;  %17245 = vmatprep.mubr.msk.f32.mxu1 %vm18809_vm1, %v18808_v60 }
 0x4c7   : > { %17266 = vmatmul.mubr.f32.vlgmr.msra.gmra.mrb[12].mxu0 %v19387_v62  ;;  %17248 = vmatprep.subr.mxu1 %v18808_v60 }
 0x4c8   : > { %17269 = vmatpush3.xpose.msra.mxu0 %v19399_v8  ;;  %17270 = vmatprep.mubr.msk.f32.mxu0 %vm18809_vm1, %v18808_v60 }
 0x4c9   : > { %17273 = vmatprep.subr.mxu0 %v18808_v60 }
 0x4cd   : > { %17246 = vmatmul.mubr.f32.vlgmr.msra.gmra.mrb[10].mxu1 %v4665_v58 }
 0x4ce   : > { %17249 = vmatpush3.xpose.msra.mxu1 %v4676_v61  ;;  %17250 = vmatprep.mubr.msk.f32.mxu1 %vm18809_vm1, %v18808_v60 }
 0x4cf   : > { %17271 = vmatmul.mubr.f32.vlgmr.msra.gmra.mrb[12].mxu0 %v19395_v7  ;;  %17253 = vmatprep.subr.mxu1 %v18808_v60 }
 0x4d0   : > { %17274 = vmatpush3.xpose.msra.mxu0 %v19390_v63  ;;  %17275 = vmatprep.mubr.msk.f32.mxu0 %vm18809_vm1, %v18808_v60 }
 0x4d1   : > { %17278 = vmatprep.subr.mxu0 %v18808_v60 }
 0x4d5   : > { %17251 = vmatmul.mubr.f32.vlgmr.msra.gmra.mrb[10].mxu1 %v19361_v52 }
 0x4d6   : > { %17254 = vmatpush3.xpose.msra.mxu1 %v19364_v53  ;;  %17255 = vmatprep.mubr.msk.f32.mxu1 %vm18809_vm1, %v18808_v60 }
 0x4d7   : > { %17276 = vmatmul.mubr.f32.vlgmr.msra.gmra.mrb[12].mxu0 %v5119_v12  ;;  %17288 = vmatprep.subr.mxu1 %v18808_v60 }
 0x4d8   : > { %17279 = vmatpush3.xpose.msra.mxu0 %v5130_v13  ;;  %17280 = vmatprep.mubr.msk.f32.mxu0 %vm18809_vm1, %v18808_v60 }
 0x4d9   : > { %17283 = vmatprep.subr.mxu0 %v18808_v60 }
 0x4dd   : > { %17256 = vmatmul.mubr.f32.vlgmr.msra.gmra.mrb[10].mxu1 %v19361_v52 }
 0x4de   : > { %17289 = vmatpush3.xpose.msra.mxu1 %v19448_v24  ;;  %17290 = vmatprep.mubr.msk.f32.mxu1 %vm18809_vm1, %v18808_v60 }
 0x4df   : > { %17281 = vmatmul.mubr.f32.vlgmr.msra.gmra.mrb[12].mxu0 %v19387_v62  ;;  %17293 = vmatprep.subr.mxu1 %v18808_v60 }
 0x4e0   : > { %17284 = vmatpush3.xpose.msra.mxu0 %v19390_v63  ;;  %17285 = vmatprep.mubr.msk.f32.mxu0 %vm18809_vm1, %v18808_v60 }
 0x4e1   : > { %17291 = vmatmul.mubr.f32.vlgmr.msra.gmra.mrb[12].mxu1 %v5575_v40  ;;  %17318 = vmatprep.subr.mxu0 %v18808_v60 }
 0x4e2   : > { %17294 = vmatpush3.xpose.msra.mxu1 %v5586_v39  ;;  %17295 = vmatprep.mubr.msk.f32.mxu1 %vm18809_vm1, %v18808_v60 }
 0x4e3   : > { %17298 = vmatprep.subr.mxu1 %v18808_v60 }
 0x4e7   : > { %17286 = vmatmul.mubr.f32.vlgmr.msra.gmra.mrb[12].mxu0 %v19387_v62 }
 0x4e8   : > { %17319 = vmatpush3.xpose.msra.mxu0 %v19468_v33  ;;  %17320 = vmatprep.mubr.msk.f32.mxu0 %vm18809_vm1, %v18808_v60 }
 0x4e9   : > { %17296 = vmatmul.mubr.f32.vlgmr.msra.gmra.mrb[12].mxu1 %v19444_v23  ;;  %17323 = vmatprep.subr.mxu0 %v18808_v60 }
 0x4ea   : > { %17299 = vmatpush3.xpose.msra.mxu1 %v5583_v27  ;;  %17300 = vmatprep.mubr.msk.f32.mxu1 %vm18809_vm1, %v18808_v60 }
 0x4eb   : > { %17321 = vmatmul.mubr.f32.vlgmr.msra.gmra.mrb[14].mxu0 %v6029_v45  ;;  %17303 = vmatprep.subr.mxu1 %v18808_v60 }
 0x4ec   : > { %17324 = vmatpush3.xpose.msra.mxu0 %v6040_v46  ;;  %17325 = vmatprep.mubr.msk.f32.mxu0 %vm18809_vm1, %v18808_v60 }
 0x4ed   : > { %17328 = vmatprep.subr.mxu0 %v18808_v60 }
 0x4f1   : > { %17301 = vmatmul.mubr.f32.vlgmr.msra.gmra.mrb[12].mxu1 %v5572_v25 }
 0x4f2   : > { %17304 = vmatpush3.xpose.msra.mxu1 %v19448_v24  ;;  %17305 = vmatprep.mubr.msk.f32.mxu1 %vm18809_vm1, %v18808_v60 }
 0x4f3   : > { %17326 = vmatmul.mubr.f32.vlgmr.msra.gmra.mrb[14].mxu0 %v19465_v32  ;;  %17308 = vmatprep.subr.mxu1 %v18808_v60 }
 0x4f4   : > { %17329 = vmatpush3.xpose.msra.mxu0 %v6037_v38  ;;  %17330 = vmatprep.mubr.msk.f32.mxu0 %vm18809_vm1, %v18808_v60 }
 0x4f5   : > { %17333 = vmatprep.subr.mxu0 %v18808_v60 }
 0x4f9   : > { %17306 = vmatmul.mubr.f32.vlgmr.msra.gmra.mrb[12].mxu1 %v5573_v29 }
 0x4fa   : > { %17309 = vmatpush3.xpose.msra.mxu1 %v5584_v31  ;;  %17310 = vmatprep.mubr.msk.f32.mxu1 %vm18809_vm1, %v18808_v60 }
 0x4fb   : > { %17331 = vmatmul.mubr.f32.vlgmr.msra.gmra.mrb[14].mxu0 %v6026_v37  ;;  %17313 = vmatprep.subr.mxu1 %v18808_v60 }
 0x4fc   : > { %17334 = vmatpush3.xpose.msra.mxu0 %v19468_v33  ;;  %17335 = vmatprep.mubr.msk.f32.mxu0 %vm18809_vm1, %v18808_v60 }
 0x4fd   : > { %17338 = vmatprep.subr.mxu0 %v18808_v60 }
 0x501   : > { %17311 = vmatmul.mubr.f32.vlgmr.msra.gmra.mrb[12].mxu1 %v19444_v23 }
 0x502   : > { %17314 = vmatpush3.xpose.msra.mxu1 %v19448_v24  ;;  %17315 = vmatprep.mubr.msk.f32.mxu1 %vm18809_vm1, %v18808_v60 }
 0x503   : > { %17336 = vmatmul.mubr.f32.vlgmr.msra.gmra.mrb[14].mxu0 %v6027_v41  ;;  %17348 = vmatprep.subr.mxu1 %v18808_v60 }
 0x504   : > { %17339 = vmatpush3.xpose.msra.mxu0 %v6038_v42  ;;  %17340 = vmatprep.mubr.msk.f32.mxu0 %vm18809_vm1, %v18808_v60 }
 0x505   : > { %17343 = vmatprep.subr.mxu0 %v18808_v60 }
 0x509   : > { %17316 = vmatmul.mubr.f32.vlgmr.msra.gmra.mrb[12].mxu1 %v19444_v23 }
 0x50a   : > { %17350 = vmatprep.mubr.msk.f32.mxu1 %vm18809_vm1, %v18808_v60 }
 0x50b   : > { %17341 = vmatmul.mubr.f32.vlgmr.msra.gmra.mrb[14].mxu0 %v19465_v32 }
 0x50c   : > { %17344 = vmatpush3.xpose.msra.mxu0 %v19468_v33  ;;  %17345 = vmatprep.mubr.msk.f32.mxu0 %vm18809_vm1, %v18808_v60 }
 0x50d   : > { %17378 = vmatprep.subr.mxu0 %v18808_v60 }
 0x513   : > { %17346 = vmatmul.mubr.f32.vlgmr.msra.gmra.mrb[14].mxu0 %v19465_v32 }
 0x514   : > { %17380 = vmatprep.mubr.msk.f32.mxu0 %vm18809_vm1, %v18808_v60 }
 0x52e   : > { %v19531_v47 = vpop.f32.mrb[6].mxu1 }
 0x52f   : > { %v17137_v48 = vpop.f32.mrb[7].mxu1 }
 0x558   : > { %v19533_v50 = vpop.f32.mrb[8].mxu0 }
 0x559   : > { %v17167_v51 = vpop.f32.mrb[9].mxu0 }
 0x584   : > { %v19535_v52 = vpop.f32.mrb[8].mxu1 }
 0x585   : > { %v17197_v53 = vpop.f32.mrb[9].mxu1 }
 0x58e   : > { %v19537_v54 = vpop.f32.mrb[10].mxu0 }
 0x58f   : > { %v17227_v55 = vpop.f32.mrb[11].mxu0 }
 0x5b0   : > { %v5039_v56 = vpop.f32.mrb[10].mxu1 }
 0x5b1   : > { %v17257_v57 = vpop.f32.mrb[11].mxu1  ;;  %v6405_v58 = vsel %vm923_vm2, %v5039_v56, -inf }
 0x5b2   : > { %6406 = vmax.xlane.f32.xlu0 %v6405_v58 }
 0x5ba   : > { %v5493_v59 = vpop.f32.mrb[12].mxu0 }
 0x5bb   : > { %v17287_v61 = vpop.f32.mrb[13].mxu0  ;;  %v6408_v62 = vsel %vm923_vm2, %v5493_v59, -inf }
 0x5bc   : > { %6409 = vmax.xlane.f32.xlu1 %v6408_v62 }
 0x5dc   : > { %v5947_v63 = vpop.f32.mrb[12].mxu1 }
 0x5dd   : > { %v17317_v1 = vpop.f32.mrb[13].mxu1  ;;  %v6411_v2 = vsel %vm923_vm2, %v5947_v63, -inf }
 0x5de   : > { %6412 = vmax.xlane.f32.xlu0 %v6411_v2 }
 0x5e6   : > { %v6401_v7 = vpop.f32.mrb[14].mxu0 }
 0x5e7   : > { %v17347_v8 = vpop.f32.mrb[15].mxu0  ;;  %v6414_v10 = vsel %vm923_vm2, %v6401_v7, -inf }
 0x5e8   : > { %6415 = vmax.xlane.f32.xlu0 %v6414_v10 }
 0x63f   : > { %v6407_v11 = vpop.xlane.xlu0 %6406 }
 0x640   : > { %v6417_v12 = vsub.f32 %v5039_v56, %v6407_v11 }
 0x642   : > { %v6421_v13 = vmul.f32 1.442695, %v6417_v12 }
 0x644   : > { %18597 = vpow2.f32 %v6421_v13 }
 0x649   : > { %v6410_v14 = vpop.xlane.xlu1 %6409 }
 0x64a   : > { %v6418_v15 = vsub.f32 %v5493_v59, %v6410_v14 }
 0x64c   : > { %v6423_v16 = vmul.f32 1.442695, %v6418_v15 }
 0x64e   : > { %v18598_v17 = vpop.eup %18597  ;;  %18599 = vpow2.f32 %v6423_v16 }
 0x64f   : > { %v6429_v18 = vsel %vm923_vm2, %v18598_v17, 0.0 }
 0x650   : > { %6430 = vadd.xlane.f32.xlu1 %v6429_v18 }
 0x658   : > { %v18600_v19 = vpop.eup %18599 }
 0x659   : > { %v6432_v20 = vsel %vm923_vm2, %v18600_v19, 0.0 }
 0x65a   : > { %6433 = vadd.xlane.f32.xlu0 %v6432_v20 }
 0x661   : > { %6449 = vrot.lane.b32.xlu1 %v19124_v0, %s18814_s13 }
 0x66b   : > { %v6413_v21 = vpop.xlane.xlu0 %6412 }
 0x66c   : > { %v6419_v22 = vsub.f32 %v5947_v63, %v6413_v21 }
 0x66e   : > { %v6425_v23 = vmul.f32 1.442695, %v6419_v22 }
 0x670   : > { %6901 = vrot.lane.b32.xlu0 %v19127_v3, %s18814_s13  ;;  %18601 = vpow2.f32 %v6425_v23 }
 0x675   : > { %v6416_v24 = vpop.xlane.xlu0 %6415 }
 0x676   : > { %v6420_v25 = vsub.f32 %v6401_v7, %v6416_v24 }
 0x678   : > { %v6427_v26 = vmul.f32 1.442695, %v6420_v25 }
 0x67a   : > { %v19547_v27 = vpop.eup %18601  ;;  %18603 = vpow2.f32 %v6427_v26 }
 0x67b   : > { %v6435_v28 = vsel %vm923_vm2, %v19547_v27, 0.0 }
 0x684   : > { %v19551_v29 = vpop.eup %18603 }
 0x685   : > { %6436 = vadd.xlane.f32.xlu1 %v6435_v28  ;;  %v6438_v30 = vsel %vm923_vm2, %v19551_v29, 0.0 }
 0x68f   : > { %6439 = vadd.xlane.f32.xlu0 %v6438_v30 }
 0x696   : > { %7353 = vrot.lane.b32.xlu1 %v19129_v4, %s18814_s13 }
 0x69a   : > { %8257 = vrot.lane.b32.xlu1 %v19137_v6, %s18815_s9 }
 0x69e   : > { %8711 = vrot.lane.b32.xlu1 %v19176_v35, %s18815_s9 }
 0x6a2   : > { %8713 = vrot.lane.b32.xlu1 %v19127_v3, %s18816_s30 }
 0x6a5   : > { %7805 = vrot.lane.b32.xlu0 %v19133_v5, %s18814_s13  ;;  %s16423_s13 = sshll.u32 %s18877_s22, 9  ;;  %s16297_s22 = scalar_lea.sflag [#allocation4], %s19037_s14 }
 0x6a6   : > { %9619 = vrot.lane.b32.xlu1 %v19144_v9, %s18815_s9 }
 0x6a9   : > { %8259 = vrot.lane.b32.xlu0 %v19124_v0, %s18816_s30 }
 0x6aa   : > { %9621 = vrot.lane.b32.xlu1 %v19133_v5, %s18816_s30 }
 0x6ad   : > { %9165 = vrot.lane.b32.xlu0 %v19215_v49, %s18815_s9 }
 0x6b1   : > { %9167 = vrot.lane.b32.xlu0 %v19129_v4, %s18816_s30  ;;  %s20352_s30 = scalar_lea.hbm %s20404_s5, %s16423_s13 }
 0x6dd   : > { %v6431_v31 = vpop.xlane.xlu1 %6430 }
 0x6de   : > { %18605 = vrcp.f32 %v6431_v31 }
 0x6e1   : > { %v6450_v32 = vpop.permute.xlu1 %6449 }
 0x6e2   : > { %v19565_v33 = vand.u32 4294901760, %v6450_v32 }
 0x6e4   : > { %17349 = vmatpush3.msra.mxu1 %v19565_v33  ;;  %v6533_v38 = vsub.f32 %v6450_v32, %v19565_v33 }
 0x6e5   : > { %17353 = vmatprep.subr.mxu1 %v18808_v60 }
 0x6e6   : > { %v6534_v43 = vand.u32 4294901760, %v6533_v38 }
 0x6e7   : > { %v6434_v34 = vpop.xlane.xlu0 %6433 }
 0x6e8   : > { %v18606_v36 = vpop.eup %18605  ;;  %18607 = vrcp.f32 %v6434_v34  ;;  %v6535_v46 = vsub.f32 %v6533_v38, %v6534_v43 }
 0x6e9   : > { %v6442_v37 = vmul.f32 %v18606_v36, %v18598_v17 }
 0x6ea   : > { %v6536_v57 = vand.u32 4294901760, %v6535_v46 }
 0x6eb   : > { %v6902_v40 = vpop.permute.xlu0 %6901  ;;  %v6453_v39 = vsel %vm923_vm2, %v6442_v37, 0 }
 0x6ec   : > { %v19571_v41 = vand.u32 4294901760, %v6902_v40  ;;  %v19573_v42 = vand.u32 4294901760, %v6453_v39 }
 0x6ee   : > { %17379 = vmatpush3.msra.mxu0 %v19571_v41  ;;  %v6522_v44 = vsub.f32 %v6453_v39, %v19573_v42  ;;  %v6985_v55 = vsub.f32 %v6902_v40, %v19571_v41 }
 0x6ef   : > { %17383 = vmatprep.subr.mxu0 %v18808_v60 }
 0x6f0   : > { %v6523_v45 = vand.u32 4294901760, %v6522_v44  ;;  %v6986_v61 = vand.u32 4294901760, %v6985_v55 }
 0x6f2   : > { %v18608_v48 = vpop.eup %18607  ;;  %v6524_v51 = vsub.f32 %v6522_v44, %v6523_v45  ;;  %v6987_v1 = vsub.f32 %v6985_v55, %v6986_v61 }
 0x6f3   : > { %v6444_v53 = vmul.f32 %v18608_v48, %v18600_v19 }
 0x6f4   : > { %v6525_v56 = vand.u32 4294901760, %v6524_v51  ;;  %v6988_v8 = vand.u32 4294901760, %v6987_v1 }
 0x6f5   : > { %v6905_v58 = vsel %vm923_vm2, %v6444_v53, 0 }
 0x6f6   : > { %17351 = vmatmul.mubr.f32.vlgmr.msra.gmra.mrb[14].mxu1 %v6525_v56  ;;  %v19580_v59 = vand.u32 4294901760, %v6905_v58 }
 0x6f7   : > { %17354 = vmatpush3.msra.mxu1 %v6536_v57  ;;  %17355 = vmatprep.mubr.msk.f32.mxu1 %vm18809_vm1, %v18808_v60 }
 0x6f8   : > { %17358 = vmatprep.subr.mxu1 %v18808_v60  ;;  %v6974_v62 = vsub.f32 %v6905_v58, %v19580_v59 }
 0x6fa   : > { %v6975_v63 = vand.u32 4294901760, %v6974_v62 }
 0x6fc   : > { %v6976_v2 = vsub.f32 %v6974_v62, %v6975_v63 }
 0x6fe   : > { %17356 = vmatmul.mubr.f32.vlgmr.msra.gmra.mrb[14].mxu1 %v19573_v42  ;;  %v6977_v7 = vand.u32 4294901760, %v6976_v2 }
 0x6ff   : > { %17359 = vmatpush3.msra.mxu1 %v6533_v38  ;;  %17360 = vmatprep.mubr.msk.f32.mxu1 %vm18809_vm1, %v18808_v60 }
 0x700   : > { %17381 = vmatmul.mubr.f32.vlgmr.msra.gmra.mrb[16].mxu0 %v6977_v7  ;;  %17363 = vmatprep.subr.mxu1 %v18808_v60 }
 0x701   : > { %17384 = vmatpush3.msra.mxu0 %v6988_v8  ;;  %17385 = vmatprep.mubr.msk.f32.mxu0 %vm18809_vm1, %v18808_v60 }
 0x702   : > { %17388 = vmatprep.subr.mxu0 %v18808_v60 }
 0x706   : > { %17361 = vmatmul.mubr.f32.vlgmr.msra.gmra.mrb[14].mxu1 %v6522_v44 }
 0x707   : > { %17364 = vmatpush3.msra.mxu1 %v19565_v33  ;;  %17365 = vmatprep.mubr.msk.f32.mxu1 %vm18809_vm1, %v18808_v60 }
 0x708   : > { %17386 = vmatmul.mubr.f32.vlgmr.msra.gmra.mrb[16].mxu0 %v19580_v59  ;;  %17368 = vmatprep.subr.mxu1 %v18808_v60 }
 0x709   : > { %17389 = vmatpush3.msra.mxu0 %v6985_v55  ;;  %17390 = vmatprep.mubr.msk.f32.mxu0 %vm18809_vm1, %v18808_v60 }
 0x70a   : > { %17393 = vmatprep.subr.mxu0 %v18808_v60 }
 0x70e   : > { %17366 = vmatmul.mubr.f32.vlgmr.msra.gmra.mrb[14].mxu1 %v6523_v45 }
 0x70f   : > { %17369 = vmatpush3.msra.mxu1 %v6534_v43  ;;  %17370 = vmatprep.mubr.msk.f32.mxu1 %vm18809_vm1, %v18808_v60 }
 0x710   : > { %17391 = vmatmul.mubr.f32.vlgmr.msra.gmra.mrb[16].mxu0 %v6974_v62  ;;  %17373 = vmatprep.subr.mxu1 %v18808_v60 }
 0x711   : > { %17394 = vmatpush3.msra.mxu0 %v19571_v41  ;;  %17395 = vmatprep.mubr.msk.f32.mxu0 %vm18809_vm1, %v18808_v60 }
 0x712   : > { %v6437_v10 = vpop.xlane.xlu1 %6436  ;;  %17398 = vmatprep.subr.mxu0 %v18808_v60 }
 0x713   : > { %18609 = vrcp.f32 %v6437_v10 }
 0x716   : > { %17371 = vmatmul.mubr.f32.vlgmr.msra.gmra.mrb[14].mxu1 %v19573_v42  ;;  %v7354_v11 = vpop.permute.xlu1 %7353 }
 0x717   : > { %17374 = vmatpush3.msra.mxu1 %v19565_v33  ;;  %17375 = vmatprep.mubr.msk.f32.mxu1 %vm18809_vm1, %v18808_v60  ;;  %v19615_v12 = vand.u32 4294901760, %v7354_v11 }
 0x718   : > { %17396 = vmatmul.mubr.f32.vlgmr.msra.gmra.mrb[16].mxu0 %v6975_v63  ;;  %17408 = vmatprep.subr.mxu1 %v18808_v60 }
 0x719   : > { %17399 = vmatpush3.msra.mxu0 %v6986_v61  ;;  %17400 = vmatprep.mubr.msk.f32.mxu0 %vm18809_vm1, %v18808_v60  ;;  %v7437_v16 = vsub.f32 %v7354_v11, %v19615_v12 }
 0x71a   : > { %17403 = vmatprep.subr.mxu0 %v18808_v60 }
 0x71b   : > { %v7438_v20 = vand.u32 4294901760, %v7437_v16 }
 0x71c   : > { %v6440_v13 = vpop.xlane.xlu0 %6439 }
 0x71d   : > { %v18610_v14 = vpop.eup %18609  ;;  %18611 = vrcp.f32 %v6440_v13  ;;  %v7439_v24 = vsub.f32 %v7437_v16, %v7438_v20 }
 0x71e   : > { %v6446_v15 = vmul.f32 %v18610_v14, %v19547_v27  ;;  %17376 = vmatmul.mubr.f32.vlgmr.msra.gmra.mrb[14].mxu1 %v19573_v42 }
 0x71f   : > { %17409 = vmatpush3.msra.mxu1 %v19615_v12  ;;  %17410 = vmatprep.mubr.msk.f32.mxu1 %vm18809_vm1, %v18808_v60  ;;  %v7440_v31 = vand.u32 4294901760, %v7439_v24 }
 0x720   : > { %17401 = vmatmul.mubr.f32.vlgmr.msra.gmra.mrb[16].mxu0 %v19580_v59  ;;  %17413 = vmatprep.subr.mxu1 %v18808_v60  ;;  %v7357_v17 = vsel %vm923_vm2, %v6446_v15, 0  ;;  %v7806_v18 = vpop.permute.xlu0 %7805 }
 0x721   : > { %17404 = vmatpush3.msra.mxu0 %v19571_v41  ;;  %17405 = vmatprep.mubr.msk.f32.mxu0 %vm18809_vm1, %v18808_v60  ;;  %v19630_v19 = vand.u32 4294901760, %v7357_v17  ;;  %v19634_v22 = vand.u32 4294901760, %v7806_v18  ;;  %v8258_v41 = vpop.permute.xlu1 %8257 }
 0x722   : > { %17438 = vmatprep.subr.mxu0 %v18808_v60  ;;  %v8261_v43 = vsel %vm923_vm2, %v8258_v41, 0 }
 0x723   : > { %v7426_v21 = vsub.f32 %v7357_v17, %v19630_v19  ;;  %v19638_v28 = vsub.f32 %v7806_v18, %v19634_v22  ;;  %v19674_v46 = vand.u32 4294901760, %v8261_v43 }
 0x724   : > { %v8260_v42 = vpop.permute.xlu0 %8259 }
 0x725   : > { %v7427_v23 = vand.u32 4294901760, %v7426_v21  ;;  %v8263_v44 = vsel %vm923_vm2, %v8260_v42, 0  ;;  %v8712_v45 = vpop.permute.xlu1 %8711  ;;  %v19684_v51 = vsub.f32 %v8261_v43, %v19674_v46 }
 0x726   : > { %v19677_v48 = vand.u32 4294901760, %v8263_v44  ;;  %v8715_v56 = vsel %vm923_vm2, %v8712_v45, 0 }
 0x727   : > { %v18612_v25 = vpop.eup %18611  ;;  %v7428_v26 = vsub.f32 %v7426_v21, %v7427_v23  ;;  %v8333_v57 = vand.u32 4294901760, %v19684_v51  ;;  %v19700_v61 = vand.u32 4294901760, %v8715_v56 }
 0x728   : > { %v6448_v27 = vmul.f32 %v18612_v25, %v19551_v29  ;;  %17406 = vmatmul.mubr.f32.vlgmr.msra.gmra.mrb[16].mxu0 %v19580_v59  ;;  %v7890_v29 = vand.u32 4294901760, %v19638_v28  ;;  %v19687_v55 = vsub.f32 %v8263_v44, %v19677_v48  ;;  %v9166_v17 = vpop.permute.xlu0 %9165 }
 0x729   : > { %17439 = vmatpush3.msra.mxu0 %v19634_v22  ;;  %v7429_v30 = vand.u32 4294901760, %v7428_v26  ;;  %17440 = vmatprep.mubr.msk.f32.mxu0 %vm18809_vm1, %v18808_v60  ;;  %v8714_v53 = vpop.permute.xlu1 %8713  ;;  %v8334_v63 = vsub.f32 %v19684_v51, %v8333_v57  ;;  %v19708_v2 = vsub.f32 %v8715_v56, %v19700_v61 }
 0x72a   : > { %17443 = vmatprep.subr.mxu0 %v18808_v60  ;;  %v7809_v32 = vsel %vm923_vm2, %v6448_v27, 0  ;;  %v7891_v37 = vsub.f32 %v19638_v28, %v7890_v29  ;;  %v8717_v58 = vsel %vm923_vm2, %v8714_v53, 0  ;;  %v8344_v59 = vand.u32 4294901760, %v19687_v55 }
 0x72b   : > { %17411 = vmatmul.mubr.f32.vlgmr.msra.gmra.mrb[16].mxu1 %v7429_v30  ;;  %v19646_v33 = vand.u32 4294901760, %v7809_v32  ;;  %v19703_v62 = vand.u32 4294901760, %v8717_v58  ;;  %v8335_v8 = vand.u32 4294901760, %v8334_v63  ;;  %v8787_v11 = vand.u32 4294901760, %v19708_v2 }
 0x72c   : > { %17414 = vmatpush3.msra.mxu1 %v7440_v31  ;;  %17415 = vmatprep.mubr.msk.f32.mxu1 %vm18809_vm1, %v18808_v60  ;;  %v7892_v39 = vand.u32 4294901760, %v7891_v37  ;;  %v8345_v1 = vsub.f32 %v19687_v55, %v8344_v59  ;;  %v9168_v18 = vpop.permute.xlu0 %9167 }
 0x72d   : > { %17418 = vmatprep.subr.mxu1 %v18808_v60  ;;  %v7878_v34 = vsub.f32 %v7809_v32, %v19646_v33  ;;  %v19712_v7 = vsub.f32 %v8717_v58, %v19703_v62  ;;  %v8788_v13 = vsub.f32 %v19708_v2, %v8787_v11 }
 0x72e   : > { %v8346_v10 = vand.u32 4294901760, %v8345_v1 }
 0x72f   : > { %v7879_v36 = vand.u32 4294901760, %v7878_v34  ;;  %v8789_v15 = vand.u32 4294901760, %v8788_v13 }
 0x731   : > { %v7880_v38 = vsub.f32 %v7878_v34, %v7879_v36 }
 0x733   : > { %17416 = vmatmul.mubr.f32.vlgmr.msra.gmra.mrb[16].mxu1 %v19630_v19  ;;  %v7881_v40 = vand.u32 4294901760, %v7880_v38 }
 0x734   : > { %17419 = vmatpush3.msra.mxu1 %v7437_v16  ;;  %17420 = vmatprep.mubr.msk.f32.mxu1 %vm18809_vm1, %v18808_v60 }
 0x735   : > { %17441 = vmatmul.mubr.f32.vlgmr.msra.gmra.mrb[18].mxu0 %v7881_v40  ;;  %17423 = vmatprep.subr.mxu1 %v18808_v60 }
 0x736   : > { %17444 = vmatpush3.msra.mxu0 %v7892_v39  ;;  %17445 = vmatprep.mubr.msk.f32.mxu0 %vm18809_vm1, %v18808_v60 }
 0x737   : > { %17448 = vmatprep.subr.mxu0 %v18808_v60 }
 0x73b   : > { %17421 = vmatmul.mubr.f32.vlgmr.msra.gmra.mrb[16].mxu1 %v7426_v21  ;;  %v9620_v21 = vpop.permute.xlu1 %9619 }
 0x73c   : > { %17424 = vmatpush3.msra.mxu1 %v19615_v12  ;;  %17425 = vmatprep.mubr.msk.f32.mxu1 %vm18809_vm1, %v18808_v60  ;;  %v9623_v27 = vsel %vm923_vm2, %v9620_v21, 0 }
 0x73d   : > { %17446 = vmatmul.mubr.f32.vlgmr.msra.gmra.mrb[18].mxu0 %v19646_v33  ;;  %17428 = vmatprep.subr.mxu1 %v18808_v60  ;;  %v19778_v32 = vand.u32 4294901760, %v9623_v27 }
 0x73e   : > { %17449 = vmatpush3.msra.mxu0 %v19638_v28  ;;  %17450 = vmatprep.mubr.msk.f32.mxu0 %vm18809_vm1, %v18808_v60 }
 0x73f   : > { %17453 = vmatprep.subr.mxu0 %v18808_v60  ;;  %v9622_v25 = vpop.permute.xlu1 %9621 }
 0x740   : > { %v9625_v30 = vsel %vm923_vm2, %v9622_v25, 0 }
 0x743   : > { %17426 = vmatmul.mubr.f32.vlgmr.msra.gmra.mrb[16].mxu1 %v7427_v23 }
 0x744   : > { %17429 = vmatpush3.msra.mxu1 %v7438_v20  ;;  %17430 = vmatprep.mubr.msk.f32.mxu1 %vm18809_vm1, %v18808_v60  ;;  %v9171_v20 = vsel %vm923_vm2, %v9168_v18, 0 }
 0x745   : > { %17451 = vmatmul.mubr.f32.vlgmr.msra.gmra.mrb[18].mxu0 %v7878_v34  ;;  %17433 = vmatprep.subr.mxu1 %v18808_v60  ;;  %v19761_v23 = vand.u32 4294901760, %v9171_v20 }
 0x746   : > { %17454 = vmatpush3.msra.mxu0 %v19634_v22  ;;  %17455 = vmatprep.mubr.msk.f32.mxu0 %vm18809_vm1, %v18808_v60 }
 0x747   : > { %17458 = vmatprep.subr.mxu0 %v18808_v60  ;;  %v9251_v26 = vsub.f32 %v9171_v20, %v19761_v23 }
 0x749   : > { %v9252_v31 = vand.u32 4294901760, %v9251_v26 }
 0x74b   : > { %17431 = vmatmul.mubr.f32.vlgmr.msra.gmra.mrb[16].mxu1 %v19630_v19  ;;  %v9253_v34 = vsub.f32 %v9251_v26, %v9252_v31 }
 0x74c   : > { %17434 = vmatpush3.msra.mxu1 %v19615_v12  ;;  %17435 = vmatprep.mubr.msk.f32.mxu1 %vm18809_vm1, %v18808_v60  ;;  %v8798_v12 = vand.u32 4294901760, %v19712_v7 }
 0x74d   : > { %17456 = vmatmul.mubr.f32.vlgmr.msra.gmra.mrb[18].mxu0 %v7879_v36  ;;  %17468 = vmatprep.subr.mxu1 %v18808_v60  ;;  %v9694_v36 = vsub.f32 %v9623_v27, %v19778_v32  ;;  %v9254_v40 = vand.u32 4294901760, %v9253_v34 }
 0x74e   : > { %17459 = vmatpush3.msra.mxu0 %v7890_v29  ;;  %17460 = vmatprep.mubr.msk.f32.mxu0 %vm18809_vm1, %v18808_v60  ;;  %v8799_v14 = vsub.f32 %v19712_v7, %v8798_v12 }
 0x74f   : > { %17463 = vmatprep.subr.mxu0 %v18808_v60  ;;  %v9695_v39 = vand.u32 4294901760, %v9694_v36 }
 0x750   : > { %v8800_v16 = vand.u32 4294901760, %v8799_v14 }
 0x751   : > { %v9696_v42 = vsub.f32 %v9694_v36, %v9695_v39 }
 0x753   : > { %17436 = vmatmul.mubr.f32.vlgmr.msra.gmra.mrb[16].mxu1 %v19630_v19  ;;  %v9169_v19 = vsel %vm923_vm2, %v9166_v17, 0  ;;  %v9697_v44 = vand.u32 4294901760, %v9696_v42 }
 0x754   : > { %17469 = vmatpush3.xpose.msra.mxu1 %v19677_v48  ;;  %17470 = vmatprep.mubr.msk.f32.mxu1 %vm18809_vm1, %v18808_v60 }
 0x755   : > { %17461 = vmatmul.mubr.f32.vlgmr.msra.gmra.mrb[18].mxu0 %v19646_v33  ;;  %17473 = vmatprep.subr.mxu1 %v18808_v60 }
 0x756   : > { %17464 = vmatpush3.msra.mxu0 %v19634_v22  ;;  %17465 = vmatprep.mubr.msk.f32.mxu0 %vm18809_vm1, %v18808_v60  ;;  %v19757_v22 = vand.u32 4294901760, %v9169_v19 }
 0x757   : > { %17471 = vmatmul.mubr.f32.vlgmr.msra.gmra.mrb[18].mxu1 %v8335_v8  ;;  %17498 = vmatprep.subr.mxu0 %v18808_v60 }
 0x758   : > { %17474 = vmatpush3.xpose.msra.mxu1 %v8346_v10  ;;  %17475 = vmatprep.mubr.msk.f32.mxu1 %vm18809_vm1, %v18808_v60  ;;  %v9240_v24 = vsub.f32 %v9169_v19, %v19757_v22 }
 0x759   : > { %17478 = vmatprep.subr.mxu1 %v18808_v60 }
 0x75a   : > { %v9241_v28 = vand.u32 4294901760, %v9240_v24 }
 0x75c   : > { %v9242_v29 = vsub.f32 %v9240_v24, %v9241_v28 }
 0x75d   : > { %17466 = vmatmul.mubr.f32.vlgmr.msra.gmra.mrb[18].mxu0 %v19646_v33  ;;  %v19781_v33 = vand.u32 4294901760, %v9625_v30 }
 0x75e   : > { %17499 = vmatpush3.xpose.msra.mxu0 %v19703_v62  ;;  %17500 = vmatprep.mubr.msk.f32.mxu0 %vm18809_vm1, %v18808_v60  ;;  %v9243_v38 = vand.u32 4294901760, %v9242_v29 }
 0x75f   : > { %17476 = vmatmul.mubr.f32.vlgmr.msra.gmra.mrb[18].mxu1 %v19674_v46  ;;  %17503 = vmatprep.subr.mxu0 %v18808_v60  ;;  %v9705_v37 = vsub.f32 %v9625_v30, %v19781_v33 }
 0x760   : > { %17479 = vmatpush3.xpose.msra.mxu1 %v19687_v55  ;;  %17480 = vmatprep.mubr.msk.f32.mxu1 %vm18809_vm1, %v18808_v60 }
 0x761   : > { %17501 = vmatmul.mubr.f32.vlgmr.msra.gmra.mrb[20].mxu0 %v8789_v15  ;;  %17483 = vmatprep.subr.mxu1 %v18808_v60  ;;  %v9706_v41 = vand.u32 4294901760, %v9705_v37 }
 0x762   : > { %17504 = vmatpush3.xpose.msra.mxu0 %v8800_v16  ;;  %17505 = vmatprep.mubr.msk.f32.mxu0 %vm18809_vm1, %v18808_v60 }
 0x763   : > { %17508 = vmatprep.subr.mxu0 %v18808_v60  ;;  %v9707_v43 = vsub.f32 %v9705_v37, %v9706_v41 }
 0x765   : > { %v9708_v45 = vand.u32 4294901760, %v9707_v43 }
 0x767   : > { %17481 = vmatmul.mubr.f32.vlgmr.msra.gmra.mrb[18].mxu1 %v19684_v51 }
 0x768   : > { %17484 = vmatpush3.xpose.msra.mxu1 %v19677_v48  ;;  %17485 = vmatprep.mubr.msk.f32.mxu1 %vm18809_vm1, %v18808_v60 }
 0x769   : > { %17506 = vmatmul.mubr.f32.vlgmr.msra.gmra.mrb[20].mxu0 %v19700_v61  ;;  %17488 = vmatprep.subr.mxu1 %v18808_v60 }
 0x76a   : > { %17509 = vmatpush3.xpose.msra.mxu0 %v19712_v7  ;;  %17510 = vmatprep.mubr.msk.f32.mxu0 %vm18809_vm1, %v18808_v60 }
 0x76b   : > { %17513 = vmatprep.subr.mxu0 %v18808_v60 }
 0x76f   : > { %17486 = vmatmul.mubr.f32.vlgmr.msra.gmra.mrb[18].mxu1 %v8333_v57 }
 0x770   : > { %17489 = vmatpush3.xpose.msra.mxu1 %v8344_v59  ;;  %17490 = vmatprep.mubr.msk.f32.mxu1 %vm18809_vm1, %v18808_v60 }
 0x771   : > { %17511 = vmatmul.mubr.f32.vlgmr.msra.gmra.mrb[20].mxu0 %v19708_v2  ;;  %17493 = vmatprep.subr.mxu1 %v18808_v60 }
 0x772   : > { %17514 = vmatpush3.xpose.msra.mxu0 %v19703_v62  ;;  %17515 = vmatprep.mubr.msk.f32.mxu0 %vm18809_vm1, %v18808_v60 }
 0x773   : > { %17518 = vmatprep.subr.mxu0 %v18808_v60 }
 0x777   : > { %17491 = vmatmul.mubr.f32.vlgmr.msra.gmra.mrb[18].mxu1 %v19674_v46 }
 0x778   : > { %17494 = vmatpush3.xpose.msra.mxu1 %v19677_v48  ;;  %17495 = vmatprep.mubr.msk.f32.mxu1 %vm18809_vm1, %v18808_v60 }
 0x779   : > { %17516 = vmatmul.mubr.f32.vlgmr.msra.gmra.mrb[20].mxu0 %v8787_v11  ;;  %17528 = vmatprep.subr.mxu1 %v18808_v60 }
 0x77a   : > { %17519 = vmatpush3.xpose.msra.mxu0 %v8798_v12  ;;  %17520 = vmatprep.mubr.msk.f32.mxu0 %vm18809_vm1, %v18808_v60 }
 0x77b   : > { %17523 = vmatprep.subr.mxu0 %v18808_v60 }
 0x77f   : > { %17496 = vmatmul.mubr.f32.vlgmr.msra.gmra.mrb[18].mxu1 %v19674_v46 }
 0x780   : > { %17529 = vmatpush3.xpose.msra.mxu1 %v19761_v23  ;;  %17530 = vmatprep.mubr.msk.f32.mxu1 %vm18809_vm1, %v18808_v60 }
 0x781   : > { %17521 = vmatmul.mubr.f32.vlgmr.msra.gmra.mrb[20].mxu0 %v19700_v61  ;;  %17533 = vmatprep.subr.mxu1 %v18808_v60 }
 0x782   : > { %17524 = vmatpush3.xpose.msra.mxu0 %v19703_v62  ;;  %17525 = vmatprep.mubr.msk.f32.mxu0 %vm18809_vm1, %v18808_v60 }
 0x783   : > { %17531 = vmatmul.mubr.f32.vlgmr.msra.gmra.mrb[20].mxu1 %v9243_v38  ;;  %17558 = vmatprep.subr.mxu0 %v18808_v60 }
 0x784   : > { %17534 = vmatpush3.xpose.msra.mxu1 %v9254_v40  ;;  %17535 = vmatprep.mubr.msk.f32.mxu1 %vm18809_vm1, %v18808_v60 }
 0x785   : > { %17538 = vmatprep.subr.mxu1 %v18808_v60 }
 0x789   : > { %17526 = vmatmul.mubr.f32.vlgmr.msra.gmra.mrb[20].mxu0 %v19700_v61 }
 0x78a   : > { %17559 = vmatpush3.xpose.msra.mxu0 %v19781_v33  ;;  %17560 = vmatprep.mubr.msk.f32.mxu0 %vm18809_vm1, %v18808_v60 }
 0x78b   : > { %17536 = vmatmul.mubr.f32.vlgmr.msra.gmra.mrb[20].mxu1 %v19757_v22  ;;  %17563 = vmatprep.subr.mxu0 %v18808_v60 }
 0x78c   : > { %17539 = vmatpush3.xpose.msra.mxu1 %v9251_v26  ;;  %17540 = vmatprep.mubr.msk.f32.mxu1 %vm18809_vm1, %v18808_v60 }
 0x78d   : > { %17561 = vmatmul.mubr.f32.vlgmr.msra.gmra.mrb[22].mxu0 %v9697_v44  ;;  %17543 = vmatprep.subr.mxu1 %v18808_v60 }
 0x78e   : > { %17564 = vmatpush3.xpose.msra.mxu0 %v9708_v45  ;;  %17565 = vmatprep.mubr.msk.f32.mxu0 %vm18809_vm1, %v18808_v60 }
 0x78f   : > { %17568 = vmatprep.subr.mxu0 %v18808_v60 }
 0x793   : > { %17541 = vmatmul.mubr.f32.vlgmr.msra.gmra.mrb[20].mxu1 %v9240_v24 }
 0x794   : > { %17544 = vmatpush3.xpose.msra.mxu1 %v19761_v23  ;;  %17545 = vmatprep.mubr.msk.f32.mxu1 %vm18809_vm1, %v18808_v60 }
 0x795   : > { %17566 = vmatmul.mubr.f32.vlgmr.msra.gmra.mrb[22].mxu0 %v19778_v32  ;;  %17548 = vmatprep.subr.mxu1 %v18808_v60 }
 0x796   : > { %17569 = vmatpush3.xpose.msra.mxu0 %v9705_v37  ;;  %17570 = vmatprep.mubr.msk.f32.mxu0 %vm18809_vm1, %v18808_v60 }
 0x797   : > { %17573 = vmatprep.subr.mxu0 %v18808_v60 }
 0x79b   : > { %17546 = vmatmul.mubr.f32.vlgmr.msra.gmra.mrb[20].mxu1 %v9241_v28 }
 0x79c   : > { %17549 = vmatpush3.xpose.msra.mxu1 %v9252_v31  ;;  %17550 = vmatprep.mubr.msk.f32.mxu1 %vm18809_vm1, %v18808_v60 }
 0x79d   : > { %17571 = vmatmul.mubr.f32.vlgmr.msra.gmra.mrb[22].mxu0 %v9694_v36  ;;  %17553 = vmatprep.subr.mxu1 %v18808_v60 }
 0x79e   : > { %17574 = vmatpush3.xpose.msra.mxu0 %v19781_v33  ;;  %17575 = vmatprep.mubr.msk.f32.mxu0 %vm18809_vm1, %v18808_v60 }
 0x79f   : > { %17578 = vmatprep.subr.mxu0 %v18808_v60 }
 0x7a3   : > { %17551 = vmatmul.mubr.f32.vlgmr.msra.gmra.mrb[20].mxu1 %v19757_v22 }
 0x7a4   : > { %17554 = vmatpush3.xpose.msra.mxu1 %v19761_v23  ;;  %17555 = vmatprep.mubr.msk.f32.mxu1 %vm18809_vm1, %v18808_v60 }
 0x7a5   : > { %17576 = vmatmul.mubr.f32.vlgmr.msra.gmra.mrb[22].mxu0 %v9695_v39  ;;  %17588 = vmatprep.subr.mxu1 %v18808_v60 }
 0x7a6   : > { %17579 = vmatpush3.xpose.msra.mxu0 %v9706_v41  ;;  %17580 = vmatprep.mubr.msk.f32.mxu0 %vm18809_vm1, %v18808_v60 }
 0x7a7   : > { %17583 = vmatprep.subr.mxu0 %v18808_v60 }
 0x7ab   : > { %17556 = vmatmul.mubr.f32.vlgmr.msra.gmra.mrb[20].mxu1 %v19757_v22 }
 0x7ac   : > { %17590 = vmatprep.mubr.msk.f32.mxu1 %vm18809_vm1, %v18808_v60 }
 0x7ad   : > { %17581 = vmatmul.mubr.f32.vlgmr.msra.gmra.mrb[22].mxu0 %v19778_v32 }
 0x7ae   : > { %17584 = vmatpush3.xpose.msra.mxu0 %v19781_v33  ;;  %17585 = vmatprep.mubr.msk.f32.mxu0 %vm18809_vm1, %v18808_v60 }
 0x7af   : > { %17618 = vmatprep.subr.mxu0 %v18808_v60 }
 0x7b5   : > { %17586 = vmatmul.mubr.f32.vlgmr.msra.gmra.mrb[22].mxu0 %v19778_v32 }
 0x7b6   : > { %17620 = vmatprep.mubr.msk.f32.mxu0 %vm18809_vm1, %v18808_v60 }
 0x7f1   : > { %v19844_v46 = vpop.f32.mrb[14].mxu1 }
 0x7f2   : > { %v17377_v48 = vpop.f32.mrb[15].mxu1 }
 0x7fb   : > { %v19846_v51 = vpop.f32.mrb[16].mxu0 }
 0x7fc   : > { %v17407_v53 = vpop.f32.mrb[17].mxu0 }
 0x826   : > { %v19848_v55 = vpop.f32.mrb[16].mxu1 }
 0x827   : > { %v17437_v56 = vpop.f32.mrb[17].mxu1 }
 0x830   : > { %v19850_v57 = vpop.f32.mrb[18].mxu0 }
 0x831   : > { %v17467_v58 = vpop.f32.mrb[19].mxu0 }
 0x852   : > { %v8707_v59 = vpop.f32.mrb[18].mxu1 }
 0x853   : > { %v17497_v61 = vpop.f32.mrb[19].mxu1  ;;  %v10073_v62 = vsel %vm923_vm2, %v8707_v59, -inf }
 0x854   : > { %10074 = vmax.xlane.f32.xlu0 %v10073_v62 }
 0x85c   : > { %v9161_v63 = vpop.f32.mrb[20].mxu0 }
 0x85d   : > { %v17527_v1 = vpop.f32.mrb[21].mxu0  ;;  %v10076_v2 = vsel %vm923_vm2, %v9161_v63, -inf }
 0x85e   : > { %10077 = vmax.xlane.f32.xlu1 %v10076_v2 }
 0x87e   : > { %v9615_v7 = vpop.f32.mrb[20].mxu1 }
 0x87f   : > { %v17557_v8 = vpop.f32.mrb[21].mxu1  ;;  %v10079_v10 = vsel %vm923_vm2, %v9615_v7, -inf }
 0x880   : > { %10080 = vmax.xlane.f32.xlu0 %v10079_v10 }
 0x888   : > { %v10069_v11 = vpop.f32.mrb[22].mxu0 }
 0x889   : > { %v17587_v12 = vpop.f32.mrb[23].mxu0  ;;  %v10082_v13 = vsel %vm923_vm2, %v10069_v11, -inf }
 0x88a   : > { %10083 = vmax.xlane.f32.xlu0 %v10082_v13 }
 0x8e1   : > { %v10075_v14 = vpop.xlane.xlu0 %10074 }
 0x8e2   : > { %v10085_v15 = vsub.f32 %v8707_v59, %v10075_v14 }
 0x8e4   : > { %v10089_v16 = vmul.f32 1.442695, %v10085_v15 }
 0x8e6   : > { %18613 = vpow2.f32 %v10089_v16 }
 0x8eb   : > { %v10078_v17 = vpop.xlane.xlu1 %10077 }
 0x8ec   : > { %v10086_v18 = vsub.f32 %v9161_v63, %v10078_v17 }
 0x8ee   : > { %v10091_v19 = vmul.f32 1.442695, %v10086_v18 }
 0x8f0   : > { %v18614_v20 = vpop.eup %18613  ;;  %18615 = vpow2.f32 %v10091_v19 }
 0x8f1   : > { %v10097_v21 = vsel %vm923_vm2, %v18614_v20, 0.0 }
 0x8f2   : > { %10098 = vadd.xlane.f32.xlu1 %v10097_v21 }
 0x8fa   : > { %v18616_v22 = vpop.eup %18615 }
 0x8fb   : > { %v10100_v23 = vsel %vm923_vm2, %v18616_v22, 0.0 }
 0x8fc   : > { %10101 = vadd.xlane.f32.xlu0 %v10100_v23 }
 0x903   : > { %10117 = vrot.lane.b32.xlu1 %v19124_v0, %s18817_s11 }
 0x90d   : > { %v10081_v24 = vpop.xlane.xlu0 %10080 }
 0x90e   : > { %v10087_v25 = vsub.f32 %v9615_v7, %v10081_v24 }
 0x910   : > { %v10093_v26 = vmul.f32 1.442695, %v10087_v25 }
 0x912   : > { %10569 = vrot.lane.b32.xlu0 %v19127_v3, %s18817_s11  ;;  %18617 = vpow2.f32 %v10093_v26 }
 0x917   : > { %v10084_v27 = vpop.xlane.xlu0 %10083 }
 0x918   : > { %v10088_v28 = vsub.f32 %v10069_v11, %v10084_v27 }
 0x91a   : > { %v10095_v30 = vmul.f32 1.442695, %v10088_v28 }
 0x91c   : > { %v19860_v31 = vpop.eup %18617  ;;  %18619 = vpow2.f32 %v10095_v30 }
 0x91d   : > { %v10103_v32 = vsel %vm923_vm2, %v19860_v31, 0.0 }
 0x926   : > { %v19864_v33 = vpop.eup %18619 }
 0x927   : > { %10104 = vadd.xlane.f32.xlu1 %v10103_v32  ;;  %v10106_v29 = vsel %vm923_vm2, %v19864_v33, 0.0 }
 0x931   : > { %10107 = vadd.xlane.f32.xlu0 %v10106_v29 }
 0x938   : > { %11021 = vrot.lane.b32.xlu1 %v19129_v4, %s18817_s11 }
 0x93c   : > { %11925 = vrot.lane.b32.xlu1 %v19137_v6, %s18818_s17 }
 0x940   : > { %12379 = vrot.lane.b32.xlu1 %v19176_v35, %s18818_s17 }
 0x944   : > { %12381 = vrot.lane.b32.xlu1 %v19127_v3, %s18819_s7 }
 0x947   : > { %11473 = vrot.lane.b32.xlu0 %v19133_v5, %s18817_s11  ;;  %s18731_s11 = scalar_lea.vmem %s20347_s28, 512 }
 0x948   : > { %13287 = vrot.lane.b32.xlu1 %v19144_v9, %s18818_s17  ;;  %p18732_p11 = scmp.ne.s32.totalorder %s20347_s28, %s18731_s11 }
 0x94a   : > { %p18733_p2 = pnand %p18732_p11, %p20418_p0 }
 0x94b   : > { %11927 = vrot.lane.b32.xlu0 %v19124_v0, %s18819_s7 }
 0x94c   : > { %13289 = vrot.lane.b32.xlu1 %v19133_v5, %s18819_s7  ;;  %p18734_p3 = pneg %p18733_p2 }
 0x94f   : > { %12833 = vrot.lane.b32.xlu0 %v19215_v49, %s18818_s17  ;;  %s18824_s17 = smov [#allocation8]  }
 0x953   : > { %12835 = vrot.lane.b32.xlu0 %v19129_v4, %s18819_s7  ;;  %s18735_s7 = sshll.u32 %s18824_s17, 4  ;;  %s18736_s7 = int_to_ptr.vmem [resolvable:$false] %s18735_s7 }
 0x954   : > { %p18738_p7 = scmp.lt.s32.totalorder %s20347_s28, %s18736_s7 }
 0x97f   : > { %v10099_v34 = vpop.xlane.xlu1 %10098 }
 0x980   : > { %18621 = vrcp.f32 %v10099_v34 }
 0x983   : > { %v10118_v6 = vpop.permute.xlu1 %10117 }
 0x984   : > { %v19878_v36 = vand.u32 4294901760, %v10118_v6 }
 0x986   : > { %17589 = vmatpush3.msra.mxu1 %v19878_v36  ;;  %v10201_v38 = vsub.f32 %v10118_v6, %v19878_v36 }
 0x987   : > { %17593 = vmatprep.subr.mxu1 %v18808_v60 }
 0x988   : > { %v10202_v42 = vand.u32 4294901760, %v10201_v38 }
 0x989   : > { %v10102_v35 = vpop.xlane.xlu0 %10101 }
 0x98a   : > { %v18622_v37 = vpop.eup %18621  ;;  %18623 = vrcp.f32 %v10102_v35  ;;  %v10203_v45 = vsub.f32 %v10201_v38, %v10202_v42 }
 0x98b   : > { %v10110_v9 = vmul.f32 %v18622_v37, %v18614_v20 }
 0x98c   : > { %v10204_v61 = vand.u32 4294901760, %v10203_v45 }
 0x98d   : > { %v10570_v40 = vpop.permute.xlu0 %10569  ;;  %v10121_v49 = vsel %vm923_vm2, %v10110_v9, 0 }
 0x98e   : > { %v19884_v39 = vand.u32 4294901760, %v10570_v40  ;;  %v19886_v41 = vand.u32 4294901760, %v10121_v49 }
 0x990   : > { %17619 = vmatpush3.msra.mxu0 %v19884_v39  ;;  %v10190_v43 = vsub.f32 %v10121_v49, %v19886_v41  ;;  %v10653_v58 = vsub.f32 %v10570_v40, %v19884_v39 }
 0x991   : > { %17623 = vmatprep.subr.mxu0 %v18808_v60 }
 0x992   : > { %v10191_v44 = vand.u32 4294901760, %v10190_v43  ;;  %v10654_v1 = vand.u32 4294901760, %v10653_v58 }
 0x994   : > { %v18624_v48 = vpop.eup %18623  ;;  %v10192_v53 = vsub.f32 %v10190_v43, %v10191_v44  ;;  %v10655_v8 = vsub.f32 %v10653_v58, %v10654_v1 }
 0x995   : > { %v10112_v56 = vmul.f32 %v18624_v48, %v18616_v22 }
 0x996   : > { %v10193_v59 = vand.u32 4294901760, %v10192_v53  ;;  %v10656_v12 = vand.u32 4294901760, %v10655_v8 }
 0x997   : > { %v10573_v62 = vsel %vm923_vm2, %v10112_v56, 0 }
 0x998   : > { %17591 = vmatmul.mubr.f32.vlgmr.msra.gmra.mrb[22].mxu1 %v10193_v59  ;;  %v19893_v63 = vand.u32 4294901760, %v10573_v62 }
 0x999   : > { %17594 = vmatpush3.msra.mxu1 %v10204_v61  ;;  %17595 = vmatprep.mubr.msk.f32.mxu1 %vm18809_vm1, %v18808_v60 }
 0x99a   : > { %17598 = vmatprep.subr.mxu1 %v18808_v60  ;;  %v10642_v2 = vsub.f32 %v10573_v62, %v19893_v63 }
 0x99c   : > { %v10643_v7 = vand.u32 4294901760, %v10642_v2 }
 0x99e   : > { %v10644_v10 = vsub.f32 %v10642_v2, %v10643_v7 }
 0x9a0   : > { %17596 = vmatmul.mubr.f32.vlgmr.msra.gmra.mrb[22].mxu1 %v19886_v41  ;;  %v10645_v11 = vand.u32 4294901760, %v10644_v10 }
 0x9a1   : > { %17599 = vmatpush3.msra.mxu1 %v10201_v38  ;;  %17600 = vmatprep.mubr.msk.f32.mxu1 %vm18809_vm1, %v18808_v60 }
 0x9a2   : > { %17621 = vmatmul.mubr.f32.vlgmr.msra.gmra.mrb[24].mxu0 %v10645_v11  ;;  %17603 = vmatprep.subr.mxu1 %v18808_v60 }
 0x9a3   : > { %17624 = vmatpush3.msra.mxu0 %v10656_v12  ;;  %17625 = vmatprep.mubr.msk.f32.mxu0 %vm18809_vm1, %v18808_v60 }
 0x9a4   : > { %17628 = vmatprep.subr.mxu0 %v18808_v60 }
 0x9a8   : > { %17601 = vmatmul.mubr.f32.vlgmr.msra.gmra.mrb[22].mxu1 %v10190_v43 }
 0x9a9   : > { %17604 = vmatpush3.msra.mxu1 %v19878_v36  ;;  %17605 = vmatprep.mubr.msk.f32.mxu1 %vm18809_vm1, %v18808_v60 }
 0x9aa   : > { %17626 = vmatmul.mubr.f32.vlgmr.msra.gmra.mrb[24].mxu0 %v19893_v63  ;;  %17608 = vmatprep.subr.mxu1 %v18808_v60 }
 0x9ab   : > { %17629 = vmatpush3.msra.mxu0 %v10653_v58  ;;  %17630 = vmatprep.mubr.msk.f32.mxu0 %vm18809_vm1, %v18808_v60 }
 0x9ac   : > { %17633 = vmatprep.subr.mxu0 %v18808_v60 }
 0x9b0   : > { %17606 = vmatmul.mubr.f32.vlgmr.msra.gmra.mrb[22].mxu1 %v10191_v44 }
 0x9b1   : > { %17609 = vmatpush3.msra.mxu1 %v10202_v42  ;;  %17610 = vmatprep.mubr.msk.f32.mxu1 %vm18809_vm1, %v18808_v60 }
 0x9b2   : > { %17631 = vmatmul.mubr.f32.vlgmr.msra.gmra.mrb[24].mxu0 %v10642_v2  ;;  %17613 = vmatprep.subr.mxu1 %v18808_v60 }
 0x9b3   : > { %17634 = vmatpush3.msra.mxu0 %v19884_v39  ;;  %17635 = vmatprep.mubr.msk.f32.mxu0 %vm18809_vm1, %v18808_v60 }
 0x9b4   : > { %v10105_v13 = vpop.xlane.xlu1 %10104  ;;  %17638 = vmatprep.subr.mxu0 %v18808_v60 }
 0x9b5   : > { %18625 = vrcp.f32 %v10105_v13 }
 0x9b8   : > { %17611 = vmatmul.mubr.f32.vlgmr.msra.gmra.mrb[22].mxu1 %v19886_v41  ;;  %v11022_v14 = vpop.permute.xlu1 %11021 }
 0x9b9   : > { %17614 = vmatpush3.msra.mxu1 %v19878_v36  ;;  %17615 = vmatprep.mubr.msk.f32.mxu1 %vm18809_vm1, %v18808_v60  ;;  %v19928_v15 = vand.u32 4294901760, %v11022_v14 }
 0x9ba   : > { %17636 = vmatmul.mubr.f32.vlgmr.msra.gmra.mrb[24].mxu0 %v10643_v7  ;;  %17648 = vmatprep.subr.mxu1 %v18808_v60 }
 0x9bb   : > { %17639 = vmatpush3.msra.mxu0 %v10654_v1  ;;  %17640 = vmatprep.mubr.msk.f32.mxu0 %vm18809_vm1, %v18808_v60  ;;  %v11105_v19 = vsub.f32 %v11022_v14, %v19928_v15 }
 0x9bc   : > { %17643 = vmatprep.subr.mxu0 %v18808_v60 }
 0x9bd   : > { %v11106_v23 = vand.u32 4294901760, %v11105_v19 }
 0x9be   : > { %v10108_v16 = vpop.xlane.xlu0 %10107 }
 0x9bf   : > { %v18626_v17 = vpop.eup %18625  ;;  %18627 = vrcp.f32 %v10108_v16  ;;  %v11107_v27 = vsub.f32 %v11105_v19, %v11106_v23 }
 0x9c0   : > { %v10114_v18 = vmul.f32 %v18626_v17, %v19860_v31  ;;  %17616 = vmatmul.mubr.f32.vlgmr.msra.gmra.mrb[22].mxu1 %v19886_v41 }
 0x9c1   : > { %17649 = vmatpush3.msra.mxu1 %v19928_v15  ;;  %17650 = vmatprep.mubr.msk.f32.mxu1 %vm18809_vm1, %v18808_v60  ;;  %v11108_v34 = vand.u32 4294901760, %v11107_v27 }
 0x9c2   : > { %17641 = vmatmul.mubr.f32.vlgmr.msra.gmra.mrb[24].mxu0 %v19893_v63  ;;  %17653 = vmatprep.subr.mxu1 %v18808_v60  ;;  %v11025_v20 = vsel %vm923_vm2, %v10114_v18, 0  ;;  %v11474_v21 = vpop.permute.xlu0 %11473 }
 0x9c3   : > { %17644 = vmatpush3.msra.mxu0 %v19884_v39  ;;  %17645 = vmatprep.mubr.msk.f32.mxu0 %vm18809_vm1, %v18808_v60  ;;  %v19943_v22 = vand.u32 4294901760, %v11025_v20  ;;  %v19947_v25 = vand.u32 4294901760, %v11474_v21  ;;  %v11926_v39 = vpop.permute.xlu1 %11925 }
 0x9c4   : > { %17678 = vmatprep.subr.mxu0 %v18808_v60  ;;  %v11929_v42 = vsel %vm923_vm2, %v11926_v39, 0 }
 0x9c5   : > { %v11094_v24 = vsub.f32 %v11025_v20, %v19943_v22  ;;  %v19951_v32 = vsub.f32 %v11474_v21, %v19947_v25  ;;  %v19987_v45 = vand.u32 4294901760, %v11929_v42 }
 0x9c6   : > { %v11928_v41 = vpop.permute.xlu0 %11927 }
 0x9c7   : > { %v11095_v26 = vand.u32 4294901760, %v11094_v24  ;;  %v11931_v43 = vsel %vm923_vm2, %v11928_v41, 0  ;;  %v12380_v44 = vpop.permute.xlu1 %12379  ;;  %v19997_v53 = vsub.f32 %v11929_v42, %v19987_v45 }
 0x9c8   : > { %v19990_v48 = vand.u32 4294901760, %v11931_v43  ;;  %v12383_v59 = vsel %vm923_vm2, %v12380_v44, 0 }
 0x9c9   : > { %v18628_v28 = vpop.eup %18627  ;;  %v11096_v30 = vsub.f32 %v11094_v24, %v11095_v26  ;;  %v12001_v61 = vand.u32 4294901760, %v19997_v53  ;;  %v20013_v1 = vand.u32 4294901760, %v12383_v59 }
 0x9ca   : > { %v10116_v31 = vmul.f32 %v18628_v28, %v19864_v33  ;;  %17646 = vmatmul.mubr.f32.vlgmr.msra.gmra.mrb[24].mxu0 %v19893_v63  ;;  %v11558_v33 = vand.u32 4294901760, %v19951_v32  ;;  %v20000_v58 = vsub.f32 %v11931_v43, %v19990_v48  ;;  %v12834_v20 = vpop.permute.xlu0 %12833 }
 0x9cb   : > { %17679 = vmatpush3.msra.mxu0 %v19947_v25  ;;  %v11097_v29 = vand.u32 4294901760, %v11096_v30  ;;  %17680 = vmatprep.mubr.msk.f32.mxu0 %vm18809_vm1, %v18808_v60  ;;  %v12382_v56 = vpop.permute.xlu1 %12381  ;;  %v12002_v7 = vsub.f32 %v19997_v53, %v12001_v61  ;;  %v20021_v10 = vsub.f32 %v12383_v59, %v20013_v1 }
 0x9cc   : > { %17683 = vmatprep.subr.mxu0 %v18808_v60  ;;  %v11477_v6 = vsel %vm923_vm2, %v10116_v31, 0  ;;  %v11559_v9 = vsub.f32 %v19951_v32, %v11558_v33  ;;  %v12385_v62 = vsel %vm923_vm2, %v12382_v56, 0  ;;  %v12012_v63 = vand.u32 4294901760, %v20000_v58 }
 0x9cd   : > { %17651 = vmatmul.mubr.f32.vlgmr.msra.gmra.mrb[24].mxu1 %v11097_v29  ;;  %v19959_v36 = vand.u32 4294901760, %v11477_v6  ;;  %v20016_v2 = vand.u32 4294901760, %v12385_v62  ;;  %v12003_v12 = vand.u32 4294901760, %v12002_v7  ;;  %v12455_v14 = vand.u32 4294901760, %v20021_v10 }
 0x9ce   : > { %17654 = vmatpush3.msra.mxu1 %v11108_v34  ;;  %17655 = vmatprep.mubr.msk.f32.mxu1 %vm18809_vm1, %v18808_v60  ;;  %v11560_v49 = vand.u32 4294901760, %v11559_v9  ;;  %v12013_v8 = vsub.f32 %v20000_v58, %v12012_v63  ;;  %v12836_v21 = vpop.permute.xlu0 %12835 }
 0x9cf   : > { %17658 = vmatprep.subr.mxu1 %v18808_v60  ;;  %v11546_v35 = vsub.f32 %v11477_v6, %v19959_v36  ;;  %v20025_v11 = vsub.f32 %v12385_v62, %v20016_v2  ;;  %v12456_v16 = vsub.f32 %v20021_v10, %v12455_v14 }
 0x9d0   : > { %v12014_v13 = vand.u32 4294901760, %v12013_v8 }
 0x9d1   : > { %v11547_v37 = vand.u32 4294901760, %v11546_v35  ;;  %v12457_v18 = vand.u32 4294901760, %v12456_v16 }
 0x9d3   : > { %v11548_v38 = vsub.f32 %v11546_v35, %v11547_v37 }
 0x9d5   : > { %17656 = vmatmul.mubr.f32.vlgmr.msra.gmra.mrb[24].mxu1 %v19943_v22  ;;  %v11549_v40 = vand.u32 4294901760, %v11548_v38 }
 0x9d6   : > { %17659 = vmatpush3.msra.mxu1 %v11105_v19  ;;  %17660 = vmatprep.mubr.msk.f32.mxu1 %vm18809_vm1, %v18808_v60 }
 0x9d7   : > { %17681 = vmatmul.mubr.f32.vlgmr.msra.gmra.mrb[26].mxu0 %v11549_v40  ;;  %17663 = vmatprep.subr.mxu1 %v18808_v60 }
 0x9d8   : > { %17684 = vmatpush3.msra.mxu0 %v11560_v49  ;;  %17685 = vmatprep.mubr.msk.f32.mxu0 %vm18809_vm1, %v18808_v60 }
 0x9d9   : > { %17688 = vmatprep.subr.mxu0 %v18808_v60 }
 0x9dd   : > { %17661 = vmatmul.mubr.f32.vlgmr.msra.gmra.mrb[24].mxu1 %v11094_v24  ;;  %v13288_v24 = vpop.permute.xlu1 %13287 }
 0x9de   : > { %17664 = vmatpush3.msra.mxu1 %v19928_v15  ;;  %17665 = vmatprep.mubr.msk.f32.mxu1 %vm18809_vm1, %v18808_v60  ;;  %v13291_v31 = vsel %vm923_vm2, %v13288_v24, 0 }
 0x9df   : > { %17686 = vmatmul.mubr.f32.vlgmr.msra.gmra.mrb[26].mxu0 %v19959_v36  ;;  %17668 = vmatprep.subr.mxu1 %v18808_v60  ;;  %v20091_v6 = vand.u32 4294901760, %v13291_v31 }
 0x9e0   : > { %17689 = vmatpush3.msra.mxu0 %v19951_v32  ;;  %17690 = vmatprep.mubr.msk.f32.mxu0 %vm18809_vm1, %v18808_v60 }
 0x9e1   : > { %17693 = vmatprep.subr.mxu0 %v18808_v60  ;;  %v13290_v28 = vpop.permute.xlu1 %13289 }
 0x9e2   : > { %v13293_v29 = vsel %vm923_vm2, %v13290_v28, 0 }
 0x9e5   : > { %17666 = vmatmul.mubr.f32.vlgmr.msra.gmra.mrb[24].mxu1 %v11095_v26 }
 0x9e6   : > { %17669 = vmatpush3.msra.mxu1 %v11106_v23  ;;  %17670 = vmatprep.mubr.msk.f32.mxu1 %vm18809_vm1, %v18808_v60  ;;  %v12839_v23 = vsel %vm923_vm2, %v12836_v21, 0 }
 0x9e7   : > { %17691 = vmatmul.mubr.f32.vlgmr.msra.gmra.mrb[26].mxu0 %v11546_v35  ;;  %17673 = vmatprep.subr.mxu1 %v18808_v60  ;;  %v20074_v26 = vand.u32 4294901760, %v12839_v23 }
 0x9e8   : > { %17694 = vmatpush3.msra.mxu0 %v19947_v25  ;;  %17695 = vmatprep.mubr.msk.f32.mxu0 %vm18809_vm1, %v18808_v60 }
 0x9e9   : > { %17698 = vmatprep.subr.mxu0 %v18808_v60  ;;  %v12919_v30 = vsub.f32 %v12839_v23, %v20074_v26 }
 0x9eb   : > { %v12920_v34 = vand.u32 4294901760, %v12919_v30 }
 0x9ed   : > { %17671 = vmatmul.mubr.f32.vlgmr.msra.gmra.mrb[24].mxu1 %v19943_v22  ;;  %v12921_v35 = vsub.f32 %v12919_v30, %v12920_v34 }
 0x9ee   : > { %17674 = vmatpush3.msra.mxu1 %v19928_v15  ;;  %17675 = vmatprep.mubr.msk.f32.mxu1 %vm18809_vm1, %v18808_v60  ;;  %v12466_v15 = vand.u32 4294901760, %v20025_v11 }
 0x9ef   : > { %17696 = vmatmul.mubr.f32.vlgmr.msra.gmra.mrb[26].mxu0 %v11547_v37  ;;  %17708 = vmatprep.subr.mxu1 %v18808_v60  ;;  %v13362_v37 = vsub.f32 %v13291_v31, %v20091_v6  ;;  %v12922_v40 = vand.u32 4294901760, %v12921_v35 }
 0x9f0   : > { %17699 = vmatpush3.msra.mxu0 %v11558_v33  ;;  %17700 = vmatprep.mubr.msk.f32.mxu0 %vm18809_vm1, %v18808_v60  ;;  %v12467_v17 = vsub.f32 %v20025_v11, %v12466_v15 }
 0x9f1   : > { %17703 = vmatprep.subr.mxu0 %v18808_v60  ;;  %v13363_v49 = vand.u32 4294901760, %v13362_v37 }
 0x9f2   : > { %v12468_v19 = vand.u32 4294901760, %v12467_v17 }
 0x9f3   : > { %v13364_v41 = vsub.f32 %v13362_v37, %v13363_v49 }
 0x9f5   : > { %17676 = vmatmul.mubr.f32.vlgmr.msra.gmra.mrb[24].mxu1 %v19943_v22  ;;  %v12837_v22 = vsel %vm923_vm2, %v12834_v20, 0  ;;  %v13365_v43 = vand.u32 4294901760, %v13364_v41 }
 0x9f6   : > { %17709 = vmatpush3.xpose.msra.mxu1 %v19990_v48  ;;  %17710 = vmatprep.mubr.msk.f32.mxu1 %vm18809_vm1, %v18808_v60 }
 0x9f7   : > { %17701 = vmatmul.mubr.f32.vlgmr.msra.gmra.mrb[26].mxu0 %v19959_v36  ;;  %17713 = vmatprep.subr.mxu1 %v18808_v60 }
 0x9f8   : > { %17704 = vmatpush3.msra.mxu0 %v19947_v25  ;;  %17705 = vmatprep.mubr.msk.f32.mxu0 %vm18809_vm1, %v18808_v60  ;;  %v20070_v25 = vand.u32 4294901760, %v12837_v22 }
 0x9f9   : > { %17711 = vmatmul.mubr.f32.vlgmr.msra.gmra.mrb[26].mxu1 %v12003_v12  ;;  %17738 = vmatprep.subr.mxu0 %v18808_v60 }
 0x9fa   : > { %17714 = vmatpush3.xpose.msra.mxu1 %v12014_v13  ;;  %17715 = vmatprep.mubr.msk.f32.mxu1 %vm18809_vm1, %v18808_v60  ;;  %v12908_v27 = vsub.f32 %v12837_v22, %v20070_v25 }
 0x9fb   : > { %17718 = vmatprep.subr.mxu1 %v18808_v60 }
 0x9fc   : > { %v12909_v32 = vand.u32 4294901760, %v12908_v27 }
 0x9fe   : > { %v12910_v33 = vsub.f32 %v12908_v27, %v12909_v32 }
 0x9ff   : > { %17706 = vmatmul.mubr.f32.vlgmr.msra.gmra.mrb[26].mxu0 %v19959_v36  ;;  %v20094_v36 = vand.u32 4294901760, %v13293_v29 }
 0xa00   : > { %17739 = vmatpush3.xpose.msra.mxu0 %v20016_v2  ;;  %17740 = vmatprep.mubr.msk.f32.mxu0 %vm18809_vm1, %v18808_v60  ;;  %v12911_v38 = vand.u32 4294901760, %v12910_v33 }
 0xa01   : > { %17716 = vmatmul.mubr.f32.vlgmr.msra.gmra.mrb[26].mxu1 %v19987_v45  ;;  %17743 = vmatprep.subr.mxu0 %v18808_v60  ;;  %v13373_v9 = vsub.f32 %v13293_v29, %v20094_v36 }
 0xa02   : > { %17719 = vmatpush3.xpose.msra.mxu1 %v20000_v58  ;;  %17720 = vmatprep.mubr.msk.f32.mxu1 %vm18809_vm1, %v18808_v60 }
 0xa03   : > { %17741 = vmatmul.mubr.f32.vlgmr.msra.gmra.mrb[28].mxu0 %v12457_v18  ;;  %17723 = vmatprep.subr.mxu1 %v18808_v60  ;;  %v13374_v39 = vand.u32 4294901760, %v13373_v9 }
 0xa04   : > { %17744 = vmatpush3.xpose.msra.mxu0 %v12468_v19  ;;  %17745 = vmatprep.mubr.msk.f32.mxu0 %vm18809_vm1, %v18808_v60 }
 0xa05   : > { %17748 = vmatprep.subr.mxu0 %v18808_v60  ;;  %v13375_v42 = vsub.f32 %v13373_v9, %v13374_v39 }
 0xa07   : > { %v13376_v44 = vand.u32 4294901760, %v13375_v42 }
 0xa09   : > { %17721 = vmatmul.mubr.f32.vlgmr.msra.gmra.mrb[26].mxu1 %v19997_v53 }
 0xa0a   : > { %17724 = vmatpush3.xpose.msra.mxu1 %v19990_v48  ;;  %17725 = vmatprep.mubr.msk.f32.mxu1 %vm18809_vm1, %v18808_v60 }
 0xa0b   : > { %17746 = vmatmul.mubr.f32.vlgmr.msra.gmra.mrb[28].mxu0 %v20013_v1  ;;  %17728 = vmatprep.subr.mxu1 %v18808_v60 }
 0xa0c   : > { %17749 = vmatpush3.xpose.msra.mxu0 %v20025_v11  ;;  %17750 = vmatprep.mubr.msk.f32.mxu0 %vm18809_vm1, %v18808_v60 }
 0xa0d   : > { %17753 = vmatprep.subr.mxu0 %v18808_v60 }
 0xa11   : > { %17726 = vmatmul.mubr.f32.vlgmr.msra.gmra.mrb[26].mxu1 %v12001_v61 }
 0xa12   : > { %17729 = vmatpush3.xpose.msra.mxu1 %v12012_v63  ;;  %17730 = vmatprep.mubr.msk.f32.mxu1 %vm18809_vm1, %v18808_v60 }
 0xa13   : > { %17751 = vmatmul.mubr.f32.vlgmr.msra.gmra.mrb[28].mxu0 %v20021_v10  ;;  %17733 = vmatprep.subr.mxu1 %v18808_v60 }
 0xa14   : > { %17754 = vmatpush3.xpose.msra.mxu0 %v20016_v2  ;;  %17755 = vmatprep.mubr.msk.f32.mxu0 %vm18809_vm1, %v18808_v60 }
 0xa15   : > { %17758 = vmatprep.subr.mxu0 %v18808_v60 }
 0xa19   : > { %17731 = vmatmul.mubr.f32.vlgmr.msra.gmra.mrb[26].mxu1 %v19987_v45 }
 0xa1a   : > { %17734 = vmatpush3.xpose.msra.mxu1 %v19990_v48  ;;  %17735 = vmatprep.mubr.msk.f32.mxu1 %vm18809_vm1, %v18808_v60 }
 0xa1b   : > { %17756 = vmatmul.mubr.f32.vlgmr.msra.gmra.mrb[28].mxu0 %v12455_v14  ;;  %17768 = vmatprep.subr.mxu1 %v18808_v60 }
 0xa1c   : > { %17759 = vmatpush3.xpose.msra.mxu0 %v12466_v15  ;;  %17760 = vmatprep.mubr.msk.f32.mxu0 %vm18809_vm1, %v18808_v60 }
 0xa1d   : > { %17763 = vmatprep.subr.mxu0 %v18808_v60 }
 0xa21   : > { %17736 = vmatmul.mubr.f32.vlgmr.msra.gmra.mrb[26].mxu1 %v19987_v45 }
 0xa22   : > { %17769 = vmatpush3.xpose.msra.mxu1 %v20074_v26  ;;  %17770 = vmatprep.mubr.msk.f32.mxu1 %vm18809_vm1, %v18808_v60 }
 0xa23   : > { %17761 = vmatmul.mubr.f32.vlgmr.msra.gmra.mrb[28].mxu0 %v20013_v1  ;;  %17773 = vmatprep.subr.mxu1 %v18808_v60 }
 0xa24   : > { %17764 = vmatpush3.xpose.msra.mxu0 %v20016_v2  ;;  %17765 = vmatprep.mubr.msk.f32.mxu0 %vm18809_vm1, %v18808_v60 }
 0xa25   : > { %17771 = vmatmul.mubr.f32.vlgmr.msra.gmra.mrb[28].mxu1 %v12911_v38  ;;  %17798 = vmatprep.subr.mxu0 %v18808_v60 }
 0xa26   : > { %17774 = vmatpush3.xpose.msra.mxu1 %v12922_v40  ;;  %17775 = vmatprep.mubr.msk.f32.mxu1 %vm18809_vm1, %v18808_v60 }
 0xa27   : > { %17778 = vmatprep.subr.mxu1 %v18808_v60 }
 0xa2b   : > { %17766 = vmatmul.mubr.f32.vlgmr.msra.gmra.mrb[28].mxu0 %v20013_v1 }
 0xa2c   : > { %17799 = vmatpush3.xpose.msra.mxu0 %v20094_v36  ;;  %17800 = vmatprep.mubr.msk.f32.mxu0 %vm18809_vm1, %v18808_v60 }
 0xa2d   : > { %17776 = vmatmul.mubr.f32.vlgmr.msra.gmra.mrb[28].mxu1 %v20070_v25  ;;  %17803 = vmatprep.subr.mxu0 %v18808_v60 }
 0xa2e   : > { %17779 = vmatpush3.xpose.msra.mxu1 %v12919_v30  ;;  %17780 = vmatprep.mubr.msk.f32.mxu1 %vm18809_vm1, %v18808_v60 }
 0xa2f   : > { %17801 = vmatmul.mubr.f32.vlgmr.msra.gmra.mrb[30].mxu0 %v13365_v43  ;;  %17783 = vmatprep.subr.mxu1 %v18808_v60 }
 0xa30   : > { %17804 = vmatpush3.xpose.msra.mxu0 %v13376_v44  ;;  %17805 = vmatprep.mubr.msk.f32.mxu0 %vm18809_vm1, %v18808_v60 }
 0xa31   : > { %17808 = vmatprep.subr.mxu0 %v18808_v60 }
 0xa35   : > { %17781 = vmatmul.mubr.f32.vlgmr.msra.gmra.mrb[28].mxu1 %v12908_v27 }
 0xa36   : > { %17784 = vmatpush3.xpose.msra.mxu1 %v20074_v26  ;;  %17785 = vmatprep.mubr.msk.f32.mxu1 %vm18809_vm1, %v18808_v60 }
 0xa37   : > { %17806 = vmatmul.mubr.f32.vlgmr.msra.gmra.mrb[30].mxu0 %v20091_v6  ;;  %17788 = vmatprep.subr.mxu1 %v18808_v60 }
 0xa38   : > { %17809 = vmatpush3.xpose.msra.mxu0 %v13373_v9  ;;  %17810 = vmatprep.mubr.msk.f32.mxu0 %vm18809_vm1, %v18808_v60 }
 0xa39   : > { %17813 = vmatprep.subr.mxu0 %v18808_v60 }
 0xa3d   : > { %17786 = vmatmul.mubr.f32.vlgmr.msra.gmra.mrb[28].mxu1 %v12909_v32 }
 0xa3e   : > { %17789 = vmatpush3.xpose.msra.mxu1 %v12920_v34  ;;  %17790 = vmatprep.mubr.msk.f32.mxu1 %vm18809_vm1, %v18808_v60 }
 0xa3f   : > { %17811 = vmatmul.mubr.f32.vlgmr.msra.gmra.mrb[30].mxu0 %v13362_v37  ;;  %17793 = vmatprep.subr.mxu1 %v18808_v60 }
 0xa40   : > { %17814 = vmatpush3.xpose.msra.mxu0 %v20094_v36  ;;  %17815 = vmatprep.mubr.msk.f32.mxu0 %vm18809_vm1, %v18808_v60 }
 0xa41   : > { %17818 = vmatprep.subr.mxu0 %v18808_v60 }
 0xa45   : > { %17791 = vmatmul.mubr.f32.vlgmr.msra.gmra.mrb[28].mxu1 %v20070_v25 }
 0xa46   : > { %17794 = vmatpush3.xpose.msra.mxu1 %v20074_v26  ;;  %17795 = vmatprep.mubr.msk.f32.mxu1 %vm18809_vm1, %v18808_v60 }
 0xa47   : > { %17816 = vmatmul.mubr.f32.vlgmr.msra.gmra.mrb[30].mxu0 %v13363_v49  ;;  %17828 = vmatprep.subr.mxu1 %v18808_v60 }
 0xa48   : > { %17819 = vmatpush3.xpose.msra.mxu0 %v13374_v39  ;;  %17820 = vmatprep.mubr.msk.f32.mxu0 %vm18809_vm1, %v18808_v60 }
 0xa49   : > { %17823 = vmatprep.subr.mxu0 %v18808_v60 }
 0xa4d   : > { %17796 = vmatmul.mubr.f32.vlgmr.msra.gmra.mrb[28].mxu1 %v20070_v25 }
 0xa4e   : > { %17830 = vmatprep.mubr.msk.f32.mxu1 %vm18809_vm1, %v18808_v60 }
 0xa4f   : > { %17821 = vmatmul.mubr.f32.vlgmr.msra.gmra.mrb[30].mxu0 %v20091_v6 }
 0xa50   : > { %17824 = vmatpush3.xpose.msra.mxu0 %v20094_v36  ;;  %17825 = vmatprep.mubr.msk.f32.mxu0 %vm18809_vm1, %v18808_v60 }
 0xa51   : > { %17858 = vmatprep.subr.mxu0 %v18808_v60 }
 0xa57   : > { %17826 = vmatmul.mubr.f32.vlgmr.msra.gmra.mrb[30].mxu0 %v20091_v6 }
 0xa58   : > { %17860 = vmatprep.mubr.msk.f32.mxu0 %vm18809_vm1, %v18808_v60 }
 0xa93   : > { %v10565_v45 = vpop.f32.mrb[22].mxu1 }
 0xa94   : > { %v17617_v48 = vpop.f32.mrb[23].mxu1 }
 0xa9d   : > { %v11017_v53 = vpop.f32.mrb[24].mxu0 }
 0xa9e   : > { %v17647_v56 = vpop.f32.mrb[25].mxu0 }
 0xac8   : > { %v11469_v58 = vpop.f32.mrb[24].mxu1 }
 0xac9   : > { %v17677_v59 = vpop.f32.mrb[25].mxu1 }
 0xad2   : > { %v11921_v61 = vpop.f32.mrb[26].mxu0 }
 0xad3   : > { %v17707_v62 = vpop.f32.mrb[27].mxu0 }
 0xaf4   : > { %v12375_v63 = vpop.f32.mrb[26].mxu1 }
 0xaf5   : > { %v17737_v1 = vpop.f32.mrb[27].mxu1  ;;  %v13741_v2 = vsel %vm923_vm2, %v12375_v63, -inf }
 0xaf6   : > { %13742 = vmax.xlane.f32.xlu0 %v13741_v2 }
 0xafe   : > { %v12829_v7 = vpop.f32.mrb[28].mxu0 }
 0xaff   : > { %v17767_v8 = vpop.f32.mrb[29].mxu0  ;;  %v13744_v10 = vsel %vm923_vm2, %v12829_v7, -inf }
 0xb00   : > { %13745 = vmax.xlane.f32.xlu1 %v13744_v10 }
 0xb20   : > { %v13283_v11 = vpop.f32.mrb[28].mxu1 }
 0xb21   : > { %v17797_v12 = vpop.f32.mrb[29].mxu1  ;;  %v13747_v13 = vsel %vm923_vm2, %v13283_v11, -inf }
 0xb22   : > { %13748 = vmax.xlane.f32.xlu0 %v13747_v13 }
 0xb2a   : > { %v13737_v14 = vpop.f32.mrb[30].mxu0 }
 0xb2b   : > { %v17827_v15 = vpop.f32.mrb[31].mxu0  ;;  %v13750_v16 = vsel %vm923_vm2, %v13737_v14, -inf }
 0xb2c   : > { %13751 = vmax.xlane.f32.xlu0 %v13750_v16 }
 0xb83   : > { %v13743_v17 = vpop.xlane.xlu0 %13742 }
 0xb84   : > { %v13753_v18 = vsub.f32 %v12375_v63, %v13743_v17 }
 0xb86   : > { %v13757_v19 = vmul.f32 1.442695, %v13753_v18 }
 0xb88   : > { %18629 = vpow2.f32 %v13757_v19 }
 0xb8d   : > { %v13746_v20 = vpop.xlane.xlu1 %13745 }
 0xb8e   : > { %v13754_v21 = vsub.f32 %v12829_v7, %v13746_v20 }
 0xb90   : > { %v13759_v22 = vmul.f32 1.442695, %v13754_v21 }
 0xb92   : > { %v18630_v23 = vpop.eup %18629  ;;  %18631 = vpow2.f32 %v13759_v22 }
 0xb93   : > { %v13765_v24 = vsel %vm923_vm2, %v18630_v23, 0.0 }
 0xb94   : > { %13766 = vadd.xlane.f32.xlu1 %v13765_v24 }
 0xb9c   : > { %v18632_v25 = vpop.eup %18631 }
 0xb9d   : > { %v13768_v26 = vsel %vm923_vm2, %v18632_v25, 0.0 }
 0xb9e   : > { %13769 = vadd.xlane.f32.xlu0 %v13768_v26 }
 0xba5   : > { %13785 = vrot.lane.b32.xlu1 %v19124_v0, %s18820_s8 }
 0xbaf   : > { %v13749_v27 = vpop.xlane.xlu0 %13748 }
 0xbb0   : > { %v13755_v28 = vsub.f32 %v13283_v11, %v13749_v27 }
 0xbb2   : > { %v13761_v30 = vmul.f32 1.442695, %v13755_v28 }
 0xbb4   : > { %14237 = vrot.lane.b32.xlu0 %v19127_v3, %s18820_s8  ;;  %18633 = vpow2.f32 %v13761_v30 }
 0xbb9   : > { %v13752_v31 = vpop.xlane.xlu0 %13751 }
 0xbba   : > { %v13756_v32 = vsub.f32 %v13737_v14, %v13752_v31 }
 0xbbc   : > { %v13763_v29 = vmul.f32 1.442695, %v13756_v32 }
 0xbbe   : > { %v20165_v34 = vpop.eup %18633  ;;  %18635 = vpow2.f32 %v13763_v29 }
 0xbbf   : > { %v13771_v6 = vsel %vm923_vm2, %v20165_v34, 0.0 }
 0xbc8   : > { %v20169_v36 = vpop.eup %18635 }
 0xbc9   : > { %13772 = vadd.xlane.f32.xlu1 %v13771_v6  ;;  %v13774_v0 = vsel %vm923_vm2, %v20169_v36, 0.0 }
 0xbd3   : > { %13775 = vadd.xlane.f32.xlu0 %v13774_v0 }
 0xbda   : > { %14689 = vrot.lane.b32.xlu1 %v19129_v4, %s18820_s8 }
 0xbde   : > { %15597 = vrot.lane.b32.xlu1 %v19844_v46, %s18821_s12 }
 0xbe2   : > { %15599 = vrot.lane.b32.xlu1 %v19846_v51, %s18821_s12 }
 0xbe6   : > { %15615 = vrot.lane.b32.xlu1 %v11017_v53, %s18822_s24 }
 0xbe9   : > { %15141 = vrot.lane.b32.xlu0 %v19133_v5, %s18820_s8  ;;  %s18737_s8 = scalar_lea.vmem %s18736_s7, 1024 }
 0xbea   : > { %15603 = vrot.lane.b32.xlu1 %v19850_v57, %s18821_s12  ;;  %p18739_p9 = scmp.lt.s32.totalorder %s18737_s8, %s18731_s11 }
 0xbec   : > { %p18740_p12 = por %p18739_p9, %p18738_p7 }
 0xbed   : > { %15613 = vrot.lane.b32.xlu0 %v10565_v45, %s18822_s24 }
 0xbee   : > { %15619 = vrot.lane.b32.xlu1 %v11921_v61, %s18822_s24  ;;  %p18741_p1 = pnand %p18740_p12, %p18734_p3 }
 0xbf1   : > { %15601 = vrot.lane.b32.xlu0 %v19848_v55, %s18821_s12 }
 0xbf5   : > { %15617 = vrot.lane.b32.xlu0 %v11469_v58, %s18822_s24 }
 0xc21   : > { %v13767_v3 = vpop.xlane.xlu1 %13766 }
 0xc22   : > { %18637 = vrcp.f32 %v13767_v3 }
 0xc25   : > { %v13786_v4 = vpop.permute.xlu1 %13785 }
 0xc26   : > { %v20183_v46 = vand.u32 4294901760, %v13786_v4 }
 0xc28   : > { %17829 = vmatpush3.msra.mxu1 %v20183_v46  ;;  %v13869_v57 = vsub.f32 %v13786_v4, %v20183_v46  ;;  %v15655_v4 = vld [vmem:[#allocation7] sm:$0xff] }
 0xc29   : > { %17833 = vmatprep.subr.mxu1 %v18808_v60 }
 0xc2a   : > { %v13870_v38 = vand.u32 4294901760, %v13869_v57 }
 0xc2b   : > { %v13770_v51 = vpop.xlane.xlu0 %13769 }
 0xc2c   : > { %v18638_v5 = vpop.eup %18637  ;;  %18639 = vrcp.f32 %v13770_v51  ;;  %v13871_v39 = vsub.f32 %v13869_v57, %v13870_v38  ;;  %v15679_v51 = vand.u32 4294901760, %v15655_v4 }
 0xc2d   : > { %v13778_v33 = vmul.f32 %v18638_v5, %v18630_v23 }
 0xc2e   : > { %v13872_v48 = vand.u32 4294901760, %v13871_v39 }
 0xc2f   : > { %v14238_v35 = vpop.permute.xlu0 %14237  ;;  %v13789_v37 = vsel %vm923_vm2, %v13778_v33, 0  ;;  %v15789_v33 = vsub.f32 %v15655_v4, %v15679_v51 }
 0xc30   : > { %v20189_v55 = vand.u32 4294901760, %v14238_v35  ;;  %v20191_v9 = vand.u32 4294901760, %v13789_v37 }
 0xc32   : > { %17859 = vmatpush3.msra.mxu0 %v20189_v55  ;;  %v13858_v40 = vsub.f32 %v13789_v37, %v20191_v9  ;;  %v14321_v44 = vsub.f32 %v14238_v35, %v20189_v55  ;;  %v15657_v37 = vld [vmem:[#allocation7 + $0x10] sm:$0xff] }
 0xc33   : > { %17863 = vmatprep.subr.mxu0 %v18808_v60 }
 0xc34   : > { %v13859_v49 = vand.u32 4294901760, %v13858_v40  ;;  %v14322_v58 = vand.u32 4294901760, %v14321_v44 }
 0xc36   : > { %v18640_v41 = vpop.eup %18639  ;;  %v13860_v42 = vsub.f32 %v13858_v40, %v13859_v49  ;;  %v14323_v62 = vsub.f32 %v14321_v44, %v14322_v58 }
 0xc37   : > { %v13780_v43 = vmul.f32 %v18640_v41, %v18632_v25 }
 0xc38   : > { %v13861_v45 = vand.u32 4294901760, %v13860_v42  ;;  %v14324_v2 = vand.u32 4294901760, %v14323_v62 }
 0xc39   : > { %v14241_v53 = vsel %vm923_vm2, %v13780_v43, 0 }
 0xc3a   : > { %17831 = vmatmul.mubr.f32.vlgmr.msra.gmra.mrb[30].mxu1 %v13861_v45  ;;  %v20198_v56 = vand.u32 4294901760, %v14241_v53 }
 0xc3b   : > { %17834 = vmatpush3.msra.mxu1 %v13872_v48  ;;  %17835 = vmatprep.mubr.msk.f32.mxu1 %vm18809_vm1, %v18808_v60  ;;  %v15790_v48 = vand.u32 4294901760, %v15789_v33 }
 0xc3c   : > { %17838 = vmatprep.subr.mxu1 %v18808_v60  ;;  %v14310_v59 = vsub.f32 %v14241_v53, %v20198_v56 }
 0xc3e   : > { %v14311_v61 = vand.u32 4294901760, %v14310_v59 }
 0xc40   : > { %v14312_v63 = vsub.f32 %v14310_v59, %v14311_v61 }
 0xc42   : > { %17836 = vmatmul.mubr.f32.vlgmr.msra.gmra.mrb[30].mxu1 %v20191_v9  ;;  %v14313_v1 = vand.u32 4294901760, %v14312_v63 }
 0xc43   : > { %17839 = vmatpush3.msra.mxu1 %v13869_v57  ;;  %17840 = vmatprep.mubr.msk.f32.mxu1 %vm18809_vm1, %v18808_v60 }
 0xc44   : > { %17861 = vmatmul.mubr.f32.vlgmr.msra.gmra.mrb[32].mxu0 %v14313_v1  ;;  %17843 = vmatprep.subr.mxu1 %v18808_v60 }
 0xc45   : > { %17864 = vmatpush3.msra.mxu0 %v14324_v2  ;;  %17865 = vmatprep.mubr.msk.f32.mxu0 %vm18809_vm1, %v18808_v60 }
 0xc46   : > { %17868 = vmatprep.subr.mxu0 %v18808_v60 }
 0xc4a   : > { %17841 = vmatmul.mubr.f32.vlgmr.msra.gmra.mrb[30].mxu1 %v13858_v40 }
 0xc4b   : > { %17844 = vmatpush3.msra.mxu1 %v20183_v46  ;;  %17845 = vmatprep.mubr.msk.f32.mxu1 %vm18809_vm1, %v18808_v60 }
 0xc4c   : > { %17866 = vmatmul.mubr.f32.vlgmr.msra.gmra.mrb[32].mxu0 %v20198_v56  ;;  %17848 = vmatprep.subr.mxu1 %v18808_v60 }
 0xc4d   : > { %17869 = vmatpush3.msra.mxu0 %v14321_v44  ;;  %17870 = vmatprep.mubr.msk.f32.mxu0 %vm18809_vm1, %v18808_v60 }
 0xc4e   : > { %17873 = vmatprep.subr.mxu0 %v18808_v60 }
 0xc52   : > { %17846 = vmatmul.mubr.f32.vlgmr.msra.gmra.mrb[30].mxu1 %v13859_v49 }
 0xc53   : > { %17849 = vmatpush3.msra.mxu1 %v13870_v38  ;;  %17850 = vmatprep.mubr.msk.f32.mxu1 %vm18809_vm1, %v18808_v60  ;;  %v15685_v38 = vand.u32 4294901760, %v15657_v37 }
 0xc54   : > { %17871 = vmatmul.mubr.f32.vlgmr.msra.gmra.mrb[32].mxu0 %v14310_v59  ;;  %17853 = vmatprep.subr.mxu1 %v18808_v60  ;;  %v15791_v59 = vsub.f32 %v15789_v33, %v15790_v48 }
 0xc55   : > { %17874 = vmatpush3.msra.mxu0 %v20189_v55  ;;  %17875 = vmatprep.mubr.msk.f32.mxu0 %vm18809_vm1, %v18808_v60  ;;  %v15803_v49 = vsub.f32 %v15657_v37, %v15685_v38 }
 0xc56   : > { %v13773_v7 = vpop.xlane.xlu1 %13772  ;;  %17878 = vmatprep.subr.mxu0 %v18808_v60  ;;  %v15792_v62 = vand.u32 4294901760, %v15791_v59 }
 0xc57   : > { %18641 = vrcp.f32 %v13773_v7  ;;  %v15804_v1 = vand.u32 4294901760, %v15803_v49 }
 0xc5a   : > { %17851 = vmatmul.mubr.f32.vlgmr.msra.gmra.mrb[30].mxu1 %v20191_v9  ;;  %v14690_v8 = vpop.permute.xlu1 %14689 }
 0xc5b   : > { %17854 = vmatpush3.msra.mxu1 %v20183_v46  ;;  %17855 = vmatprep.mubr.msk.f32.mxu1 %vm18809_vm1, %v18808_v60  ;;  %v20233_v10 = vand.u32 4294901760, %v14690_v8  ;;  %v15656_v46 = vld [vmem:[#allocation7 + $0x8] sm:$0xff] }
 0xc5c   : > { %17876 = vmatmul.mubr.f32.vlgmr.msra.gmra.mrb[32].mxu0 %v14311_v61  ;;  %17888 = vmatprep.subr.mxu1 %v18808_v60  ;;  %v15682_v5 = vand.u32 4294901760, %v15656_v46 }
 0xc5d   : > { %17879 = vmatpush3.msra.mxu0 %v14322_v58  ;;  %17880 = vmatprep.mubr.msk.f32.mxu0 %vm18809_vm1, %v18808_v60  ;;  %v14773_v14 = vsub.f32 %v14690_v8, %v20233_v10  ;;  %v15805_v8 = vsub.f32 %v15803_v49, %v15804_v1 }
 0xc5e   : > { %17883 = vmatprep.subr.mxu0 %v18808_v60  ;;  %v15796_v57 = vsub.f32 %v15656_v46, %v15682_v5  ;;  %v20285_v35 = vpack.c.bf16 %v15682_v5, %v15679_v51 }
 0xc5f   : > { %v14774_v18 = vand.u32 4294901760, %v14773_v14 }
 0xc60   : > { %v13776_v11 = vpop.xlane.xlu0 %13775  ;;  %v15797_v53 = vand.u32 4294901760, %v15796_v57 }
 0xc61   : > { %v18642_v12 = vpop.eup %18641  ;;  %18643 = vrcp.f32 %v13776_v11  ;;  %v14775_v22 = vsub.f32 %v14773_v14, %v14774_v18 }
 0xc62   : > { %v13782_v13 = vmul.f32 %v18642_v12, %v20165_v34  ;;  %17856 = vmatmul.mubr.f32.vlgmr.msra.gmra.mrb[30].mxu1 %v20191_v9  ;;  %v18096_v9 = vpack.c.bf16 %v15796_v57, %v15789_v33  ;;  %v15798_v61 = vsub.f32 %v15796_v57, %v15797_v53  ;;  %v20297_v11 = vpack.c.bf16 %v15797_v53, %v15790_v48 }
 0xc63   : > { %17889 = vmatpush3.msra.mxu1 %v20233_v10  ;;  %17890 = vmatprep.mubr.msk.f32.mxu1 %vm18809_vm1, %v18808_v60  ;;  %v14776_v28 = vand.u32 4294901760, %v14775_v22  ;;  %v15806_v12 = vand.u32 4294901760, %v15805_v8 }
 0xc64   : > { %17881 = vmatmul.mubr.f32.vlgmr.msra.gmra.mrb[32].mxu0 %v20198_v56  ;;  %17893 = vmatprep.subr.mxu1 %v18808_v60  ;;  %v14693_v15 = vsel %vm923_vm2, %v13782_v13, 0  ;;  %v15142_v16 = vpop.permute.xlu0 %15141  ;;  %v15799_v63 = vand.u32 4294901760, %v15798_v61 }
 0xc65   : > { %17884 = vmatpush3.msra.mxu0 %v20189_v55  ;;  %17885 = vmatprep.mubr.msk.f32.mxu0 %vm18809_vm1, %v18808_v60  ;;  %v14761_v17 = vand.u32 4294901760, %v14693_v15  ;;  %v15148_v20 = vand.u32 4294901760, %v15142_v16  ;;  %v15658_v55 = vld [vmem:[#allocation7 + $0x18] sm:$0xff] }
 0xc66   : > { %17918 = vmatprep.subr.mxu0 %v18808_v60  ;;  %v15688_v40 = vand.u32 4294901760, %v15658_v55  ;;  %v18088_v7 = vpack.c.bf16 %v15799_v63, %v15792_v62 }
 0xc67   : > { %v14762_v19 = vsub.f32 %v14693_v15, %v14761_v17  ;;  %v15225_v26 = vsub.f32 %v15142_v16, %v15148_v20 }
 0xc68   : > { %v15810_v39 = vsub.f32 %v15658_v55, %v15688_v40  ;;  %v20291_v43 = vpack.c.bf16 %v15688_v40, %v15685_v38 }
 0xc69   : > { %v14763_v21 = vand.u32 4294901760, %v14762_v19  ;;  %v15226_v32 = vand.u32 4294901760, %v15225_v26 }
 0xc6a   : > { %v15811_v2 = vand.u32 4294901760, %v15810_v39 }
 0xc6b   : > { %v18644_v23 = vpop.eup %18643  ;;  %v14764_v24 = vsub.f32 %v14762_v19, %v14763_v21  ;;  %v15227_v6 = vsub.f32 %v15225_v26, %v15226_v32 }
 0xc6c   : > { %v13784_v25 = vmul.f32 %v18644_v23, %v20169_v36  ;;  %17886 = vmatmul.mubr.f32.vlgmr.msra.gmra.mrb[32].mxu0 %v20198_v56 }
 0xc6d   : > { %17919 = vmatpush3.msra.mxu0 %v15148_v20  ;;  %v14765_v27 = vand.u32 4294901760, %v14764_v24  ;;  %17920 = vmatprep.mubr.msk.f32.mxu0 %vm18809_vm1, %v18808_v60  ;;  %v15228_v3 = vand.u32 4294901760, %v15227_v6 }
 0xc6e   : > { %17923 = vmatprep.subr.mxu0 %v18808_v60  ;;  %v15145_v30 = vsel %vm923_vm2, %v13784_v25, 0 }
 0xc6f   : > { %17891 = vmatmul.mubr.f32.vlgmr.msra.gmra.mrb[32].mxu1 %v14765_v27  ;;  %v15213_v31 = vand.u32 4294901760, %v15145_v30 }
 0xc70   : > { %17894 = vmatpush3.msra.mxu1 %v14776_v28  ;;  %17895 = vmatprep.mubr.msk.f32.mxu1 %vm18809_vm1, %v18808_v60 }
 0xc71   : > { %17898 = vmatprep.subr.mxu1 %v18808_v60  ;;  %v15214_v29 = vsub.f32 %v15145_v30, %v15213_v31 }
 0xc73   : > { %v15215_v34 = vand.u32 4294901760, %v15214_v29 }
 0xc75   : > { %v15216_v36 = vsub.f32 %v15214_v29, %v15215_v34 }
 0xc77   : > { %17896 = vmatmul.mubr.f32.vlgmr.msra.gmra.mrb[32].mxu1 %v14761_v17  ;;  %v15217_v0 = vand.u32 4294901760, %v15216_v36 }
 0xc78   : > { %17899 = vmatpush3.msra.mxu1 %v14773_v14  ;;  %17900 = vmatprep.mubr.msk.f32.mxu1 %vm18809_vm1, %v18808_v60 }
 0xc79   : > { %17921 = vmatmul.mubr.f32.vlgmr.msra.gmra.mrb[34].mxu0 %v15217_v0  ;;  %17903 = vmatprep.subr.mxu1 %v18808_v60 }
 0xc7a   : > { %17924 = vmatpush3.msra.mxu0 %v15228_v3  ;;  %17925 = vmatprep.mubr.msk.f32.mxu0 %vm18809_vm1, %v18808_v60 }
 0xc7b   : > { %17928 = vmatprep.subr.mxu0 %v18808_v60 }
 0xc7f   : > { %17901 = vmatmul.mubr.f32.vlgmr.msra.gmra.mrb[32].mxu1 %v14762_v19  ;;  %v15614_v19 = vpop.permute.xlu0 %15613 }
 0xc80   : > { %17904 = vmatpush3.msra.mxu1 %v20233_v10  ;;  %17905 = vmatprep.mubr.msk.f32.mxu1 %vm18809_vm1, %v18808_v60 }
 0xc81   : > { %17926 = vmatmul.mubr.f32.vlgmr.msra.gmra.mrb[34].mxu0 %v15213_v31  ;;  %17908 = vmatprep.subr.mxu1 %v18808_v60 }
 0xc82   : > { %17929 = vmatpush3.msra.mxu0 %v15225_v26  ;;  %17930 = vmatprep.mubr.msk.f32.mxu0 %vm18809_vm1, %v18808_v60 }
 0xc83   : > { %17933 = vmatprep.subr.mxu0 %v18808_v60 }
 0xc87   : > { %17906 = vmatmul.mubr.f32.vlgmr.msra.gmra.mrb[32].mxu1 %v14763_v21  ;;  %v15602_v21 = vpop.permute.xlu0 %15601 }
 0xc88   : > { %17909 = vmatpush3.msra.mxu1 %v14774_v18  ;;  %17910 = vmatprep.mubr.msk.f32.mxu1 %vm18809_vm1, %v18808_v60  ;;  %v15598_v18 = vpop.permute.xlu1 %15597  ;;  %v15643_v37 = vsel %vm923_vm2, %v19535_v52, %v15602_v21 }
 0xc89   : > { %17931 = vmatmul.mubr.f32.vlgmr.msra.gmra.mrb[34].mxu0 %v15214_v29  ;;  %17913 = vmatprep.subr.mxu1 %v18808_v60  ;;  %v15641_v24 = vsel %vm923_vm2, %v19531_v47, %v15598_v18 }
 0xc8a   : > { %17934 = vmatpush3.msra.mxu0 %v15148_v20  ;;  %17935 = vmatprep.mubr.msk.f32.mxu0 %vm18809_vm1, %v18808_v60  ;;  %v15646_v25 = vsel %vm15645_vm3, %v15641_v24, %v15614_v19 }
 0xc8b   : > { %17938 = vmatprep.subr.mxu0 %v18808_v60  ;;  %v15618_v23 = vpop.permute.xlu0 %15617 }
 0xc8c   : > { %v15648_v55 = vsel %vm15645_vm3, %v15643_v37, %v15618_v23 }
 0xc8f   : > { %17911 = vmatmul.mubr.f32.vlgmr.msra.gmra.mrb[32].mxu1 %v14761_v17 }
 0xc90   : > { %17914 = vmatpush3.msra.mxu1 %v20233_v10  ;;  %17915 = vmatprep.mubr.msk.f32.mxu1 %vm18809_vm1, %v18808_v60  ;;  %v15812_v10 = vsub.f32 %v15810_v39, %v15811_v2 }
 0xc91   : > { %17936 = vmatmul.mubr.f32.vlgmr.msra.gmra.mrb[34].mxu0 %v15215_v34  ;;  %18097 = vmatprep.subr.bf16.mxu1 %v18096_v9 }
 0xc92   : > { %17939 = vmatpush3.msra.mxu0 %v15226_v32  ;;  %17940 = vmatprep.mubr.msk.f32.mxu0 %vm18809_vm1, %v18808_v60  ;;  %v15813_v13 = vand.u32 4294901760, %v15812_v10 }
 0xc93   : > { %17943 = vmatprep.subr.mxu0 %v18808_v60 }
 0xc94   : > { %v18092_v14 = vpack.c.bf16 %v15813_v13, %v15806_v12 }
 0xc97   : > { %17916 = vmatmul.mubr.f32.vlgmr.msra.gmra.mrb[32].mxu1 %v14761_v17  ;;  %v20300_v17 = vpack.c.bf16 %v15811_v2, %v15804_v1 }
 0xc98   : > { %18099 = vmatpush3.bf16.msra.mxu1 %v18096_v9 }
 0xc99   : > { %17941 = vmatmul.mubr.f32.vlgmr.msra.gmra.mrb[34].mxu0 %v15213_v31 }
 0xc9a   : > { %17944 = vmatpush3.msra.mxu0 %v15148_v20  ;;  %17945 = vmatprep.mubr.msk.f32.mxu0 %vm18809_vm1, %v18808_v60  ;;  %v18100_v60 = vpack.c.bf16 %v15810_v39, %v15803_v49  ;;  %v15600_v20 = vpop.permute.xlu1 %15599 }
 0xc9b   : > { %18081 = vmatprep.subr.bf16.mxu0 %v20285_v35  ;;  %v15642_v6 = vsel %vm923_vm2, %v19533_v50, %v15600_v20 }
 0xc9c   : > { %18101 = vmatprep.subr.bf16.mxu1 %v18100_v60 }
 0xc9d   : > { %18103 = vmatpush3.bf16.msra.mxu1 %v18100_v60 }
 0xc9e   : > { %18105 = vmatprep.subr.bf16.mxu1 %v20285_v35  ;;  %v15616_v22 = vpop.permute.xlu1 %15615 }
 0xc9f   : > { %v15647_v47 = vsel %vm15645_vm3, %v15642_v6, %v15616_v22 }
 0xca1   : > { %17946 = vmatmul.mubr.f32.vlgmr.msra.gmra.mrb[34].mxu0 %v15213_v31 }
 0xca2   : > { %18083 = vmatpush3.bf16.msra.mxu0 %v20285_v35  ;;  %v15604_v26 = vpop.permute.xlu1 %15603 }
 0xca3   : > { %18085 = vmatprep.subr.bf16.mxu0 %v20291_v43 }
 0xca6   : > { %18087 = vmatpush3.bf16.msra.mxu0 %v20291_v43  ;;  %v15620_v29 = vpop.permute.xlu1 %15619 }
 0xca7   : > { %18089 = vmatprep.subr.bf16.mxu0 %v18088_v7 }
 0xd35   : > { %v14233_v41 = vpop.f32.mrb[30].mxu1 }
 0xd36   : > { %v17857_v42 = vpop.f32.mrb[31].mxu1  ;;  %15629 = vrot.lane.b32.xlu0 %v14233_v41, %s18823_s26  ;;  %v15644_v41 = vsel %vm923_vm2, %v19537_v54, %v15604_v26 }
 0xd3f   : > { %v14685_v44 = vpop.f32.mrb[32].mxu0 }
 0xd40   : > { %15631 = vrot.lane.b32.xlu1 %v14685_v44, %s18823_s26  ;;  %v17887_v45 = vpop.f32.mrb[33].mxu0  ;;  %v15649_v44 = vsel %vm15645_vm3, %v15644_v41, %v15620_v29 }
 0xd6a   : > { %v15137_v56 = vpop.f32.mrb[32].mxu1 }
 0xd6b   : > { %v17917_v58 = vpop.f32.mrb[33].mxu1  ;;  %15633 = vrot.lane.b32.xlu0 %v15137_v56, %s18823_s26 }
 0xd74   : > { %v15589_v15 = vpop.f32.mrb[34].mxu0 }
 0xd75   : > { %15635 = vrot.lane.b32.xlu1 %v15589_v15, %s18823_s26  ;;  %v17947_v16 = vpop.f32.mrb[35].mxu0 }
 0xda8   : > { %v15630_v27 = vpop.permute.xlu0 %15629 }
 0xda9   : > { %v15651_v28 = vsel %vm15650_vm4, %v15646_v25, %v15630_v27 }
 0xdaa   : > { %v15667_v30 = vsel %vm289_vm0, %v15651_v28, 0 }
 0xdab   : > { %v20307_v31 = vand.u32 4294901760, %v15667_v30 }
 0xdad   : > { %v15748_v32 = vsub.f32 %v15667_v30, %v20307_v31 }
 0xdaf   : > { %17984 = vmatprep.mubr.f32.mxu1 %v15748_v32  ;;  %v15749_v34 = vand.u32 4294901760, %v15748_v32 }
 0xdb1   : > { %v15750_v36 = vsub.f32 %v15748_v32, %v15749_v34 }
 0xdb2   : > { %v15632_v0 = vpop.permute.xlu1 %15631 }
 0xdb3   : > { %v15652_v3 = vsel %vm15650_vm4, %v15647_v47, %v15632_v0  ;;  %v15751_v4 = vand.u32 4294901760, %v15750_v36 }
 0xdb4   : > { %v15670_v46 = vsel %vm289_vm0, %v15652_v3, 0 }
 0xdb5   : > { %v15757_v51 = vand.u32 4294901760, %v15670_v46  ;;  %17956 = vmatprep.mubr.f32.mxu0 %v15751_v4 }
 0xdb7   : > { %v15758_v5 = vsub.f32 %v15670_v46, %v15757_v51 }
 0xdb9   : > { %v15759_v33 = vand.u32 4294901760, %v15758_v5  ;;  %17985 = vmatmul.mubr.f32.vlgmr.msra.gmra.mrb[34].mxu1 %v15758_v5 }
 0xdba   : > { %18107 = vmatpush3.bf16.msra.mxu1 %v20285_v35 }
 0xdbb   : > { %v15760_v57 = vsub.f32 %v15758_v5, %v15759_v33  ;;  %18109 = vmatprep.subr.bf16.mxu1 %v20291_v43 }
 0xdbd   : > { %v15761_v50 = vand.u32 4294901760, %v15760_v57 }
 0xdbe   : > { %18111 = vmatpush3.bf16.msra.mxu1 %v20291_v43 }
 0xdbf   : > { %17957 = vmatmul.mubr.f32.vlgmr.msra.gmra.mrb[36].mxu0 %v15761_v50  ;;  %18113 = vmatprep.subr.bf16.mxu1 %v20297_v11 }
 0xdc0   : > { %18091 = vmatpush3.bf16.msra.mxu0 %v18088_v7 }
 0xdc1   : > { %18093 = vmatprep.subr.bf16.mxu0 %v18092_v14 }
 0xdc4   : > { %18095 = vmatpush3.bf16.msra.mxu0 %v18092_v14 }
 0xddd   : > { %v15634_v9 = vpop.permute.xlu0 %15633 }
 0xdde   : > { %v15653_v38 = vsel %vm15650_vm4, %v15648_v55, %v15634_v9 }
 0xddf   : > { %v15673_v40 = vsel %vm289_vm0, %v15653_v38, 0 }
 0xde0   : > { %v15767_v49 = vand.u32 4294901760, %v15673_v40 }
 0xde2   : > { %v15768_v39 = vsub.f32 %v15673_v40, %v15767_v49 }
 0xde4   : > { %17987 = vmatprep.mubr.f32.mxu1 %v15768_v39  ;;  %v15769_v60 = vand.u32 4294901760, %v15768_v39 }
 0xde6   : > { %v15770_v42 = vsub.f32 %v15768_v39, %v15769_v60 }
 0xde7   : > { %v15636_v45 = vpop.permute.xlu1 %15635 }
 0xde8   : > { %v15654_v52 = vsel %vm15650_vm4, %v15649_v44, %v15636_v45  ;;  %v15771_v48 = vand.u32 4294901760, %v15770_v42 }
 0xde9   : > { %v15676_v53 = vsel %vm289_vm0, %v15654_v52, 0 }
 0xdea   : > { %v15777_v56 = vand.u32 4294901760, %v15676_v53  ;;  %17959 = vmatprep.mubr.f32.mxu0 %v15771_v48 }
 0xdec   : > { %v15778_v58 = vsub.f32 %v15676_v53, %v15777_v56 }
 0xdee   : > { %17988 = vmatmul.mubr.f32.gmra.mrb[36].mxu1 %v15778_v58  ;;  %v15779_v59 = vand.u32 4294901760, %v15778_v58 }
 0xdef   : > { %17998 = vmatprep.mubr.f32.mxu1 %v15749_v34 }
 0xdf0   : > { %v15780_v61 = vsub.f32 %v15778_v58, %v15779_v59 }
 0xdf2   : > { %17999 = vmatmul.mubr.f32.vlgmr.msra.gmra.mrb[34].mxu1 %v15759_v33  ;;  %v15781_v62 = vand.u32 4294901760, %v15780_v61 }
 0xdf3   : > { %18001 = vmatprep.mubr.f32.mxu1 %v15769_v60  ;;  %18115 = vmatpush3.bf16.msra.mxu1 %v20297_v11 }
 0xdf4   : > { %17960 = vmatmul.mubr.f32.gmra.mrb[38].mxu0 %v15781_v62  ;;  %18117 = vmatprep.subr.bf16.mxu1 %v20300_v17 }
 0xdf5   : > { %17970 = vmatprep.mubr.f32.mxu0 %v20307_v31 }
 0xdf6   : > { %18002 = vmatmul.mubr.f32.gmra.mrb[36].mxu1 %v15779_v59 }
 0xdf7   : > { %18119 = vmatpush3.bf16.msra.mxu1 %v20300_v17  ;;  %18012 = vmatprep.mubr.f32.mxu1 %v20307_v31 }
 0xdf8   : > { %17971 = vmatmul.mubr.f32.vlgmr.msra.gmra.mrb[36].mxu0 %v15757_v51  ;;  %18121 = vmatprep.subr.bf16.mxu1 %v20285_v35 }
 0xdf9   : > { %17973 = vmatprep.mubr.f32.mxu0 %v15767_v49 }
 0xdfa   : > { %18013 = vmatmul.mubr.f32.vlgmr.msra.gmra.mrb[34].mxu1 %v15757_v51 }
 0xdfb   : > { %18015 = vmatprep.mubr.f32.mxu1 %v15767_v49  ;;  %18123 = vmatpush3.bf16.msra.mxu1 %v20285_v35  ;;  %v16416_v35 = vld [vmem:[%s20403_s4] ss:$0 sm:$0xff] }
 0xdfc   : > { %17974 = vmatmul.mubr.f32.gmra.mrb[38].mxu0 %v15777_v56  ;;  %18125 = vmatprep.subr.bf16.mxu1 %v20291_v43 }
 0xdfe   : > { %18016 = vmatmul.mubr.f32.gmra.mrb[36].mxu1 %v15777_v56 }
 0xdff   : > { %18127 = vmatpush3.bf16.msra.mxu1 %v20291_v43  ;;  %18026 = vmatprep.mubr.f32.mxu1 %v20307_v31 }
 0xe02   : > { %18027 = vmatmul.mubr.f32.vlgmr.msra.gmra.mrb[34].mxu1 %v15757_v51 }
 0xe03   : > { %18029 = vmatprep.mubr.f32.mxu1 %v15767_v49 }
 0xe06   : > { %18030 = vmatmul.mubr.f32.gmra.mrb[36].mxu1 %v15777_v56 }
 0xecb   : > { %v17972_v54 = vpop.f32.mrb[36].mxu0 }
 0xecc   : > { %v15874_v63 = vpop.f32.mrb[37].mxu0  ;;  %v18133_v7 = vadd.f32 %v17972_v54, %v16416_v35 }
 0xecd   : > { %v18135_v8 = vadd.f32 %v16416_v35, %v15874_v63 }
 0xecf   : > { %v17975_v1 = vpop.f32.mrb[38].mxu0 }
 0xed0   : > { %v15886_v2 = vpop.f32.mrb[39].mxu0  ;;  %v18137_v13 = vadd.f32 %v17975_v1, %v16416_v35 }
 0xed1   : > { %v18139_v14 = vadd.f32 %v16416_v35, %v15886_v2 }
 0xed5   : > { %v18028_v10 = vpop.f32.mrb[34].mxu1 }
 0xed6   : > { %v18134_v11 = vadd.f32 %v18133_v7, %v18028_v10  ;;  %v16270_v12 = vpop.f32.mrb[35].mxu1 }
 0xed7   : > { %v18136_v43 = vadd.f32 %v18135_v8, %v16270_v12 }
 0xed8   : > { %16293 = vst.msk [vmem:[%s271_s10 + $0x8] sm:$0xff] %vm289_vm0, %v18134_v11 }
 0xed9   : > { %16292 = vst.msk [vmem:[%s271_s10] sm:$0xff] %vm289_vm0, %v18136_v43  ;;  %v18031_v15 = vpop.f32.mrb[36].mxu1 }
 0xeda   : > { %v18138_v16 = vadd.f32 %v18137_v13, %v18031_v15  ;;  %v16282_v17 = vpop.f32.mrb[37].mxu1 }
 0xedb   : > { %v18140_v18 = vadd.f32 %v18139_v14, %v16282_v17 }
 0xedc   : > { %16295 = vst.msk [vmem:[%s271_s10 + $0x18] sm:$0xff] %vm289_vm0, %v18138_v16 }
 0xedd   : > { %16294 = vst.msk [vmem:[%s271_s10 + $0x10] sm:$0xff] %vm289_vm0, %v18140_v18 }
 0xede   : > { %18744 = shalt.err (!%p18741_p1)
}
 0xedf   : > { %s18745_s24 = scalar_lea.hbm %s20352_s30, 512  ;;  %s18749_s16 = scalar_lea.hbm %s20404_s5, 1024 }
 0xee0   : > { %p18746_p13 = scmp.ne.s32.totalorder %s20352_s30, %s18745_s24  ;;  %p18750_p4 = scmp.lt.u32.totalorder %s20352_s30, %s20404_s5 }
 0xee1   : > { %p18751_p5 = scmp.lt.u32.totalorder %s18749_s16, %s18745_s24  ;;  %p18753_p11 = scmp.lt.u32.totalorder %s18745_s24, %s20352_s30 }
 0xee2   : > { %p18747_p6 = pnand %p18746_p13, %p20418_p0 }
 0xee3   : > { %p18752_p8 = por %p18751_p5, %p18750_p4 }
 0xee4   : > { %p18748_p10 = pneg %p18747_p6 }
 0xee5   : > { %p18754_p2 = por %p18753_p11, %p18752_p8 }
 0xee7   : > { %p18755_p3 = pnand %p18754_p2, %p18748_p10 }
 0xee9   : > { %18758 = shalt.err (!%p18755_p3)
}
 0xeea   : > { %s18825_s6 = smov 128  }
 0xeeb   : > { %18505 = dma.vmem_to_hbm [thread:$0]  (%p20418_p0), %s20347_s28, 512, %s20352_s30, %s16297_s22, %s18825_s6, %s18825_s6, %s18821_s12  }
 0xeec PF: > { %s16325_s9 = sand.u32 1, %s18789_s18   ;;  %p20419_p7 = scmp.ne.s32.totalorder %s20409_s25, 0 }
 0xeed   : > { %p20420_p9 = scmp.ge.s32.totalorder %s18801_s21, 2  ;;  %s16326_s11 = scalar_lea.sflag [#allocation4], %s16325_s9 }
 0xeef   : > { %p18519_p12 = pnand %p20420_p9, %p20419_p7 }
 0xef1   : > { %18784 = dma.done.wait (!%p18519_p12), %s16326_s11, 512  }
 0xef2   : > { %18786 = vsyncadd (!%p18519_p12), %s16326_s11, 4294966784  ;;  %p19_p1 = scmp.ge.s32.totalorder %s18972_s29, 4   ;;  %s20421_s18 = smov %s18793_s19 }
 0xef3   : > { %s20422_s19 = smov %s18797_s20  ;;  %s20423_s20 = smov %s18988_s27 }
 0xef4   : > { %s20424_s21 = smov %s18972_s29  ;;  %21 = sbr.rel (!%p19_p1) target bundleno = 6 (0x6), region = 93 }
 0xefb   :  { %16331 = vsyncpa [#allocation3], 1 }
 0xefc   :  { %16333 = vsyncpa [#allocation3 + $0x1], 1 }
 0xefd   :  { %16334 = vsyncpa [#allocation6], 1 }
 0xefe   :  { %16335 = vsyncpa [#allocation4], 1 }
 0xeff   :  { %16337 = vsyncpa [#allocation4 + $0x1], 1 }

</bundles_post_ra>
